<compile_context>
chip_gen: v5e
topology: v5e:2x2
jax: 0.10.0
libtpu: 0.0.40
codegen_flags: <defaults>
</compile_context>

<pallas_src>
import functools

import jax
import jax.numpy as jnp
import numpy as np
from jax.experimental import pallas as pl
from jax.experimental.pallas import tpu as pltpu

_LN_EPS = 1e-5  # torch nn.LayerNorm default


# ----------------------------- in-kernel math -----------------------------

def _erf_approx(x):
    # Abramowitz-Stegun 7.1.26, |err| < 1.5e-7; only uses exp (always lowers).
    p = 0.3275911
    a1, a2, a3, a4, a5 = (0.254829592, -0.284496736, 1.421413741,
                          -1.453152027, 1.061405429)
    s = jnp.where(x >= 0.0, 1.0, -1.0)
    ax = jnp.abs(x)
    t = 1.0 / (1.0 + p * ax)
    poly = ((((a5 * t + a4) * t + a3) * t + a2) * t + a1) * t
    return s * (1.0 - poly * jnp.exp(-ax * ax))


def _gelu_exact(x):
    # torch nn.GELU (approximate='none'); lax.erf may not lower in Mosaic, so
    # use a 1.5e-7-accurate erf approximation (exp goes to the EUP slot).
    return 0.5 * x * (1.0 + _erf_approx(x * 0.7071067811865476))


def _layernorm(x, gamma, beta):
    # f32 statistics (biased variance, as torch); rsqrt lowers to EUP.
    mean = jnp.mean(x, axis=-1, keepdims=True)
    var = jnp.mean((x - mean) ** 2, axis=-1, keepdims=True)
    return (x - mean) * jax.lax.rsqrt(var + _LN_EPS) * gamma + beta


# ------------------------------ fused kernel -------------------------------

def _transformer_kernel(x_ref,
                        ln1_g, ln1_b, wq, wk, wv, wo, bo,
                        ln2_g, ln2_b, w1, b1, w2, b2,
                        lnf_g, lnf_b,
                        o_ref, *, depth, heads):
    """One grid step = one batch element through ALL layers + final LN.

    The residual stream `x` (N, D) stays in VMEM/vregs across layers.
    Weight refs are stacked over a leading depth axis; `w[l]` is a cheap
    leading-axis load of that layer's block.
    """
    x = x_ref[0].astype(jnp.float32)            # (N, D) residual stream, f32
    n, d = x.shape
    bf16 = jnp.bfloat16

    for l in range(depth):                      # static unroll over layers
        # ---------------- Attention (pre-norm) ----------------
        xn = _layernorm(x, ln1_g[l], ln1_b[l])              # f32 (N, D)
        xb = xn.astype(bf16)
        # Head-major batched projections: weights are (H, D, dh) with the
        # softmax scale already folded into Wq -> no lane slicing, no (N,N)
        # score rescale, one batched MXU stream per projection.
        xh = jnp.broadcast_to(xb, (heads, n, d))            # (H, N, D) bf16
        q = jnp.einsum('hnd,hdk->hnk', xh, wq[l],
                       preferred_element_type=jnp.float32)  # (H, N, dh)
        k = jnp.einsum('hnd,hdk->hnk', xh, wk[l],
                       preferred_element_type=jnp.float32)
        v = jnp.einsum('hnd,hdk->hnk', xh, wv[l],
                       preferred_element_type=jnp.float32)

        # Scores / softmax (f32, numerically-stable), bf16 MXU inputs.
        s = jnp.einsum('hnk,hmk->hnm', q.astype(bf16), k.astype(bf16),
                       preferred_element_type=jnp.float32)  # (H, N, N)
        s = s - jnp.max(s, axis=-1, keepdims=True)
        e = jnp.exp(s)
        p = e * pl.reciprocal(jnp.sum(e, axis=-1, keepdims=True), approx=True)

        o = jnp.einsum('hnm,hmk->hnk', p.astype(bf16), v.astype(bf16),
                       preferred_element_type=jnp.float32)  # (H, N, dh)
        # Output projection: single batched einsum against Wo (H, dh, D) plus
        # one head-axis sum (== concat(heads) @ Wo), instead of per-head dots
        # accumulated on the VPU.
        proj = jnp.einsum('hnk,hkd->hnd', o.astype(bf16), wo[l],
                          preferred_element_type=jnp.float32)  # (H, N, D)
        x = x + jnp.sum(proj, axis=0) + bo[l]                # residual (f32)

        # ---------------- FeedForward (pre-norm) ----------------
        xn = _layernorm(x, ln2_g[l], ln2_b[l])
        h = jnp.dot(xn.astype(bf16), w1[l],
                    preferred_element_type=jnp.float32) + b1[l]  # (N, mlp)
        h = _gelu_exact(h)
        y = jnp.dot(h.astype(bf16), w2[l],
                    preferred_element_type=jnp.float32) + b2[l]  # (N, D)
        x = x + y                                             # residual (f32)

    # final LayerNorm
    o_ref[0] = _layernorm(x, lnf_g[...], lnf_b[...]).astype(o_ref.dtype)


# ------------------------------ wrapper -------------------------------------

def transformer_pallas(x, kernel_params, *, depth, heads):
    b, n, d = x.shape

    def batch_spec():
        return pl.BlockSpec((1, n, d), lambda i: (i, 0, 0))

    def full_spec(w):
        return pl.BlockSpec(w.shape, lambda i, _nd=w.ndim: (0,) * _nd)

    kernel = functools.partial(_transformer_kernel, depth=depth, heads=heads)
    return pl.pallas_call(
        kernel,
        out_shape=jax.ShapeDtypeStruct((b, n, d), x.dtype),
        grid=(b,),
        in_specs=[batch_spec()] + [full_spec(w) for w in kernel_params],
        out_specs=batch_spec(),
        compiler_params=pltpu.CompilerParams(
            dimension_semantics=("parallel",),       # megacore: split batches
            vmem_limit_bytes=32 * 1024 * 1024),
    )(x, *kernel_params)


# ------------------------ parameters (deterministic) ------------------------

def init_params(key, dim, depth, heads, dim_head, mlp_dim):
    """Torch-layout f32 'master' weights (Linear stored as (in, out))."""
    inner = heads * dim_head
    layers = []
    for _ in range(depth):
        key, k0, k1, k2, k3, k4, k5, k6 = jax.random.split(key, 8)
        layers.append(dict(
            ln1_g=jnp.ones((dim,), jnp.float32),
            ln1_b=jnp.zeros((dim,), jnp.float32),
            wqkv=0.05 * jax.random.normal(k0, (dim, 3 * inner), jnp.float32),
            wo=0.05 * jax.random.normal(k1, (inner, dim), jnp.float32),
            bo=0.01 * jax.random.normal(k2, (dim,), jnp.float32),
            ln2_g=jnp.ones((dim,), jnp.float32),
            ln2_b=jnp.zeros((dim,), jnp.float32),
            w1=0.05 * jax.random.normal(k3, (dim, mlp_dim), jnp.float32),
            b1=0.01 * jax.random.normal(k4, (mlp_dim,), jnp.float32),
            w2=0.05 * jax.random.normal(k5, (mlp_dim, dim), jnp.float32),
            b2=0.01 * jax.random.normal(k6, (dim,), jnp.float32),
        ))
    final = dict(g=jnp.ones((dim,), jnp.float32),
                 b=jnp.zeros((dim,), jnp.float32))
    return layers, final


def to_kernel_params(layers, final, *, heads, dim_head):
    """Repack for the fused kernel:
       - stack all layers on a leading depth axis (single pallas_call),
       - split Wqkv into head-major (H, D, dh) Wq/Wk/Wv; fold 1/sqrt(dh) into Wq,
       - reshape Wo into (H, dh, D) so the output projection is one batched
         einsum + head-sum (no in-kernel lane slicing / concatenation),
       - cast matmul weights to bf16 (MXU-native); LN params & biases stay f32.
    """
    depth = len(layers)
    dim = layers[0]['wqkv'].shape[0]
    mlp = layers[0]['w1'].shape[1]
    inner = heads * dim_head
    scale = dim_head ** -0.5

    def stack(fn):
        return jnp.stack([fn(L) for L in layers], axis=0)

    def split_heads_in(w):            # (D, inner) -> (H, D, dh)
        return jnp.transpose(w.reshape(dim, heads, dim_head), (1, 0, 2))

    wq = stack(lambda L: split_heads_in(L['wqkv'][:, 0 * inner:1 * inner]) * scale)
    wk = stack(lambda L: split_heads_in(L['wqkv'][:, 1 * inner:2 * inner]))
    wv = stack(lambda L: split_heads_in(L['wqkv'][:, 2 * inner:3 * inner]))
    wo = stack(lambda L: L['wo'].reshape(heads, dim_head, dim))

    bf = lambda t: t.astype(jnp.bfloat16)
    return (
        stack(lambda L: L['ln1_g'].reshape(1, dim)),
        stack(lambda L: L['ln1_b'].reshape(1, dim)),
        bf(wq), bf(wk), bf(wv), bf(wo),
        stack(lambda L: L['bo'].reshape(1, dim)),
        stack(lambda L: L['ln2_g'].reshape(1, dim)),
        stack(lambda L: L['ln2_b'].reshape(1, dim)),
        bf(stack(lambda L: L['w1'])),
        stack(lambda L: L['b1'].reshape(1, mlp)),
        bf(stack(lambda L: L['w2'])),
        stack(lambda L: L['b2'].reshape(1, dim)),
        final['g'].reshape(1, dim),
        final['b'].reshape(1, dim),
    )


# --------------------------- pure-JAX reference ------------------------------
# Faithful f32 implementation of the torch module (unscaled Wqkv, dots*scale).

def _ref_ln(x, g, b):
    mean = jnp.mean(x, axis=-1, keepdims=True)
    var = jnp.mean((x - mean) ** 2, axis=-1, keepdims=True)
    return (x - mean) * jax.lax.rsqrt(var + _LN_EPS) * g + b


def transformer_ref(x, layers, final, *, heads, dim_head):
    scale = dim_head ** -0.5
    inner = heads * dim_head
    for L in layers:
        B, N, D = x.shape
        xn = _ref_ln(x, L['ln1_g'], L['ln1_b'])
        qkv = xn @ L['wqkv']
        q, k, v = jnp.split(qkv, 3, axis=-1)

        def to_heads(t):
            return jnp.transpose(t.reshape(B, N, heads, dim_head), (0, 2, 1, 3))

        q, k, v = to_heads(q), to_heads(k), to_heads(v)
        dots = jnp.einsum("bhnd,bhmd->bhnm", q, k) * scale
        attn = jax.nn.softmax(dots, axis=-1)
        out = jnp.einsum("bhnm,bhmd->bhnd", attn, v)
        out = jnp.transpose(out, (0, 2, 1, 3)).reshape(B, N, inner)
        x = out @ L['wo'] + L['bo'] + x
        h = _ref_ln(x, L['ln2_g'], L['ln2_b'])
        h = jax.nn.gelu(h @ L['w1'] + L['b1'], approximate=False)
        x = h @ L['w2'] + L['b2'] + x
    return _ref_ln(x, final['g'], final['b'])


# ----------------------------------- main ------------------------------------

if __name__ == "__main__":
    # Small but lane-dense / TPU-friendly toy sizes (dim_head=64 is the module
    # default); everything fits easily in VMEM for the fully fused kernel.
    dim, depth, heads, dim_head, mlp_dim = 128, 2, 4, 64, 256
    B, N = 2, 16

    key = jax.random.PRNGKey(0)
    key_x, key_p = jax.random.split(key)
    x = jax.random.normal(key_x, (B, N, dim), jnp.float32)

    layers, final = init_params(key_p, dim, depth, heads, dim_head, mlp_dim)
    kparams = to_kernel_params(layers, final, heads=heads, dim_head=dim_head)

    out = transformer_pallas(x, kparams, depth=depth, heads=heads)
    out = jax.block_until_ready(out)

    ref = transformer_ref(x, layers, final, heads=heads, dim_head=dim_head)
    # Kernel uses bf16 weights / bf16 matmul inputs with f32 accumulation,
    # so compare against the pure-f32 torch-semantics reference with a
    # bf16-appropriate tolerance.
    np.testing.assert_allclose(np.asarray(out), np.asarray(ref),
                               rtol=3e-2, atol=3e-2)

    print("KERNEL_OK")
</pallas_src>

<mosaic_0001>
module attributes {stable_mosaic.version = 11 : i64} {
  func.func @_transformer_kernel(%arg0: i32, %arg1: memref<1x16x128xf32, #tpu.memory_space<vmem>>, %arg2: memref<2x1x128xf32, #tpu.memory_space<vmem>>, %arg3: memref<2x1x128xf32, #tpu.memory_space<vmem>>, %arg4: memref<2x4x128x64xbf16, #tpu.memory_space<vmem>>, %arg5: memref<2x4x128x64xbf16, #tpu.memory_space<vmem>>, %arg6: memref<2x4x128x64xbf16, #tpu.memory_space<vmem>>, %arg7: memref<2x4x64x128xbf16, #tpu.memory_space<vmem>>, %arg8: memref<2x1x128xf32, #tpu.memory_space<vmem>>, %arg9: memref<2x1x128xf32, #tpu.memory_space<vmem>>, %arg10: memref<2x1x128xf32, #tpu.memory_space<vmem>>, %arg11: memref<2x128x256xbf16, #tpu.memory_space<vmem>>, %arg12: memref<2x1x256xf32, #tpu.memory_space<vmem>>, %arg13: memref<2x256x128xbf16, #tpu.memory_space<vmem>>, %arg14: memref<2x1x128xf32, #tpu.memory_space<vmem>>, %arg15: memref<1x128xf32, #tpu.memory_space<vmem>>, %arg16: memref<1x128xf32, #tpu.memory_space<vmem>>, %arg17: memref<1x16x128xf32, #tpu.memory_space<vmem>>) attributes {dimension_semantics = [#tpu.dimension_semantics<parallel>], iteration_bounds = array<i64: 2>, scalar_prefetch = 0 : i64, scratch_operands = 0 : i64, tpu.core_type = #tpu.core_type<tc>, window_params = [{transform_indices = @transform_0, window_bounds = array<i64: 1, 16, 128>}, {pipeline_mode = #tpu.pipeline_mode<synchronous>, transform_indices = @transform_1, window_bounds = array<i64: 2, 1, 128>}, {pipeline_mode = #tpu.pipeline_mode<synchronous>, transform_indices = @transform_2, window_bounds = array<i64: 2, 1, 128>}, {pipeline_mode = #tpu.pipeline_mode<synchronous>, transform_indices = @transform_3, window_bounds = array<i64: 2, 4, 128, 64>}, {pipeline_mode = #tpu.pipeline_mode<synchronous>, transform_indices = @transform_4, window_bounds = array<i64: 2, 4, 128, 64>}, {pipeline_mode = #tpu.pipeline_mode<synchronous>, transform_indices = @transform_5, window_bounds = array<i64: 2, 4, 128, 64>}, {pipeline_mode = #tpu.pipeline_mode<synchronous>, transform_indices = @transform_6, window_bounds = array<i64: 2, 4, 64, 128>}, {pipeline_mode = #tpu.pipeline_mode<synchronous>, transform_indices = @transform_7, window_bounds = array<i64: 2, 1, 128>}, {pipeline_mode = #tpu.pipeline_mode<synchronous>, transform_indices = @transform_8, window_bounds = array<i64: 2, 1, 128>}, {pipeline_mode = #tpu.pipeline_mode<synchronous>, transform_indices = @transform_9, window_bounds = array<i64: 2, 1, 128>}, {pipeline_mode = #tpu.pipeline_mode<synchronous>, transform_indices = @transform_10, window_bounds = array<i64: 2, 128, 256>}, {pipeline_mode = #tpu.pipeline_mode<synchronous>, transform_indices = @transform_11, window_bounds = array<i64: 2, 1, 256>}, {pipeline_mode = #tpu.pipeline_mode<synchronous>, transform_indices = @transform_12, window_bounds = array<i64: 2, 256, 128>}, {pipeline_mode = #tpu.pipeline_mode<synchronous>, transform_indices = @transform_13, window_bounds = array<i64: 2, 1, 128>}, {pipeline_mode = #tpu.pipeline_mode<synchronous>, transform_indices = @transform_14, window_bounds = array<i64: 1, 128>}, {pipeline_mode = #tpu.pipeline_mode<synchronous>, transform_indices = @transform_15, window_bounds = array<i64: 1, 128>}, {transform_indices = @transform_16, window_bounds = array<i64: 1, 16, 128>}]} {
    %c0 = arith.constant 0 : index
    %c0_0 = arith.constant 0 : index
    %c0_1 = arith.constant 0 : index
    %0 = vector.load %arg1[%c0, %c0_0, %c0_1] : memref<1x16x128xf32, #tpu.memory_space<vmem>>, vector<1x16x128xf32>
    %1 = vector.shape_cast %0 : vector<1x16x128xf32> to vector<16x128xf32>
    %c0_2 = arith.constant 0 : index
    %c0_3 = arith.constant 0 : index
    %c0_4 = arith.constant 0 : index
    %2 = vector.load %arg2[%c0_2, %c0_3, %c0_4] : memref<2x1x128xf32, #tpu.memory_space<vmem>>, vector<1x1x128xf32>
    %3 = vector.shape_cast %2 : vector<1x1x128xf32> to vector<1x128xf32>
    %c0_5 = arith.constant 0 : index
    %c0_6 = arith.constant 0 : index
    %c0_7 = arith.constant 0 : index
    %4 = vector.load %arg3[%c0_5, %c0_6, %c0_7] : memref<2x1x128xf32, #tpu.memory_space<vmem>>, vector<1x1x128xf32>
    %5 = vector.shape_cast %4 : vector<1x1x128xf32> to vector<1x128xf32>
    %cst = arith.constant dense<0.000000e+00> : vector<16xf32>
    %6 = vector.multi_reduction <add>, %1, %cst [1] : vector<16x128xf32> to vector<16xf32>
    %7 = vector.shape_cast %6 : vector<16xf32> to vector<16x1xf32>
    %cst_8 = arith.constant 1.280000e+02 : f32
    %8 = vector.broadcast %cst_8 : f32 to vector<16x1xf32>
    %9 = arith.divf %7, %8 : vector<16x1xf32>
    %10 = vector.broadcast %9 : vector<16x1xf32> to vector<16x128xf32>
    %11 = arith.subf %1, %10 : vector<16x128xf32>
    %12 = arith.mulf %11, %11 : vector<16x128xf32>
    %cst_9 = arith.constant dense<0.000000e+00> : vector<16xf32>
    %13 = vector.multi_reduction <add>, %12, %cst_9 [1] : vector<16x128xf32> to vector<16xf32>
    %14 = vector.shape_cast %13 : vector<16xf32> to vector<16x1xf32>
    %cst_10 = arith.constant 1.280000e+02 : f32
    %15 = vector.broadcast %cst_10 : f32 to vector<16x1xf32>
    %16 = arith.divf %14, %15 : vector<16x1xf32>
    %17 = vector.broadcast %9 : vector<16x1xf32> to vector<16x128xf32>
    %18 = arith.subf %1, %17 : vector<16x128xf32>
    %cst_11 = arith.constant 9.99999974E-6 : f32
    %19 = vector.broadcast %cst_11 : f32 to vector<16x1xf32>
    %20 = arith.addf %16, %19 : vector<16x1xf32>
    %21 = math.rsqrt %20 : vector<16x1xf32>
    %22 = vector.broadcast %21 : vector<16x1xf32> to vector<16x128xf32>
    %23 = arith.mulf %18, %22 : vector<16x128xf32>
    %24 = vector.broadcast %3 : vector<1x128xf32> to vector<16x128xf32>
    %25 = arith.mulf %23, %24 : vector<16x128xf32>
    %26 = vector.broadcast %5 : vector<1x128xf32> to vector<16x128xf32>
    %27 = arith.addf %25, %26 : vector<16x128xf32>
    %28 = arith.truncf %27 : vector<16x128xf32> to vector<16x128xbf16>
    %29 = vector.shape_cast %28 : vector<16x128xbf16> to vector<1x16x128xbf16>
    %30 = vector.broadcast %29 : vector<1x16x128xbf16> to vector<4x16x128xbf16>
    %c0_12 = arith.constant 0 : index
    %c0_13 = arith.constant 0 : index
    %c0_14 = arith.constant 0 : index
    %c0_15 = arith.constant 0 : index
    %31 = vector.load %arg4[%c0_12, %c0_13, %c0_14, %c0_15] : memref<2x4x128x64xbf16, #tpu.memory_space<vmem>>, vector<1x4x128x64xbf16>
    %32 = vector.shape_cast %31 : vector<1x4x128x64xbf16> to vector<4x128x64xbf16>
    "tpu.trace_start"() <{level = 10 : i32, message = "hnd,hdk->hnk"}> : () -> ()
    %cst_16 = arith.constant dense<0.000000e+00> : vector<4x16x64xf32>
    %33 = tpu.matmul %30, %32, %cst_16 {dimension_numbers = #tpu.dot_dimension_numbers<[2], [1], [1], [2], [0, 0, 0, 1, 1, 2], [0], [0]>} : vector<4x16x128xbf16>, vector<4x128x64xbf16>, vector<4x16x64xf32> -> vector<4x16x64xf32>
    "tpu.trace_stop"() : () -> ()
    %c0_17 = arith.constant 0 : index
    %c0_18 = arith.constant 0 : index
    %c0_19 = arith.constant 0 : index
    %c0_20 = arith.constant 0 : index
    %34 = vector.load %arg5[%c0_17, %c0_18, %c0_19, %c0_20] : memref<2x4x128x64xbf16, #tpu.memory_space<vmem>>, vector<1x4x128x64xbf16>
    %35 = vector.shape_cast %34 : vector<1x4x128x64xbf16> to vector<4x128x64xbf16>
    "tpu.trace_start"() <{level = 10 : i32, message = "hnd,hdk->hnk"}> : () -> ()
    %cst_21 = arith.constant dense<0.000000e+00> : vector<4x16x64xf32>
    %36 = tpu.matmul %30, %35, %cst_21 {dimension_numbers = #tpu.dot_dimension_numbers<[2], [1], [1], [2], [0, 0, 0, 1, 1, 2], [0], [0]>} : vector<4x16x128xbf16>, vector<4x128x64xbf16>, vector<4x16x64xf32> -> vector<4x16x64xf32>
    "tpu.trace_stop"() : () -> ()
    %c0_22 = arith.constant 0 : index
    %c0_23 = arith.constant 0 : index
    %c0_24 = arith.constant 0 : index
    %c0_25 = arith.constant 0 : index
    %37 = vector.load %arg6[%c0_22, %c0_23, %c0_24, %c0_25] : memref<2x4x128x64xbf16, #tpu.memory_space<vmem>>, vector<1x4x128x64xbf16>
    %38 = vector.shape_cast %37 : vector<1x4x128x64xbf16> to vector<4x128x64xbf16>
    "tpu.trace_start"() <{level = 10 : i32, message = "hnd,hdk->hnk"}> : () -> ()
    %cst_26 = arith.constant dense<0.000000e+00> : vector<4x16x64xf32>
    %39 = tpu.matmul %30, %38, %cst_26 {dimension_numbers = #tpu.dot_dimension_numbers<[2], [1], [1], [2], [0, 0, 0, 1, 1, 2], [0], [0]>} : vector<4x16x128xbf16>, vector<4x128x64xbf16>, vector<4x16x64xf32> -> vector<4x16x64xf32>
    "tpu.trace_stop"() : () -> ()
    %40 = arith.truncf %33 : vector<4x16x64xf32> to vector<4x16x64xbf16>
    %41 = arith.truncf %36 : vector<4x16x64xf32> to vector<4x16x64xbf16>
    "tpu.trace_start"() <{level = 10 : i32, message = "hnk,hmk->hnm"}> : () -> ()
    %cst_27 = arith.constant dense<0.000000e+00> : vector<4x16x16xf32>
    %42 = tpu.matmul %40, %41, %cst_27 {dimension_numbers = #tpu.dot_dimension_numbers<[2], [2], [1], [1], [0, 0, 0, 1, 1, 1], [0], [0]>} : vector<4x16x64xbf16>, vector<4x16x64xbf16>, vector<4x16x16xf32> -> vector<4x16x16xf32>
    "tpu.trace_stop"() : () -> ()
    %cst_28 = arith.constant dense<0xFF800000> : vector<4x16xf32>
    %43 = vector.multi_reduction <maximumf>, %42, %cst_28 [2] : vector<4x16x16xf32> to vector<4x16xf32>
    %44 = vector.shape_cast %43 : vector<4x16xf32> to vector<4x16x1xf32>
    %45 = vector.broadcast %44 : vector<4x16x1xf32> to vector<4x16x16xf32>
    %46 = arith.subf %42, %45 : vector<4x16x16xf32>
    %47 = math.exp %46 : vector<4x16x16xf32>
    %cst_29 = arith.constant dense<0.000000e+00> : vector<4x16xf32>
    %48 = vector.multi_reduction <add>, %47, %cst_29 [2] : vector<4x16x16xf32> to vector<4x16xf32>
    %49 = vector.shape_cast %48 : vector<4x16xf32> to vector<4x16x1xf32>
    %50 = tpu.reciprocal %49 {approx = true} : vector<4x16x1xf32> -> vector<4x16x1xf32>
    %51 = vector.broadcast %50 : vector<4x16x1xf32> to vector<4x16x16xf32>
    %52 = arith.mulf %47, %51 : vector<4x16x16xf32>
    %53 = arith.truncf %52 : vector<4x16x16xf32> to vector<4x16x16xbf16>
    %54 = arith.truncf %39 : vector<4x16x64xf32> to vector<4x16x64xbf16>
    "tpu.trace_start"() <{level = 10 : i32, message = "hnm,hmk->hnk"}> : () -> ()
    %cst_30 = arith.constant dense<0.000000e+00> : vector<4x16x64xf32>
    %55 = tpu.matmul %53, %54, %cst_30 {dimension_numbers = #tpu.dot_dimension_numbers<[2], [1], [1], [2], [0, 0, 0, 1, 1, 2], [0], [0]>} : vector<4x16x16xbf16>, vector<4x16x64xbf16>, vector<4x16x64xf32> -> vector<4x16x64xf32>
    "tpu.trace_stop"() : () -> ()
    %56 = arith.truncf %55 : vector<4x16x64xf32> to vector<4x16x64xbf16>
    %c0_31 = arith.constant 0 : index
    %c0_32 = arith.constant 0 : index
    %c0_33 = arith.constant 0 : index
    %c0_34 = arith.constant 0 : index
    %57 = vector.load %arg7[%c0_31, %c0_32, %c0_33, %c0_34] : memref<2x4x64x128xbf16, #tpu.memory_space<vmem>>, vector<1x4x64x128xbf16>
    %58 = vector.shape_cast %57 : vector<1x4x64x128xbf16> to vector<4x64x128xbf16>
    "tpu.trace_start"() <{level = 10 : i32, message = "hnk,hkd->hnd"}> : () -> ()
    %cst_35 = arith.constant dense<0.000000e+00> : vector<4x16x128xf32>
    %59 = tpu.matmul %56, %58, %cst_35 {dimension_numbers = #tpu.dot_dimension_numbers<[2], [1], [1], [2], [0, 0, 0, 1, 1, 2], [0], [0]>} : vector<4x16x64xbf16>, vector<4x64x128xbf16>, vector<4x16x128xf32> -> vector<4x16x128xf32>
    "tpu.trace_stop"() : () -> ()
    %cst_36 = arith.constant dense<0.000000e+00> : vector<16x128xf32>
    %60 = vector.multi_reduction <add>, %59, %cst_36 [0] : vector<4x16x128xf32> to vector<16x128xf32>
    %61 = arith.addf %1, %60 : vector<16x128xf32>
    %c0_37 = arith.constant 0 : index
    %c0_38 = arith.constant 0 : index
    %c0_39 = arith.constant 0 : index
    %62 = vector.load %arg8[%c0_37, %c0_38, %c0_39] : memref<2x1x128xf32, #tpu.memory_space<vmem>>, vector<1x1x128xf32>
    %63 = vector.shape_cast %62 : vector<1x1x128xf32> to vector<1x128xf32>
    %64 = vector.broadcast %63 : vector<1x128xf32> to vector<16x128xf32>
    %65 = arith.addf %61, %64 : vector<16x128xf32>
    %c0_40 = arith.constant 0 : index
    %c0_41 = arith.constant 0 : index
    %c0_42 = arith.constant 0 : index
    %66 = vector.load %arg9[%c0_40, %c0_41, %c0_42] : memref<2x1x128xf32, #tpu.memory_space<vmem>>, vector<1x1x128xf32>
    %67 = vector.shape_cast %66 : vector<1x1x128xf32> to vector<1x128xf32>
    %c0_43 = arith.constant 0 : index
    %c0_44 = arith.constant 0 : index
    %c0_45 = arith.constant 0 : index
    %68 = vector.load %arg10[%c0_43, %c0_44, %c0_45] : memref<2x1x128xf32, #tpu.memory_space<vmem>>, vector<1x1x128xf32>
    %69 = vector.shape_cast %68 : vector<1x1x128xf32> to vector<1x128xf32>
    %cst_46 = arith.constant dense<0.000000e+00> : vector<16xf32>
    %70 = vector.multi_reduction <add>, %65, %cst_46 [1] : vector<16x128xf32> to vector<16xf32>
    %71 = vector.shape_cast %70 : vector<16xf32> to vector<16x1xf32>
    %cst_47 = arith.constant 1.280000e+02 : f32
    %72 = vector.broadcast %cst_47 : f32 to vector<16x1xf32>
    %73 = arith.divf %71, %72 : vector<16x1xf32>
    %74 = vector.broadcast %73 : vector<16x1xf32> to vector<16x128xf32>
    %75 = arith.subf %65, %74 : vector<16x128xf32>
    %76 = arith.mulf %75, %75 : vector<16x128xf32>
    %cst_48 = arith.constant dense<0.000000e+00> : vector<16xf32>
    %77 = vector.multi_reduction <add>, %76, %cst_48 [1] : vector<16x128xf32> to vector<16xf32>
    %78 = vector.shape_cast %77 : vector<16xf32> to vector<16x1xf32>
    %cst_49 = arith.constant 1.280000e+02 : f32
    %79 = vector.broadcast %cst_49 : f32 to vector<16x1xf32>
    %80 = arith.divf %78, %79 : vector<16x1xf32>
    %81 = vector.broadcast %73 : vector<16x1xf32> to vector<16x128xf32>
    %82 = arith.subf %65, %81 : vector<16x128xf32>
    %cst_50 = arith.constant 9.99999974E-6 : f32
    %83 = vector.broadcast %cst_50 : f32 to vector<16x1xf32>
    %84 = arith.addf %80, %83 : vector<16x1xf32>
    %85 = math.rsqrt %84 : vector<16x1xf32>
    %86 = vector.broadcast %85 : vector<16x1xf32> to vector<16x128xf32>
    %87 = arith.mulf %82, %86 : vector<16x128xf32>
    %88 = vector.broadcast %67 : vector<1x128xf32> to vector<16x128xf32>
    %89 = arith.mulf %87, %88 : vector<16x128xf32>
    %90 = vector.broadcast %69 : vector<1x128xf32> to vector<16x128xf32>
    %91 = arith.addf %89, %90 : vector<16x128xf32>
    %92 = arith.truncf %91 : vector<16x128xf32> to vector<16x128xbf16>
    %c0_51 = arith.constant 0 : index
    %c0_52 = arith.constant 0 : index
    %c0_53 = arith.constant 0 : index
    %93 = vector.load %arg11[%c0_51, %c0_52, %c0_53] : memref<2x128x256xbf16, #tpu.memory_space<vmem>>, vector<1x128x256xbf16>
    %94 = vector.shape_cast %93 : vector<1x128x256xbf16> to vector<128x256xbf16>
    %cst_54 = arith.constant dense<0.000000e+00> : vector<16x256xf32>
    %95 = tpu.matmul %92, %94, %cst_54 {dimension_numbers = #tpu.dot_dimension_numbers<[1], [0], [0], [1], [0, 0, 1, 1], [], []>} : vector<16x128xbf16>, vector<128x256xbf16>, vector<16x256xf32> -> vector<16x256xf32>
    %c0_55 = arith.constant 0 : index
    %c0_56 = arith.constant 0 : index
    %c0_57 = arith.constant 0 : index
    %96 = vector.load %arg12[%c0_55, %c0_56, %c0_57] : memref<2x1x256xf32, #tpu.memory_space<vmem>>, vector<1x1x256xf32>
    %97 = vector.shape_cast %96 : vector<1x1x256xf32> to vector<1x256xf32>
    %98 = vector.broadcast %97 : vector<1x256xf32> to vector<16x256xf32>
    %99 = arith.addf %95, %98 : vector<16x256xf32>
    %cst_58 = arith.constant 5.000000e-01 : f32
    %100 = vector.broadcast %cst_58 : f32 to vector<16x256xf32>
    %101 = arith.mulf %100, %99 : vector<16x256xf32>
    %cst_59 = arith.constant 0.707106769 : f32
    %102 = vector.broadcast %cst_59 : f32 to vector<16x256xf32>
    %103 = arith.mulf %99, %102 : vector<16x256xf32>
    %cst_60 = arith.constant 0.000000e+00 : f32
    %104 = vector.broadcast %cst_60 : f32 to vector<16x256xf32>
    %105 = arith.cmpf oge, %103, %104 : vector<16x256xf32>
    %cst_61 = arith.constant 1.000000e+00 : f32
    %cst_62 = arith.constant -1.000000e+00 : f32
    %106 = vector.broadcast %cst_61 : f32 to vector<16x256xf32>
    %107 = vector.broadcast %cst_62 : f32 to vector<16x256xf32>
    %108 = arith.select %105, %106, %107 : vector<16x256xi1>, vector<16x256xf32>
    %109 = math.absf %103 : vector<16x256xf32>
    %cst_63 = arith.constant 0.327591091 : f32
    %110 = vector.broadcast %cst_63 : f32 to vector<16x256xf32>
    %111 = arith.mulf %110, %109 : vector<16x256xf32>
    %cst_64 = arith.constant 1.000000e+00 : f32
    %112 = vector.broadcast %cst_64 : f32 to vector<16x256xf32>
    %113 = arith.addf %112, %111 : vector<16x256xf32>
    %cst_65 = arith.constant 1.000000e+00 : f32
    %114 = vector.broadcast %cst_65 : f32 to vector<16x256xf32>
    %115 = arith.divf %114, %113 : vector<16x256xf32>
    %cst_66 = arith.constant 1.06140542 : f32
    %116 = vector.broadcast %cst_66 : f32 to vector<16x256xf32>
    %117 = arith.mulf %116, %115 : vector<16x256xf32>
    %cst_67 = arith.constant -1.45315206 : f32
    %118 = vector.broadcast %cst_67 : f32 to vector<16x256xf32>
    %119 = arith.addf %117, %118 : vector<16x256xf32>
    %120 = arith.mulf %119, %115 : vector<16x256xf32>
    %cst_68 = arith.constant 1.42141378 : f32
    %121 = vector.broadcast %cst_68 : f32 to vector<16x256xf32>
    %122 = arith.addf %120, %121 : vector<16x256xf32>
    %123 = arith.mulf %122, %115 : vector<16x256xf32>
    %cst_69 = arith.constant -0.284496725 : f32
    %124 = vector.broadcast %cst_69 : f32 to vector<16x256xf32>
    %125 = arith.addf %123, %124 : vector<16x256xf32>
    %126 = arith.mulf %125, %115 : vector<16x256xf32>
    %cst_70 = arith.constant 0.254829586 : f32
    %127 = vector.broadcast %cst_70 : f32 to vector<16x256xf32>
    %128 = arith.addf %126, %127 : vector<16x256xf32>
    %129 = arith.mulf %128, %115 : vector<16x256xf32>
    %cst_71 = arith.constant 0.000000e+00 : f32
    %130 = vector.broadcast %cst_71 : f32 to vector<16x256xf32>
    %131 = arith.subf %130, %109 : vector<16x256xf32>
    %132 = arith.mulf %131, %109 : vector<16x256xf32>
    %133 = math.exp %132 : vector<16x256xf32>
    %134 = arith.mulf %129, %133 : vector<16x256xf32>
    %cst_72 = arith.constant 1.000000e+00 : f32
    %135 = vector.broadcast %cst_72 : f32 to vector<16x256xf32>
    %136 = arith.subf %135, %134 : vector<16x256xf32>
    %137 = arith.mulf %108, %136 : vector<16x256xf32>
    %cst_73 = arith.constant 1.000000e+00 : f32
    %138 = vector.broadcast %cst_73 : f32 to vector<16x256xf32>
    %139 = arith.addf %138, %137 : vector<16x256xf32>
    %140 = arith.mulf %101, %139 : vector<16x256xf32>
    %141 = arith.truncf %140 : vector<16x256xf32> to vector<16x256xbf16>
    %c0_74 = arith.constant 0 : index
    %c0_75 = arith.constant 0 : index
    %c0_76 = arith.constant 0 : index
    %142 = vector.load %arg13[%c0_74, %c0_75, %c0_76] : memref<2x256x128xbf16, #tpu.memory_space<vmem>>, vector<1x256x128xbf16>
    %143 = vector.shape_cast %142 : vector<1x256x128xbf16> to vector<256x128xbf16>
    %cst_77 = arith.constant dense<0.000000e+00> : vector<16x128xf32>
    %144 = tpu.matmul %141, %143, %cst_77 {dimension_numbers = #tpu.dot_dimension_numbers<[1], [0], [0], [1], [0, 0, 1, 1], [], []>} : vector<16x256xbf16>, vector<256x128xbf16>, vector<16x128xf32> -> vector<16x128xf32>
    %c0_78 = arith.constant 0 : index
    %c0_79 = arith.constant 0 : index
    %c0_80 = arith.constant 0 : index
    %145 = vector.load %arg14[%c0_78, %c0_79, %c0_80] : memref<2x1x128xf32, #tpu.memory_space<vmem>>, vector<1x1x128xf32>
    %146 = vector.shape_cast %145 : vector<1x1x128xf32> to vector<1x128xf32>
    %147 = vector.broadcast %146 : vector<1x128xf32> to vector<16x128xf32>
    %148 = arith.addf %144, %147 : vector<16x128xf32>
    %149 = arith.addf %65, %148 : vector<16x128xf32>
    %c1 = arith.constant 1 : index
    %c0_81 = arith.constant 0 : index
    %c0_82 = arith.constant 0 : index
    %150 = vector.load %arg2[%c1, %c0_81, %c0_82] : memref<2x1x128xf32, #tpu.memory_space<vmem>>, vector<1x1x128xf32>
    %151 = vector.shape_cast %150 : vector<1x1x128xf32> to vector<1x128xf32>
    %c1_83 = arith.constant 1 : index
    %c0_84 = arith.constant 0 : index
    %c0_85 = arith.constant 0 : index
    %152 = vector.load %arg3[%c1_83, %c0_84, %c0_85] : memref<2x1x128xf32, #tpu.memory_space<vmem>>, vector<1x1x128xf32>
    %153 = vector.shape_cast %152 : vector<1x1x128xf32> to vector<1x128xf32>
    %cst_86 = arith.constant dense<0.000000e+00> : vector<16xf32>
    %154 = vector.multi_reduction <add>, %149, %cst_86 [1] : vector<16x128xf32> to vector<16xf32>
    %155 = vector.shape_cast %154 : vector<16xf32> to vector<16x1xf32>
    %cst_87 = arith.constant 1.280000e+02 : f32
    %156 = vector.broadcast %cst_87 : f32 to vector<16x1xf32>
    %157 = arith.divf %155, %156 : vector<16x1xf32>
    %158 = vector.broadcast %157 : vector<16x1xf32> to vector<16x128xf32>
    %159 = arith.subf %149, %158 : vector<16x128xf32>
    %160 = arith.mulf %159, %159 : vector<16x128xf32>
    %cst_88 = arith.constant dense<0.000000e+00> : vector<16xf32>
    %161 = vector.multi_reduction <add>, %160, %cst_88 [1] : vector<16x128xf32> to vector<16xf32>
    %162 = vector.shape_cast %161 : vector<16xf32> to vector<16x1xf32>
    %cst_89 = arith.constant 1.280000e+02 : f32
    %163 = vector.broadcast %cst_89 : f32 to vector<16x1xf32>
    %164 = arith.divf %162, %163 : vector<16x1xf32>
    %165 = vector.broadcast %157 : vector<16x1xf32> to vector<16x128xf32>
    %166 = arith.subf %149, %165 : vector<16x128xf32>
    %cst_90 = arith.constant 9.99999974E-6 : f32
    %167 = vector.broadcast %cst_90 : f32 to vector<16x1xf32>
    %168 = arith.addf %164, %167 : vector<16x1xf32>
    %169 = math.rsqrt %168 : vector<16x1xf32>
    %170 = vector.broadcast %169 : vector<16x1xf32> to vector<16x128xf32>
    %171 = arith.mulf %166, %170 : vector<16x128xf32>
    %172 = vector.broadcast %151 : vector<1x128xf32> to vector<16x128xf32>
    %173 = arith.mulf %171, %172 : vector<16x128xf32>
    %174 = vector.broadcast %153 : vector<1x128xf32> to vector<16x128xf32>
    %175 = arith.addf %173, %174 : vector<16x128xf32>
    %176 = arith.truncf %175 : vector<16x128xf32> to vector<16x128xbf16>
    %177 = vector.shape_cast %176 : vector<16x128xbf16> to vector<1x16x128xbf16>
    %178 = vector.broadcast %177 : vector<1x16x128xbf16> to vector<4x16x128xbf16>
    %c1_91 = arith.constant 1 : index
    %c0_92 = arith.constant 0 : index
    %c0_93 = arith.constant 0 : index
    %c0_94 = arith.constant 0 : index
    %179 = vector.load %arg4[%c1_91, %c0_92, %c0_93, %c0_94] : memref<2x4x128x64xbf16, #tpu.memory_space<vmem>>, vector<1x4x128x64xbf16>
    %180 = vector.shape_cast %179 : vector<1x4x128x64xbf16> to vector<4x128x64xbf16>
    "tpu.trace_start"() <{level = 10 : i32, message = "hnd,hdk->hnk"}> : () -> ()
    %cst_95 = arith.constant dense<0.000000e+00> : vector<4x16x64xf32>
    %181 = tpu.matmul %178, %180, %cst_95 {dimension_numbers = #tpu.dot_dimension_numbers<[2], [1], [1], [2], [0, 0, 0, 1, 1, 2], [0], [0]>} : vector<4x16x128xbf16>, vector<4x128x64xbf16>, vector<4x16x64xf32> -> vector<4x16x64xf32>
    "tpu.trace_stop"() : () -> ()
    %c1_96 = arith.constant 1 : index
    %c0_97 = arith.constant 0 : index
    %c0_98 = arith.constant 0 : index
    %c0_99 = arith.constant 0 : index
    %182 = vector.load %arg5[%c1_96, %c0_97, %c0_98, %c0_99] : memref<2x4x128x64xbf16, #tpu.memory_space<vmem>>, vector<1x4x128x64xbf16>
    %183 = vector.shape_cast %182 : vector<1x4x128x64xbf16> to vector<4x128x64xbf16>
    "tpu.trace_start"() <{level = 10 : i32, message = "hnd,hdk->hnk"}> : () -> ()
    %cst_100 = arith.constant dense<0.000000e+00> : vector<4x16x64xf32>
    %184 = tpu.matmul %178, %183, %cst_100 {dimension_numbers = #tpu.dot_dimension_numbers<[2], [1], [1], [2], [0, 0, 0, 1, 1, 2], [0], [0]>} : vector<4x16x128xbf16>, vector<4x128x64xbf16>, vector<4x16x64xf32> -> vector<4x16x64xf32>
    "tpu.trace_stop"() : () -> ()
    %c1_101 = arith.constant 1 : index
    %c0_102 = arith.constant 0 : index
    %c0_103 = arith.constant 0 : index
    %c0_104 = arith.constant 0 : index
    %185 = vector.load %arg6[%c1_101, %c0_102, %c0_103, %c0_104] : memref<2x4x128x64xbf16, #tpu.memory_space<vmem>>, vector<1x4x128x64xbf16>
    %186 = vector.shape_cast %185 : vector<1x4x128x64xbf16> to vector<4x128x64xbf16>
    "tpu.trace_start"() <{level = 10 : i32, message = "hnd,hdk->hnk"}> : () -> ()
    %cst_105 = arith.constant dense<0.000000e+00> : vector<4x16x64xf32>
    %187 = tpu.matmul %178, %186, %cst_105 {dimension_numbers = #tpu.dot_dimension_numbers<[2], [1], [1], [2], [0, 0, 0, 1, 1, 2], [0], [0]>} : vector<4x16x128xbf16>, vector<4x128x64xbf16>, vector<4x16x64xf32> -> vector<4x16x64xf32>
    "tpu.trace_stop"() : () -> ()
    %188 = arith.truncf %181 : vector<4x16x64xf32> to vector<4x16x64xbf16>
    %189 = arith.truncf %184 : vector<4x16x64xf32> to vector<4x16x64xbf16>
    "tpu.trace_start"() <{level = 10 : i32, message = "hnk,hmk->hnm"}> : () -> ()
    %cst_106 = arith.constant dense<0.000000e+00> : vector<4x16x16xf32>
    %190 = tpu.matmul %188, %189, %cst_106 {dimension_numbers = #tpu.dot_dimension_numbers<[2], [2], [1], [1], [0, 0, 0, 1, 1, 1], [0], [0]>} : vector<4x16x64xbf16>, vector<4x16x64xbf16>, vector<4x16x16xf32> -> vector<4x16x16xf32>
    "tpu.trace_stop"() : () -> ()
    %cst_107 = arith.constant dense<0xFF800000> : vector<4x16xf32>
    %191 = vector.multi_reduction <maximumf>, %190, %cst_107 [2] : vector<4x16x16xf32> to vector<4x16xf32>
    %192 = vector.shape_cast %191 : vector<4x16xf32> to vector<4x16x1xf32>
    %193 = vector.broadcast %192 : vector<4x16x1xf32> to vector<4x16x16xf32>
    %194 = arith.subf %190, %193 : vector<4x16x16xf32>
    %195 = math.exp %194 : vector<4x16x16xf32>
    %cst_108 = arith.constant dense<0.000000e+00> : vector<4x16xf32>
    %196 = vector.multi_reduction <add>, %195, %cst_108 [2] : vector<4x16x16xf32> to vector<4x16xf32>
    %197 = vector.shape_cast %196 : vector<4x16xf32> to vector<4x16x1xf32>
    %198 = tpu.reciprocal %197 {approx = true} : vector<4x16x1xf32> -> vector<4x16x1xf32>
    %199 = vector.broadcast %198 : vector<4x16x1xf32> to vector<4x16x16xf32>
    %200 = arith.mulf %195, %199 : vector<4x16x16xf32>
    %201 = arith.truncf %200 : vector<4x16x16xf32> to vector<4x16x16xbf16>
    %202 = arith.truncf %187 : vector<4x16x64xf32> to vector<4x16x64xbf16>
    "tpu.trace_start"() <{level = 10 : i32, message = "hnm,hmk->hnk"}> : () -> ()
    %cst_109 = arith.constant dense<0.000000e+00> : vector<4x16x64xf32>
    %203 = tpu.matmul %201, %202, %cst_109 {dimension_numbers = #tpu.dot_dimension_numbers<[2], [1], [1], [2], [0, 0, 0, 1, 1, 2], [0], [0]>} : vector<4x16x16xbf16>, vector<4x16x64xbf16>, vector<4x16x64xf32> -> vector<4x16x64xf32>
    "tpu.trace_stop"() : () -> ()
    %204 = arith.truncf %203 : vector<4x16x64xf32> to vector<4x16x64xbf16>
    %c1_110 = arith.constant 1 : index
    %c0_111 = arith.constant 0 : index
    %c0_112 = arith.constant 0 : index
    %c0_113 = arith.constant 0 : index
    %205 = vector.load %arg7[%c1_110, %c0_111, %c0_112, %c0_113] : memref<2x4x64x128xbf16, #tpu.memory_space<vmem>>, vector<1x4x64x128xbf16>
    %206 = vector.shape_cast %205 : vector<1x4x64x128xbf16> to vector<4x64x128xbf16>
    "tpu.trace_start"() <{level = 10 : i32, message = "hnk,hkd->hnd"}> : () -> ()
    %cst_114 = arith.constant dense<0.000000e+00> : vector<4x16x128xf32>
    %207 = tpu.matmul %204, %206, %cst_114 {dimension_numbers = #tpu.dot_dimension_numbers<[2], [1], [1], [2], [0, 0, 0, 1, 1, 2], [0], [0]>} : vector<4x16x64xbf16>, vector<4x64x128xbf16>, vector<4x16x128xf32> -> vector<4x16x128xf32>
    "tpu.trace_stop"() : () -> ()
    %cst_115 = arith.constant dense<0.000000e+00> : vector<16x128xf32>
    %208 = vector.multi_reduction <add>, %207, %cst_115 [0] : vector<4x16x128xf32> to vector<16x128xf32>
    %209 = arith.addf %149, %208 : vector<16x128xf32>
    %c1_116 = arith.constant 1 : index
    %c0_117 = arith.constant 0 : index
    %c0_118 = arith.constant 0 : index
    %210 = vector.load %arg8[%c1_116, %c0_117, %c0_118] : memref<2x1x128xf32, #tpu.memory_space<vmem>>, vector<1x1x128xf32>
    %211 = vector.shape_cast %210 : vector<1x1x128xf32> to vector<1x128xf32>
    %212 = vector.broadcast %211 : vector<1x128xf32> to vector<16x128xf32>
    %213 = arith.addf %209, %212 : vector<16x128xf32>
    %c1_119 = arith.constant 1 : index
    %c0_120 = arith.constant 0 : index
    %c0_121 = arith.constant 0 : index
    %214 = vector.load %arg9[%c1_119, %c0_120, %c0_121] : memref<2x1x128xf32, #tpu.memory_space<vmem>>, vector<1x1x128xf32>
    %215 = vector.shape_cast %214 : vector<1x1x128xf32> to vector<1x128xf32>
    %c1_122 = arith.constant 1 : index
    %c0_123 = arith.constant 0 : index
    %c0_124 = arith.constant 0 : index
    %216 = vector.load %arg10[%c1_122, %c0_123, %c0_124] : memref<2x1x128xf32, #tpu.memory_space<vmem>>, vector<1x1x128xf32>
    %217 = vector.shape_cast %216 : vector<1x1x128xf32> to vector<1x128xf32>
    %cst_125 = arith.constant dense<0.000000e+00> : vector<16xf32>
    %218 = vector.multi_reduction <add>, %213, %cst_125 [1] : vector<16x128xf32> to vector<16xf32>
    %219 = vector.shape_cast %218 : vector<16xf32> to vector<16x1xf32>
    %cst_126 = arith.constant 1.280000e+02 : f32
    %220 = vector.broadcast %cst_126 : f32 to vector<16x1xf32>
    %221 = arith.divf %219, %220 : vector<16x1xf32>
    %222 = vector.broadcast %221 : vector<16x1xf32> to vector<16x128xf32>
    %223 = arith.subf %213, %222 : vector<16x128xf32>
    %224 = arith.mulf %223, %223 : vector<16x128xf32>
    %cst_127 = arith.constant dense<0.000000e+00> : vector<16xf32>
    %225 = vector.multi_reduction <add>, %224, %cst_127 [1] : vector<16x128xf32> to vector<16xf32>
    %226 = vector.shape_cast %225 : vector<16xf32> to vector<16x1xf32>
    %cst_128 = arith.constant 1.280000e+02 : f32
    %227 = vector.broadcast %cst_128 : f32 to vector<16x1xf32>
    %228 = arith.divf %226, %227 : vector<16x1xf32>
    %229 = vector.broadcast %221 : vector<16x1xf32> to vector<16x128xf32>
    %230 = arith.subf %213, %229 : vector<16x128xf32>
    %cst_129 = arith.constant 9.99999974E-6 : f32
    %231 = vector.broadcast %cst_129 : f32 to vector<16x1xf32>
    %232 = arith.addf %228, %231 : vector<16x1xf32>
    %233 = math.rsqrt %232 : vector<16x1xf32>
    %234 = vector.broadcast %233 : vector<16x1xf32> to vector<16x128xf32>
    %235 = arith.mulf %230, %234 : vector<16x128xf32>
    %236 = vector.broadcast %215 : vector<1x128xf32> to vector<16x128xf32>
    %237 = arith.mulf %235, %236 : vector<16x128xf32>
    %238 = vector.broadcast %217 : vector<1x128xf32> to vector<16x128xf32>
    %239 = arith.addf %237, %238 : vector<16x128xf32>
    %240 = arith.truncf %239 : vector<16x128xf32> to vector<16x128xbf16>
    %c1_130 = arith.constant 1 : index
    %c0_131 = arith.constant 0 : index
    %c0_132 = arith.constant 0 : index
    %241 = vector.load %arg11[%c1_130, %c0_131, %c0_132] : memref<2x128x256xbf16, #tpu.memory_space<vmem>>, vector<1x128x256xbf16>
    %242 = vector.shape_cast %241 : vector<1x128x256xbf16> to vector<128x256xbf16>
    %cst_133 = arith.constant dense<0.000000e+00> : vector<16x256xf32>
    %243 = tpu.matmul %240, %242, %cst_133 {dimension_numbers = #tpu.dot_dimension_numbers<[1], [0], [0], [1], [0, 0, 1, 1], [], []>} : vector<16x128xbf16>, vector<128x256xbf16>, vector<16x256xf32> -> vector<16x256xf32>
    %c1_134 = arith.constant 1 : index
    %c0_135 = arith.constant 0 : index
    %c0_136 = arith.constant 0 : index
    %244 = vector.load %arg12[%c1_134, %c0_135, %c0_136] : memref<2x1x256xf32, #tpu.memory_space<vmem>>, vector<1x1x256xf32>
    %245 = vector.shape_cast %244 : vector<1x1x256xf32> to vector<1x256xf32>
    %246 = vector.broadcast %245 : vector<1x256xf32> to vector<16x256xf32>
    %247 = arith.addf %243, %246 : vector<16x256xf32>
    %cst_137 = arith.constant 5.000000e-01 : f32
    %248 = vector.broadcast %cst_137 : f32 to vector<16x256xf32>
    %249 = arith.mulf %248, %247 : vector<16x256xf32>
    %cst_138 = arith.constant 0.707106769 : f32
    %250 = vector.broadcast %cst_138 : f32 to vector<16x256xf32>
    %251 = arith.mulf %247, %250 : vector<16x256xf32>
    %cst_139 = arith.constant 0.000000e+00 : f32
    %252 = vector.broadcast %cst_139 : f32 to vector<16x256xf32>
    %253 = arith.cmpf oge, %251, %252 : vector<16x256xf32>
    %cst_140 = arith.constant 1.000000e+00 : f32
    %cst_141 = arith.constant -1.000000e+00 : f32
    %254 = vector.broadcast %cst_140 : f32 to vector<16x256xf32>
    %255 = vector.broadcast %cst_141 : f32 to vector<16x256xf32>
    %256 = arith.select %253, %254, %255 : vector<16x256xi1>, vector<16x256xf32>
    %257 = math.absf %251 : vector<16x256xf32>
    %cst_142 = arith.constant 0.327591091 : f32
    %258 = vector.broadcast %cst_142 : f32 to vector<16x256xf32>
    %259 = arith.mulf %258, %257 : vector<16x256xf32>
    %cst_143 = arith.constant 1.000000e+00 : f32
    %260 = vector.broadcast %cst_143 : f32 to vector<16x256xf32>
    %261 = arith.addf %260, %259 : vector<16x256xf32>
    %cst_144 = arith.constant 1.000000e+00 : f32
    %262 = vector.broadcast %cst_144 : f32 to vector<16x256xf32>
    %263 = arith.divf %262, %261 : vector<16x256xf32>
    %cst_145 = arith.constant 1.06140542 : f32
    %264 = vector.broadcast %cst_145 : f32 to vector<16x256xf32>
    %265 = arith.mulf %264, %263 : vector<16x256xf32>
    %cst_146 = arith.constant -1.45315206 : f32
    %266 = vector.broadcast %cst_146 : f32 to vector<16x256xf32>
    %267 = arith.addf %265, %266 : vector<16x256xf32>
    %268 = arith.mulf %267, %263 : vector<16x256xf32>
    %cst_147 = arith.constant 1.42141378 : f32
    %269 = vector.broadcast %cst_147 : f32 to vector<16x256xf32>
    %270 = arith.addf %268, %269 : vector<16x256xf32>
    %271 = arith.mulf %270, %263 : vector<16x256xf32>
    %cst_148 = arith.constant -0.284496725 : f32
    %272 = vector.broadcast %cst_148 : f32 to vector<16x256xf32>
    %273 = arith.addf %271, %272 : vector<16x256xf32>
    %274 = arith.mulf %273, %263 : vector<16x256xf32>
    %cst_149 = arith.constant 0.254829586 : f32
    %275 = vector.broadcast %cst_149 : f32 to vector<16x256xf32>
    %276 = arith.addf %274, %275 : vector<16x256xf32>
    %277 = arith.mulf %276, %263 : vector<16x256xf32>
    %cst_150 = arith.constant 0.000000e+00 : f32
    %278 = vector.broadcast %cst_150 : f32 to vector<16x256xf32>
    %279 = arith.subf %278, %257 : vector<16x256xf32>
    %280 = arith.mulf %279, %257 : vector<16x256xf32>
    %281 = math.exp %280 : vector<16x256xf32>
    %282 = arith.mulf %277, %281 : vector<16x256xf32>
    %cst_151 = arith.constant 1.000000e+00 : f32
    %283 = vector.broadcast %cst_151 : f32 to vector<16x256xf32>
    %284 = arith.subf %283, %282 : vector<16x256xf32>
    %285 = arith.mulf %256, %284 : vector<16x256xf32>
    %cst_152 = arith.constant 1.000000e+00 : f32
    %286 = vector.broadcast %cst_152 : f32 to vector<16x256xf32>
    %287 = arith.addf %286, %285 : vector<16x256xf32>
    %288 = arith.mulf %249, %287 : vector<16x256xf32>
    %289 = arith.truncf %288 : vector<16x256xf32> to vector<16x256xbf16>
    %c1_153 = arith.constant 1 : index
    %c0_154 = arith.constant 0 : index
    %c0_155 = arith.constant 0 : index
    %290 = vector.load %arg13[%c1_153, %c0_154, %c0_155] : memref<2x256x128xbf16, #tpu.memory_space<vmem>>, vector<1x256x128xbf16>
    %291 = vector.shape_cast %290 : vector<1x256x128xbf16> to vector<256x128xbf16>
    %cst_156 = arith.constant dense<0.000000e+00> : vector<16x128xf32>
    %292 = tpu.matmul %289, %291, %cst_156 {dimension_numbers = #tpu.dot_dimension_numbers<[1], [0], [0], [1], [0, 0, 1, 1], [], []>} : vector<16x256xbf16>, vector<256x128xbf16>, vector<16x128xf32> -> vector<16x128xf32>
    %c1_157 = arith.constant 1 : index
    %c0_158 = arith.constant 0 : index
    %c0_159 = arith.constant 0 : index
    %293 = vector.load %arg14[%c1_157, %c0_158, %c0_159] : memref<2x1x128xf32, #tpu.memory_space<vmem>>, vector<1x1x128xf32>
    %294 = vector.shape_cast %293 : vector<1x1x128xf32> to vector<1x128xf32>
    %295 = vector.broadcast %294 : vector<1x128xf32> to vector<16x128xf32>
    %296 = arith.addf %292, %295 : vector<16x128xf32>
    %297 = arith.addf %213, %296 : vector<16x128xf32>
    %c0_160 = arith.constant 0 : index
    %c0_161 = arith.constant 0 : index
    %298 = vector.load %arg15[%c0_160, %c0_161] : memref<1x128xf32, #tpu.memory_space<vmem>>, vector<1x128xf32>
    %c0_162 = arith.constant 0 : index
    %c0_163 = arith.constant 0 : index
    %299 = vector.load %arg16[%c0_162, %c0_163] : memref<1x128xf32, #tpu.memory_space<vmem>>, vector<1x128xf32>
    %cst_164 = arith.constant dense<0.000000e+00> : vector<16xf32>
    %300 = vector.multi_reduction <add>, %297, %cst_164 [1] : vector<16x128xf32> to vector<16xf32>
    %301 = vector.shape_cast %300 : vector<16xf32> to vector<16x1xf32>
    %cst_165 = arith.constant 1.280000e+02 : f32
    %302 = vector.broadcast %cst_165 : f32 to vector<16x1xf32>
    %303 = arith.divf %301, %302 : vector<16x1xf32>
    %304 = vector.broadcast %303 : vector<16x1xf32> to vector<16x128xf32>
    %305 = arith.subf %297, %304 : vector<16x128xf32>
    %306 = arith.mulf %305, %305 : vector<16x128xf32>
    %cst_166 = arith.constant dense<0.000000e+00> : vector<16xf32>
    %307 = vector.multi_reduction <add>, %306, %cst_166 [1] : vector<16x128xf32> to vector<16xf32>
    %308 = vector.shape_cast %307 : vector<16xf32> to vector<16x1xf32>
    %cst_167 = arith.constant 1.280000e+02 : f32
    %309 = vector.broadcast %cst_167 : f32 to vector<16x1xf32>
    %310 = arith.divf %308, %309 : vector<16x1xf32>
    %311 = vector.broadcast %303 : vector<16x1xf32> to vector<16x128xf32>
    %312 = arith.subf %297, %311 : vector<16x128xf32>
    %cst_168 = arith.constant 9.99999974E-6 : f32
    %313 = vector.broadcast %cst_168 : f32 to vector<16x1xf32>
    %314 = arith.addf %310, %313 : vector<16x1xf32>
    %315 = math.rsqrt %314 : vector<16x1xf32>
    %316 = vector.broadcast %315 : vector<16x1xf32> to vector<16x128xf32>
    %317 = arith.mulf %312, %316 : vector<16x128xf32>
    %318 = vector.broadcast %298 : vector<1x128xf32> to vector<16x128xf32>
    %319 = arith.mulf %317, %318 : vector<16x128xf32>
    %320 = vector.broadcast %299 : vector<1x128xf32> to vector<16x128xf32>
    %321 = arith.addf %319, %320 : vector<16x128xf32>
    %c0_169 = arith.constant 0 : index
    %c0_170 = arith.constant 0 : index
    %c0_171 = arith.constant 0 : index
    %322 = vector.load %arg17[%c0_169, %c0_170, %c0_171] : memref<1x16x128xf32, #tpu.memory_space<vmem>>, vector<1x16x128xf32>
    %323 = vector.shape_cast %322 : vector<1x16x128xf32> to vector<16x128xf32>
    %324 = vector.shape_cast %321 : vector<16x128xf32> to vector<1x16x128xf32>
    tpu.vector_store %arg17[%c0_169, %c0_170, %c0_171], %324 {strides = array<i32>} : memref<1x16x128xf32, #tpu.memory_space<vmem>>, vector<1x16x128xf32>,
    return
  }
  func.func @transform_0(%arg0: i32) -> (i32, i32, i32) {
    %c0_i32 = arith.constant 0 : i32
    %c0_i32_0 = arith.constant 0 : i32
    %c0_i32_1 = arith.constant 0 : i32
    return %arg0, %c0_i32, %c0_i32_0 : i32, i32, i32
  }
  func.func @transform_1(%arg0: i32) -> (i32, i32, i32) {
    %c0_i32 = arith.constant 0 : i32
    %c0_i32_0 = arith.constant 0 : i32
    %c0_i32_1 = arith.constant 0 : i32
    %c0_i32_2 = arith.constant 0 : i32
    return %c0_i32, %c0_i32_0, %c0_i32_1 : i32, i32, i32
  }
  func.func @transform_2(%arg0: i32) -> (i32, i32, i32) {
    %c0_i32 = arith.constant 0 : i32
    %c0_i32_0 = arith.constant 0 : i32
    %c0_i32_1 = arith.constant 0 : i32
    %c0_i32_2 = arith.constant 0 : i32
    return %c0_i32, %c0_i32_0, %c0_i32_1 : i32, i32, i32
  }
  func.func @transform_3(%arg0: i32) -> (i32, i32, i32, i32) {
    %c0_i32 = arith.constant 0 : i32
    %c0_i32_0 = arith.constant 0 : i32
    %c0_i32_1 = arith.constant 0 : i32
    %c0_i32_2 = arith.constant 0 : i32
    %c0_i32_3 = arith.constant 0 : i32
    return %c0_i32, %c0_i32_0, %c0_i32_1, %c0_i32_2 : i32, i32, i32, i32
  }
  func.func @transform_4(%arg0: i32) -> (i32, i32, i32, i32) {
    %c0_i32 = arith.constant 0 : i32
    %c0_i32_0 = arith.constant 0 : i32
    %c0_i32_1 = arith.constant 0 : i32
    %c0_i32_2 = arith.constant 0 : i32
    %c0_i32_3 = arith.constant 0 : i32
    return %c0_i32, %c0_i32_0, %c0_i32_1, %c0_i32_2 : i32, i32, i32, i32
  }
  func.func @transform_5(%arg0: i32) -> (i32, i32, i32, i32) {
    %c0_i32 = arith.constant 0 : i32
    %c0_i32_0 = arith.constant 0 : i32
    %c0_i32_1 = arith.constant 0 : i32
    %c0_i32_2 = arith.constant 0 : i32
    %c0_i32_3 = arith.constant 0 : i32
    return %c0_i32, %c0_i32_0, %c0_i32_1, %c0_i32_2 : i32, i32, i32, i32
  }
  func.func @transform_6(%arg0: i32) -> (i32, i32, i32, i32) {
    %c0_i32 = arith.constant 0 : i32
    %c0_i32_0 = arith.constant 0 : i32
    %c0_i32_1 = arith.constant 0 : i32
    %c0_i32_2 = arith.constant 0 : i32
    %c0_i32_3 = arith.constant 0 : i32
    return %c0_i32, %c0_i32_0, %c0_i32_1, %c0_i32_2 : i32, i32, i32, i32
  }
  func.func @transform_7(%arg0: i32) -> (i32, i32, i32) {
    %c0_i32 = arith.constant 0 : i32
    %c0_i32_0 = arith.constant 0 : i32
    %c0_i32_1 = arith.constant 0 : i32
    %c0_i32_2 = arith.constant 0 : i32
    return %c0_i32, %c0_i32_0, %c0_i32_1 : i32, i32, i32
  }
  func.func @transform_8(%arg0: i32) -> (i32, i32, i32) {
    %c0_i32 = arith.constant 0 : i32
    %c0_i32_0 = arith.constant 0 : i32
    %c0_i32_1 = arith.constant 0 : i32
    %c0_i32_2 = arith.constant 0 : i32
    return %c0_i32, %c0_i32_0, %c0_i32_1 : i32, i32, i32
  }
  func.func @transform_9(%arg0: i32) -> (i32, i32, i32) {
    %c0_i32 = arith.constant 0 : i32
    %c0_i32_0 = arith.constant 0 : i32
    %c0_i32_1 = arith.constant 0 : i32
    %c0_i32_2 = arith.constant 0 : i32
    return %c0_i32, %c0_i32_0, %c0_i32_1 : i32, i32, i32
  }
  func.func @transform_10(%arg0: i32) -> (i32, i32, i32) {
    %c0_i32 = arith.constant 0 : i32
    %c0_i32_0 = arith.constant 0 : i32
    %c0_i32_1 = arith.constant 0 : i32
    %c0_i32_2 = arith.constant 0 : i32
    return %c0_i32, %c0_i32_0, %c0_i32_1 : i32, i32, i32
  }
  func.func @transform_11(%arg0: i32) -> (i32, i32, i32) {
    %c0_i32 = arith.constant 0 : i32
    %c0_i32_0 = arith.constant 0 : i32
    %c0_i32_1 = arith.constant 0 : i32
    %c0_i32_2 = arith.constant 0 : i32
    return %c0_i32, %c0_i32_0, %c0_i32_1 : i32, i32, i32
  }
  func.func @transform_12(%arg0: i32) -> (i32, i32, i32) {
    %c0_i32 = arith.constant 0 : i32
    %c0_i32_0 = arith.constant 0 : i32
    %c0_i32_1 = arith.constant 0 : i32
    %c0_i32_2 = arith.constant 0 : i32
    return %c0_i32, %c0_i32_0, %c0_i32_1 : i32, i32, i32
  }
  func.func @transform_13(%arg0: i32) -> (i32, i32, i32) {
    %c0_i32 = arith.constant 0 : i32
    %c0_i32_0 = arith.constant 0 : i32
    %c0_i32_1 = arith.constant 0 : i32
    %c0_i32_2 = arith.constant 0 : i32
    return %c0_i32, %c0_i32_0, %c0_i32_1 : i32, i32, i32
  }
  func.func @transform_14(%arg0: i32) -> (i32, i32) {
    %c0_i32 = arith.constant 0 : i32
    %c0_i32_0 = arith.constant 0 : i32
    %c0_i32_1 = arith.constant 0 : i32
    return %c0_i32, %c0_i32_0 : i32, i32
  }
  func.func @transform_15(%arg0: i32) -> (i32, i32) {
    %c0_i32 = arith.constant 0 : i32
    %c0_i32_0 = arith.constant 0 : i32
    %c0_i32_1 = arith.constant 0 : i32
    return %c0_i32, %c0_i32_0 : i32, i32
  }
  func.func @transform_16(%arg0: i32) -> (i32, i32, i32) {
    %c0_i32 = arith.constant 0 : i32
    %c0_i32_0 = arith.constant 0 : i32
    %c0_i32_1 = arith.constant 0 : i32
    return %arg0, %c0_i32, %c0_i32_0 : i32, i32, i32
  }
}

</mosaic_0001>

<bundles_post_ra>
// kernel: tpu_custom_call.1
= control target key start
LH: loop header
LB: loop body
LE: loop exit
PB: predicated region body
PF: predicated region fallthrough
CT: control target
= control target key end

     0   :  { %s8423_s0 = inlined_call_operand.vmem [shape: f32[2,16,128], index: 0, kind: input, shape index: {}]   ;;  %s8424_s1 = inlined_call_operand.vmem [shape: f32[2,1,128], index: 1, kind: input, shape index: {}]   ;;  %s8425_s2 = inlined_call_operand.vmem [shape: f32[2,1,128], index: 2, kind: input, shape index: {}]   ;;  %s8426_s3 = inlined_call_operand.vmem [shape: bf16[2,4,128,64], index: 3, kind: input, shape index: {}]   ;;  %s8427_s4 = inlined_call_operand.vmem [shape: bf16[2,4,128,64], index: 4, kind: input, shape index: {}]   ;;  %s8428_s5 = inlined_call_operand.vmem [shape: bf16[2,4,128,64], index: 5, kind: input, shape index: {}]   ;;  %s8429_s6 = inlined_call_operand.vmem [shape: bf16[2,4,64,128], index: 6, kind: input, shape index: {}]   ;;  %s8430_s7 = inlined_call_operand.vmem [shape: f32[2,1,128], index: 7, kind: input, shape index: {}]   ;;  %s8431_s8 = inlined_call_operand.vmem [shape: f32[2,1,128], index: 8, kind: input, shape index: {}]   ;;  %s8432_s9 = inlined_call_operand.vmem [shape: f32[2,1,128], index: 9, kind: input, shape index: {}]   ;;  %s8433_s10 = inlined_call_operand.vmem [shape: bf16[2,128,256], index: 10, kind: input, shape index: {}]   ;;  %s8434_s11 = inlined_call_operand.vmem [shape: f32[2,1,256], index: 11, kind: input, shape index: {}]   ;;  %s8435_s12 = inlined_call_operand.vmem [shape: bf16[2,256,128], index: 12, kind: input, shape index: {}]   ;;  %s8436_s13 = inlined_call_operand.vmem [shape: f32[2,1,128], index: 13, kind: input, shape index: {}]   ;;  %s8437_s14 = inlined_call_operand.vmem [shape: f32[1,128], index: 14, kind: input, shape index: {}]   ;;  %s8438_s15 = inlined_call_operand.vmem [shape: f32[1,128], index: 15, kind: input, shape index: {}]   ;;  %s8439_s16 = inlined_call_operand.hbm [shape: f32[2,16,128], index: 16, kind: output, shape index: {}]  }
   0x1   :  { %8448 = sst [smem:[#allocation12_spill]] %s8423_s0 }
   0x2   :  { %8449 = sst [smem:[#allocation13_spill]] %s8424_s1 }
   0x3   :  { %8450 = sst [smem:[#allocation14_spill]] %s8425_s2 }
   0x4   :  { %21 = vsyncpa [#allocation3], 0 }
   0x5   :  { %23 = vsyncpa [#allocation3 + $0x1], 0  ;;  %s6950_s21 = smov 0   ;;  %s6952_s22 = smov 0  }
   0x6   :  { %s6954_s23 = smov 0   ;;  %s6956_s24 = smov 0  }
   0x7 LB: > { %8451 = sst [smem:[#allocation5_spill]] %s6847_s21  ;;  %s6971_s25 = sadd.s32 4294967295, %s6859_s24   ;;  %s6859_s24 = sphi %s6956_s24, %s8467_s24   ;;  %s6855_s23 = sphi %s6954_s23, %s8472_s23   ;;  %s6851_s22 = sphi %s6952_s22, %s8471_s22   ;;  %s6847_s21 = sphi %s6950_s21, %s8470_s21  }
   0x8   : > { %8452 = sst [smem:[#allocation6_spill]] %s6855_s23  ;;  %s4863_s26 = sadd.s32 4294967294, %s6859_s24  }
   0x9   : > { %8453 = sst [smem:[#allocation7_spill]] %s6859_s24  ;;  %s6975_s27 = sadd.s32 1, %s6859_s24  }
   0xa   : > { %8454 = sst [smem:[#allocation8_spill]] %s6975_s27  ;;  %s377_s28 = sadd.s32 1, %s6855_s23 }
   0xb   : > { %s374_s29 = ssub.s32 %s6859_s24, %s6975_s27  ;;  %p387_p0 = scmp.ne.s32.totalorder %s6855_s23, %s6851_s22 }
   0xc   : > { %p375_p1 = scmp.eq.s32.totalorder %s374_s29, 0  ;;  %p388_p2 = scmp.eq.s32.totalorder %s6971_s25, 1 }
   0xd   : > { %p393_p3 = scmp.ne.s32.totalorder %s6851_s22, %s6847_s21  ;;  %p394_p4 = scmp.eq.s32.totalorder %s4863_s26, 1 }
   0xe   : > { %s6986_s30 = scalar_select %p375_p1, %s6855_s23, %s377_s28  }
   0xf   : > { %p6988_p5 = por %p388_p2, %p387_p0  ;;  %p6992_p6 = por %p394_p4, %p393_p3 }
  0x10   : > { %8455 = sst [smem:[#allocation9_spill]] %s6986_s30  ;;  %p4866_p7 = scmp.ge.s32.totalorder %s6859_s24, 1 }
  0x11   : > { %s8456_s0 = scalar_select %p6988_p5, 1, 0 }
  0x12   : > { %s8458_s17 = scalar_select %p6992_p6, 1, 0 }
  0x13   : > { %8457 = sst [smem:[#allocation10_spill]] %s8456_s0  ;;  %p465_p8 = scmp.lt.s32.totalorder %s6859_s24, 3 }
  0x14   : > { %8459 = sst [smem:[#allocation11_spill]] %s8458_s17 }
  0x15   : > { %p466_p9 = pnand %p4866_p7, %p465_p8 }
  0x16   : > { %p515_p10 = scmp.lt.s32.totalorder (!%p466_p9), %s6971_s25, 1  ;;  %s8460_s28 = sld [smem:[#allocation12_spill]] (!%p466_p9) }
  0x17   : > { %469 = sbr.rel (%p466_p9) target bundleno = 3811 (0xee3), region = 84  ;;  %s8461_s1 = sld [smem:[#allocation13_spill]] (!%p466_p9) }
  0x18   : > { %s8462_s2 = sld [smem:[#allocation14_spill]] (!%p466_p9)  ;;  %s512_s17 = sand.u32 (!%p466_p9), 1, %s6851_s22  }
  0x19   : > { %s4867_s30 = sshll.u32 (!%p466_p9), %s512_s17, 4  ;;  %s6619_s0 = sshll.u32 (!%p466_p9), %s6971_s25, 4 }
  0x1a   : > { %s514_s20 = scalar_lea.vmem (!%p466_p9), [#allocation2], %s4867_s30 }
  0x1b   : > { %s4798_s21 = sshll.u32 (!%p466_p9), %s514_s20, 4  ;;  %s4799_s21 = int_to_ptr.vmem [resolvable:$true] %s4798_s21 }
  0x1c   : > { %s516_s18 = scalar_select %p515_p10, %s6971_s25, 1  ;;  %v6861_v2 = vmov 128.0   ;;  %v6338_v5 = vld [vmem:[%s8426_s3 + $0x38] sm:$0xff]  ;;  %v6337_v9 = vld [vmem:[%s8426_s3 + $0x30] sm:$0xff]  ;;  %v6336_v14 = vld [vmem:[%s8426_s3 + $0x28] sm:$0xff]  ;;  %vm1552_vm7 = vcmask 523264  }
  0x1d   : > { %6677 = vrcp.f32 %v6861_v2  ;;  %v6346_v6 = vld [vmem:[%s8426_s3 + $0x78] sm:$0xff]  ;;  %702 = vmatpush.bf16.msra.mxu0 %v6338_v5  ;;  %v6345_v10 = vld [vmem:[%s8426_s3 + $0x70] sm:$0xff]  ;;  %v6344_v15 = vld [vmem:[%s8426_s3 + $0x68] sm:$0xff]  ;;  %vm1663_vm8 = vcmask 130048   ;;  %s4786_s25 = scalar_lea.sflag [#allocation3], %s512_s17 }
  0x1e   : > { %s6330_s19 = sshll.u32 %s516_s18, 4  ;;  %v6354_v7 = vld [vmem:[%s8426_s3 + $0xb8] sm:$0xff]  ;;  %764 = vmatpush.bf16.msra.mxu1 %v6346_v6  ;;  %v6353_v12 = vld [vmem:[%s8426_s3 + $0xb0] sm:$0xff]  ;;  %v6352_v17 = vld [vmem:[%s8426_s3 + $0xa8] sm:$0xff] }
  0x1f   : > { %s7003_s29 = scalar_lea.vmem %s8460_s28, %s6330_s19  ;;  %v6362_v8 = vld [vmem:[%s8426_s3 + $0xf8] sm:$0xff]  ;;  %826 = vmatpush.bf16.msra.mxu2 %v6354_v7  ;;  %v6361_v13 = vld [vmem:[%s8426_s3 + $0xf0] sm:$0xff]  ;;  %v6360_v18 = vld [vmem:[%s8426_s3 + $0xe8] sm:$0xff]  ;;  %s4797_s19 = scalar_lea.hbm %s8439_s16, %s6619_s0 }
  0x20   : > { %v521_v0 = vld [vmem:[%s7003_s29] sm:$0xff]  ;;  %v522_v1 = vld [vmem:[%s7003_s29 + $0x8] sm:$0xff]  ;;  %888 = vmatpush.bf16.msra.mxu3 %v6362_v8  ;;  %v6334_v33 = vld [vmem:[%s8426_s3 + $0x18] sm:$0xff]  ;;  %s4800_s28 = sshll.u32 %s4797_s19, 4  ;;  %s6817_s0 = scalar_lea.hbm %s8439_s16, 32  ;;  %s4801_s28 = int_to_ptr.hbm [resolvable:$true] %s4800_s28 }
  0x21   : > { %525 = vadd.xlane.f32.xlu0 %v521_v0  ;;  %703 = vmatpush.bf16.msra.mxu0 %v6337_v9  ;;  %v6335_v19 = vld [vmem:[%s8426_s3 + $0x20] sm:$0xff]  ;;  %v6342_v34 = vld [vmem:[%s8426_s3 + $0x58] sm:$0xff]  ;;  %v6333_v37 = vld [vmem:[%s8426_s3 + $0x10] sm:$0xff]  ;;  %s6811_s23 = sshra.s32 %s4801_s28, 4  ;;  %s6812_s23 = int_to_ptr.hbm [resolvable:$true] %s6811_s23 }
  0x22   : > { %765 = vmatpush.bf16.msra.mxu1 %v6345_v10  ;;  %v6343_v20 = vld [vmem:[%s8426_s3 + $0x60] sm:$0xff]  ;;  %v6350_v35 = vld [vmem:[%s8426_s3 + $0x98] sm:$0xff]  ;;  %v6341_v38 = vld [vmem:[%s8426_s3 + $0x50] sm:$0xff]  ;;  %p6818_p0 = scmp.lt.s32.totalorder %s6812_s23, %s8439_s16 }
  0x23   : > { %v6678_v3 = vpop.eup %6677  ;;  %827 = vmatpush.bf16.msra.mxu2 %v6353_v12  ;;  %v6351_v22 = vld [vmem:[%s8426_s3 + $0xa0] sm:$0xff]  ;;  %v6358_v36 = vld [vmem:[%s8426_s3 + $0xd8] sm:$0xff]  ;;  %v6349_v39 = vld [vmem:[%s8426_s3 + $0x90] sm:$0xff] }
  0x24   : > { %v530_v4 = vmul.f32 128.0, %v6678_v3  ;;  %889 = vmatpush.bf16.msra.mxu3 %v6361_v13  ;;  %v6359_v23 = vld [vmem:[%s8426_s3 + $0xe0] sm:$0xff]  ;;  %vm534_vm0 = vweird.f32 %v6678_v3  ;;  %v6357_v40 = vld [vmem:[%s8426_s3 + $0xd0] sm:$0xff]  ;;  %v6332_v41 = vld [vmem:[%s8426_s3 + $0x8] sm:$0xff] }
  0x25   : > { %704 = vmatpush.bf16.msra.mxu0 %v6336_v14  ;;  %v6340_v42 = vld [vmem:[%s8426_s3 + $0x48] sm:$0xff]  ;;  %v6331_v45 = vld [vmem:[%s8426_s3] sm:$0xff]  ;;  %v6370_v49 = vld [vmem:[%s8427_s4 + $0x38] sm:$0xff] }
  0x26   : > { %v531_v11 = vsub.f32 1.0, %v530_v4  ;;  %766 = vmatpush.bf16.msra.mxu1 %v6344_v15  ;;  %v6348_v43 = vld [vmem:[%s8426_s3 + $0x88] sm:$0xff]  ;;  %v6339_v46 = vld [vmem:[%s8426_s3 + $0x40] sm:$0xff]  ;;  %v6378_v50 = vld [vmem:[%s8427_s4 + $0x78] sm:$0xff] }
  0x27   : > { %828 = vmatpush.bf16.msra.mxu2 %v6352_v17  ;;  %v6356_v44 = vld [vmem:[%s8426_s3 + $0xc8] sm:$0xff]  ;;  %v6347_v47 = vld [vmem:[%s8426_s3 + $0x80] sm:$0xff]  ;;  %v6386_v51 = vld [vmem:[%s8427_s4 + $0xb8] sm:$0xff] }
  0x28   : > { %v532_v16 = vmul.f32 %v6678_v3, %v531_v11  ;;  %890 = vmatpush.bf16.msra.mxu3 %v6360_v18  ;;  %v6355_v48 = vld [vmem:[%s8426_s3 + $0xc0] sm:$0xff]  ;;  %v6394_v52 = vld [vmem:[%s8427_s4 + $0xf8] sm:$0xff]  ;;  %v6369_v53 = vld [vmem:[%s8427_s4 + $0x30] sm:$0xff] }
  0x29   : > { %527 = vadd.xlane.f32.xlu0 %v522_v1  ;;  %705 = vmatpush.bf16.msra.mxu0 %v6335_v19  ;;  %v6377_v54 = vld [vmem:[%s8427_s4 + $0x70] sm:$0xff]  ;;  %v6368_v57 = vld [vmem:[%s8427_s4 + $0x28] sm:$0xff]  ;;  %v6367_v61 = vld [vmem:[%s8427_s4 + $0x20] sm:$0xff] }
  0x2a   : > { %v533_v21 = vadd.f32 %v6678_v3, %v532_v16  ;;  %767 = vmatpush.bf16.msra.mxu1 %v6343_v20  ;;  %v6385_v55 = vld [vmem:[%s8427_s4 + $0xb0] sm:$0xff]  ;;  %v6376_v58 = vld [vmem:[%s8427_s4 + $0x68] sm:$0xff]  ;;  %v6375_v62 = vld [vmem:[%s8427_s4 + $0x60] sm:$0xff] }
  0x2b   : > { %829 = vmatpush.bf16.msra.mxu2 %v6351_v22  ;;  %v6393_v56 = vld [vmem:[%s8427_s4 + $0xf0] sm:$0xff]  ;;  %v6384_v59 = vld [vmem:[%s8427_s4 + $0xa8] sm:$0xff]  ;;  %v6383_v63 = vld [vmem:[%s8427_s4 + $0xa0] sm:$0xff] }
  0x2c   : > { %v7055_v24 = vsel %vm534_vm0, %v6678_v3, %v533_v21  ;;  %891 = vmatpush.bf16.msra.mxu3 %v6359_v23  ;;  %v6392_v60 = vld [vmem:[%s8427_s4 + $0xe8] sm:$0xff]  ;;  %v6374_v2 = vld [vmem:[%s8427_s4 + $0x58] sm:$0xff]  ;;  %v6365_v7 = vld [vmem:[%s8427_s4 + $0x10] sm:$0xff] }
  0x2d   : > { %706 = vmatpush.bf16.msra.mxu0 %v6334_v33  ;;  %v6382_v3 = vld [vmem:[%s8427_s4 + $0x98] sm:$0xff]  ;;  %v6373_v8 = vld [vmem:[%s8427_s4 + $0x50] sm:$0xff]  ;;  %v6364_v12 = vld [vmem:[%s8427_s4 + $0x8] sm:$0xff] }
  0x2e   : > { %768 = vmatpush.bf16.msra.mxu1 %v6342_v34  ;;  %v6390_v4 = vld [vmem:[%s8427_s4 + $0xd8] sm:$0xff]  ;;  %v6381_v9 = vld [vmem:[%s8427_s4 + $0x90] sm:$0xff]  ;;  %v6372_v13 = vld [vmem:[%s8427_s4 + $0x48] sm:$0xff] }
  0x2f   : > { %830 = vmatpush.bf16.msra.mxu2 %v6350_v35  ;;  %v6389_v10 = vld [vmem:[%s8427_s4 + $0xd0] sm:$0xff]  ;;  %v6380_v14 = vld [vmem:[%s8427_s4 + $0x88] sm:$0xff]  ;;  %v6363_v18 = vld [vmem:[%s8427_s4] sm:$0xff] }
  0x30   : > { %892 = vmatpush.bf16.msra.mxu3 %v6358_v36  ;;  %v6388_v15 = vld [vmem:[%s8427_s4 + $0xc8] sm:$0xff]  ;;  %v6371_v19 = vld [vmem:[%s8427_s4 + $0x40] sm:$0xff] }
  0x31   : > { %707 = vmatpush.bf16.msra.mxu0 %v6333_v37  ;;  %v6379_v20 = vld [vmem:[%s8427_s4 + $0x80] sm:$0xff] }
  0x32   : > { %769 = vmatpush.bf16.msra.mxu1 %v6341_v38  ;;  %v6387_v23 = vld [vmem:[%s8427_s4 + $0xc0] sm:$0xff] }
  0x33   : > { %831 = vmatpush.bf16.msra.mxu2 %v6349_v39  ;;  %v6663_v36 = vld [vmem:[%s8461_s1] ss:$0 sm:$0xff] }
  0x34   : > { %893 = vmatpush.bf16.msra.mxu3 %v6357_v40  ;;  %v6664_v40 = vld [vmem:[%s8462_s2] ss:$0 sm:$0xff] }
  0x35   : > { %708 = vmatpush.bf16.msra.mxu0 %v6332_v41 }
  0x36   : > { %770 = vmatpush.bf16.msra.mxu1 %v6340_v42 }
  0x37   : > { %832 = vmatpush.bf16.msra.mxu2 %v6348_v43 }
  0x38   : > { %894 = vmatpush.bf16.msra.mxu3 %v6356_v44 }
  0x39   : > { %709 = vmatpush.bf16.msra.mxu0 %v6331_v45 }
  0x3a   : > { %771 = vmatpush.bf16.msra.mxu1 %v6339_v46 }
  0x3b   : > { %833 = vmatpush.bf16.msra.mxu2 %v6347_v47 }
  0x3c   : > { %895 = vmatpush.bf16.msra.mxu3 %v6355_v48 }
  0x3d   : > { %1014 = vmatpush.bf16.msrb.mxu0 %v6370_v49 }
  0x3e   : > { %1076 = vmatpush.bf16.msrb.mxu1 %v6378_v50 }
  0x3f   : > { %1138 = vmatpush.bf16.msrb.mxu2 %v6386_v51 }
  0x40   : > { %1200 = vmatpush.bf16.msrb.mxu3 %v6394_v52  ;;  %v6402_v52 = vld [vmem:[%s8428_s5 + $0x38] sm:$0xff] }
  0x41   : > { %1015 = vmatpush.bf16.msrb.mxu0 %v6369_v53  ;;  %v6410_v53 = vld [vmem:[%s8428_s5 + $0x78] sm:$0xff] }
  0x42   : > { %1077 = vmatpush.bf16.msrb.mxu1 %v6377_v54  ;;  %v6426_v54 = vld [vmem:[%s8428_s5 + $0xf8] sm:$0xff] }
  0x43   : > { %1139 = vmatpush.bf16.msrb.mxu2 %v6385_v55  ;;  %v6401_v55 = vld [vmem:[%s8428_s5 + $0x30] sm:$0xff] }
  0x44   : > { %1201 = vmatpush.bf16.msrb.mxu3 %v6393_v56  ;;  %v6409_v56 = vld [vmem:[%s8428_s5 + $0x70] sm:$0xff] }
  0x45   : > { %1016 = vmatpush.bf16.msrb.mxu0 %v6368_v57  ;;  %v6417_v57 = vld [vmem:[%s8428_s5 + $0xb0] sm:$0xff] }
  0x46   : > { %1078 = vmatpush.bf16.msrb.mxu1 %v6376_v58  ;;  %v6425_v58 = vld [vmem:[%s8428_s5 + $0xf0] sm:$0xff] }
  0x47   : > { %1140 = vmatpush.bf16.msrb.mxu2 %v6384_v59  ;;  %v6400_v59 = vld [vmem:[%s8428_s5 + $0x28] sm:$0xff] }
  0x48   : > { %1202 = vmatpush.bf16.msrb.mxu3 %v6392_v60  ;;  %v6408_v60 = vld [vmem:[%s8428_s5 + $0x68] sm:$0xff] }
  0x49   : > { %1017 = vmatpush.bf16.msrb.mxu0 %v6367_v61  ;;  %v6416_v61 = vld [vmem:[%s8428_s5 + $0xa8] sm:$0xff] }
  0x4a   : > { %1079 = vmatpush.bf16.msrb.mxu1 %v6375_v62  ;;  %v6424_v62 = vld [vmem:[%s8428_s5 + $0xe8] sm:$0xff] }
  0x4b   : > { %1141 = vmatpush.bf16.msrb.mxu2 %v6383_v63  ;;  %v6399_v63 = vld [vmem:[%s8428_s5 + $0x20] sm:$0xff] }
  0x4e   : > { %1080 = vmatpush.bf16.msrb.mxu1 %v6374_v2  ;;  %v6423_v2 = vld [vmem:[%s8428_s5 + $0xe0] sm:$0xff] }
  0x4f   : > { %1142 = vmatpush.bf16.msrb.mxu2 %v6382_v3  ;;  %v6398_v3 = vld [vmem:[%s8428_s5 + $0x18] sm:$0xff] }
  0x52   : > { %1081 = vmatpush.bf16.msrb.mxu1 %v6373_v8  ;;  %v6405_v8 = vld [vmem:[%s8428_s5 + $0x50] sm:$0xff] }
  0x53   : > { %1143 = vmatpush.bf16.msrb.mxu2 %v6381_v9  ;;  %v6413_v9 = vld [vmem:[%s8428_s5 + $0x90] sm:$0xff] }
  0x56   : > { %1082 = vmatpush.bf16.msrb.mxu1 %v6372_v13  ;;  %v6412_v13 = vld [vmem:[%s8428_s5 + $0x88] sm:$0xff] }
  0x57   : > { %1144 = vmatpush.bf16.msrb.mxu2 %v6380_v14  ;;  %v6420_v14 = vld [vmem:[%s8428_s5 + $0xc8] sm:$0xff] }
  0x5a   : > { %1083 = vmatpush.bf16.msrb.mxu1 %v6371_v19 }
  0x5b   : > { %1145 = vmatpush.bf16.msrb.mxu2 %v6379_v20 }
  0x94   : > { %v526_v25 = vpop.xlane.xlu0 %525 }
  0x95   : > { %v536_v26 = vmul.f32 %v7055_v24, %v526_v25 }
  0x97   : > { %v7058_v27 = vsub.f32 %v521_v0, %v536_v26  ;;  %v6391_v0 = vld [vmem:[%s8427_s4 + $0xe0] sm:$0xff] }
  0x98   : > { %1203 = vmatpush.bf16.msrb.mxu3 %v6391_v0  ;;  %v6407_v0 = vld [vmem:[%s8428_s5 + $0x60] sm:$0xff] }
  0x99   : > { %v540_v28 = vmul.f32 %v7058_v27, %v7058_v27 }
  0x9b   : > { %542 = vadd.xlane.f32.xlu1 %v540_v28 }
  0x9c   : > { %v528_v29 = vpop.xlane.xlu0 %527  ;;  %1204 = vmatpush.bf16.msrb.mxu3 %v6390_v4  ;;  %v6406_v4 = vld [vmem:[%s8428_s5 + $0x58] sm:$0xff] }
  0x9d   : > { %v537_v30 = vmul.f32 %v7055_v24, %v528_v29 }
  0x9f   : > { %v7063_v31 = vsub.f32 %v522_v1, %v537_v30  ;;  %v6366_v1 = vld [vmem:[%s8427_s4 + $0x18] sm:$0xff] }
  0xa0   : > { %1018 = vmatpush.bf16.msrb.mxu0 %v6366_v1  ;;  %1205 = vmatpush.bf16.msrb.mxu3 %v6389_v10  ;;  %v6415_v1 = vld [vmem:[%s8428_s5 + $0xa0] sm:$0xff]  ;;  %v6421_v10 = vld [vmem:[%s8428_s5 + $0xd0] sm:$0xff] }
  0xa1   : > { %v541_v32 = vmul.f32 %v7063_v31, %v7063_v31 }
  0xa3   : > { %544 = vadd.xlane.f32.xlu1 %v541_v32 }
  0xa4   : > { %1019 = vmatpush.bf16.msrb.mxu0 %v6365_v7  ;;  %1206 = vmatpush.bf16.msrb.mxu3 %v6388_v15  ;;  %v6397_v7 = vld [vmem:[%s8428_s5 + $0x10] sm:$0xff]  ;;  %v6395_v15 = vld [vmem:[%s8428_s5] sm:$0xff] }
  0xa8   : > { %1020 = vmatpush.bf16.msrb.mxu0 %v6364_v12  ;;  %1207 = vmatpush.bf16.msrb.mxu3 %v6387_v23  ;;  %v6404_v12 = vld [vmem:[%s8428_s5 + $0x48] sm:$0xff] }
  0xac   : > { %1021 = vmatpush.bf16.msrb.mxu0 %v6363_v18  ;;  %v6419_v18 = vld [vmem:[%s8428_s5 + $0xc0] sm:$0xff] }
 0x10e   : > { %v543_v5 = vpop.xlane.xlu1 %542 }
 0x10f   : > { %v546_v6 = vmul.f32 %v543_v5, %v7055_v24  ;;  %v6414_v5 = vld [vmem:[%s8428_s5 + $0x98] sm:$0xff] }
 0x111   : > { %v548_v11 = vadd.f32 1e-05, %v546_v6  ;;  %v6422_v6 = vld [vmem:[%s8428_s5 + $0xd8] sm:$0xff] }
 0x113   : > { %6679 = vrsqrt.f32 %v548_v11  ;;  %vm556_vm2 = vweird.f32 %v548_v11 }
 0x116   : > { %v545_v16 = vpop.xlane.xlu1 %544 }
 0x117   : > { %v547_v17 = vmul.f32 %v545_v16, %v7055_v24  ;;  %v6403_v16 = vld [vmem:[%s8428_s5 + $0x40] sm:$0xff] }
 0x119   : > { %v6680_v21 = vpop.eup %6679  ;;  %v549_v22 = vadd.f32 1e-05, %v547_v17  ;;  %v6411_v17 = vld [vmem:[%s8428_s5 + $0x80] sm:$0xff] }
 0x11a   : > { %v551_v25 = vmul.f32 %v6680_v21, %v548_v11  ;;  %vm557_vm1 = vweird.f32 %v6680_v21  ;;  %v6396_v11 = vld [vmem:[%s8428_s5 + $0x8] sm:$0xff] }
 0x11b   : > { %6681 = vrsqrt.f32 %v549_v22  ;;  %vm558_vm3 = vmor %vm556_vm2, %vm557_vm1  ;;  %vm566_vm5 = vweird.f32 %v549_v22 }
 0x11c   : > { %v552_v26 = vmul.f32 %v6680_v21, %v551_v25 }
 0x11e   : > { %v553_v28 = vmul.f32 0.5, %v552_v26 }
 0x120   : > { %v554_v29 = vsub.f32 1.5, %v553_v28 }
 0x121   : > { %v6682_v30 = vpop.eup %6681 }
 0x122   : > { %v555_v32 = vmul.f32 %v6680_v21, %v554_v29  ;;  %v561_v33 = vmul.f32 %v6682_v30, %v549_v22  ;;  %vm567_vm4 = vweird.f32 %v6682_v30 }
 0x123   : > { %vm568_vm6 = vmor %vm566_vm5, %vm567_vm4 }
 0x124   : > { %v559_v34 = vsel %vm558_vm3, %v6680_v21, %v555_v32  ;;  %v562_v35 = vmul.f32 %v6682_v30, %v561_v33 }
 0x125   : > { %v570_v37 = vmul.f32 %v559_v34, %v7058_v27 }
 0x126   : > { %v563_v38 = vmul.f32 0.5, %v562_v35 }
 0x127   : > { %v575_v41 = vmul.f32 %v6663_v36, %v570_v37 }
 0x128   : > { %v564_v39 = vsub.f32 1.5, %v563_v38 }
 0x129   : > { %v580_v44 = vadd.f32 %v6664_v40, %v575_v41 }
 0x12a   : > { %v565_v42 = vmul.f32 %v6682_v30, %v564_v39 }
 0x12b   : > { %v582_v47 = vpack.c.bf16 %v580_v44, %v580_v44 }
 0x12c   : > { %v569_v43 = vsel %vm568_vm6, %v6682_v30, %v565_v42 }
 0x12d   : > { %v571_v45 = vmul.f32 %v569_v43, %v7063_v31  ;;  %v650_v27 = vunpack.c.l.b16 %v582_v47  ;;  %v6418_v31 = vld [vmem:[%s8428_s5 + $0xb8] sm:$0xff] }
 0x12f   : > { %v576_v46 = vmul.f32 %v6663_v36, %v571_v45 }
 0x131   : > { %v581_v48 = vadd.f32 %v6664_v40, %v576_v46 }
 0x133   : > { %v583_v49 = vpack.c.bf16 %v581_v48, %v581_v48 }
 0x135   : > { %v651_v50 = vunpack.c.l.b16 %v583_v49 }
 0x137   : > { %v7221_v51 = vpack.c.b16 %v651_v50, %v650_v27 }
 0x139   : > { %710 = vmatmul.bf16.vlgmr.msra.gmra.mxu0 %v7221_v51  ;;  %772 = vmatmul.bf16.vlgmr.msra.gmra.mxu1 %v7221_v51 }
 0x13a   : > { %834 = vmatmul.bf16.vlgmr.msra.gmra.mxu2 %v7221_v51  ;;  %896 = vmatmul.bf16.vlgmr.msra.gmra.mxu3 %v7221_v51 }
 0x13b   : > { %1326 = vmatpush.bf16.msra.mxu0 %v6402_v52  ;;  %1388 = vmatpush.bf16.msra.mxu1 %v6410_v53 }
 0x13c   : > { %1450 = vmatpush.bf16.msra.mxu2 %v6418_v31  ;;  %1512 = vmatpush.bf16.msra.mxu3 %v6426_v54 }
 0x13f   : > { %1327 = vmatpush.bf16.msra.mxu0 %v6401_v55  ;;  %1389 = vmatpush.bf16.msra.mxu1 %v6409_v56 }
 0x140   : > { %1451 = vmatpush.bf16.msra.mxu2 %v6417_v57  ;;  %1513 = vmatpush.bf16.msra.mxu3 %v6425_v58 }
 0x143   : > { %1328 = vmatpush.bf16.msra.mxu0 %v6400_v59  ;;  %1390 = vmatpush.bf16.msra.mxu1 %v6408_v60 }
 0x144   : > { %1452 = vmatpush.bf16.msra.mxu2 %v6416_v61  ;;  %1514 = vmatpush.bf16.msra.mxu3 %v6424_v62 }
 0x147   : > { %1329 = vmatpush.bf16.msra.mxu0 %v6399_v63  ;;  %1391 = vmatpush.bf16.msra.mxu1 %v6407_v0 }
 0x148   : > { %1453 = vmatpush.bf16.msra.mxu2 %v6415_v1  ;;  %1515 = vmatpush.bf16.msra.mxu3 %v6423_v2 }
 0x149   : > { %1022 = vmatmul.bf16.vlgmr.msrb.gmra.mxu0 %v7221_v51  ;;  %1084 = vmatmul.bf16.vlgmr.msrb.gmra.mxu1 %v7221_v51 }
 0x14a   : > { %1146 = vmatmul.bf16.vlgmr.msrb.gmra.mxu2 %v7221_v51  ;;  %1208 = vmatmul.bf16.vlgmr.msrb.gmra.mxu3 %v7221_v51 }
 0x14b   : > { %1330 = vmatpush.bf16.msra.mxu0 %v6398_v3  ;;  %1392 = vmatpush.bf16.msra.mxu1 %v6406_v4 }
 0x14c   : > { %1454 = vmatpush.bf16.msra.mxu2 %v6414_v5  ;;  %1516 = vmatpush.bf16.msra.mxu3 %v6422_v6 }
 0x14f   : > { %1331 = vmatpush.bf16.msra.mxu0 %v6397_v7  ;;  %1393 = vmatpush.bf16.msra.mxu1 %v6405_v8 }
 0x150   : > { %1455 = vmatpush.bf16.msra.mxu2 %v6413_v9  ;;  %1517 = vmatpush.bf16.msra.mxu3 %v6421_v10 }
 0x153   : > { %1332 = vmatpush.bf16.msra.mxu0 %v6396_v11  ;;  %1394 = vmatpush.bf16.msra.mxu1 %v6404_v12 }
 0x154   : > { %1456 = vmatpush.bf16.msra.mxu2 %v6412_v13  ;;  %1518 = vmatpush.bf16.msra.mxu3 %v6420_v14 }
 0x157   : > { %1333 = vmatpush.bf16.msra.mxu0 %v6395_v15  ;;  %1395 = vmatpush.bf16.msra.mxu1 %v6403_v16 }
 0x158   : > { %1457 = vmatpush.bf16.msra.mxu2 %v6411_v17  ;;  %1519 = vmatpush.bf16.msra.mxu3 %v6419_v18 }
 0x15a   : > { %1334 = vmatmul.bf16.vlgmr.msra.gmra.mxu0 %v7221_v51  ;;  %1396 = vmatmul.bf16.vlgmr.msra.gmra.mxu1 %v7221_v51 }
 0x15b   : > { %1458 = vmatmul.bf16.vlgmr.msra.gmra.mxu2 %v7221_v51  ;;  %1520 = vmatmul.bf16.vlgmr.msra.gmra.mxu3 %v7221_v51 }
 0x1b6   : > { %v711_v19 = vpop.f32.mrf.mxu0  ;;  %v773_v20 = vpop.f32.mrf.mxu1 }
 0x1b7   : > { %v1526_v27 = vpack.c.bf16 %v711_v19, %v711_v19  ;;  %v1528_v31 = vpack.c.bf16 %v773_v20, %v773_v20 }
 0x1b9   : > { %v1544_v2 = vunpack.c.l.b16 %v1526_v27  ;;  %v1575_v3 = vunpack.c.l.b16 %v1528_v31 }
 0x1bd   : > { %v7331_v21 = vpop.f32.mrf.mxu2  ;;  %v7333_v22 = vpop.f32.mrf.mxu3 }
 0x1be   : > { %v713_v23 = vpop.f32.mrf.mxu0  ;;  %v775_v25 = vpop.f32.mrf.mxu1  ;;  %v1530_v6 = vpack.c.bf16 %v7331_v21, %v7331_v21  ;;  %v1532_v7 = vpack.c.bf16 %v7333_v22, %v7333_v22 }
 0x1bf   : > { %v1527_v44 = vpack.c.bf16 %v713_v23, %v713_v23  ;;  %v1529_v45 = vpack.c.bf16 %v775_v25, %v775_v25 }
 0x1c0   : > { %v1605_v18 = vunpack.c.l.b16 %v1530_v6  ;;  %v1635_v19 = vunpack.c.l.b16 %v1532_v7 }
 0x1c1   : > { %v1545_v56 = vunpack.c.l.b16 %v1527_v44  ;;  %v1576_v57 = vunpack.c.l.b16 %v1529_v45 }
 0x1c3   : > { %v1546_v8 = vpack.c.b16 %v1545_v56, %v1544_v2  ;;  %v1577_v9 = vpack.c.b16 %v1576_v57, %v1575_v3 }
 0x1c5   : > { %v837_v26 = vpop.f32.mrf.mxu2  ;;  %v899_v28 = vpop.f32.mrf.mxu3 }
 0x1c6   : > { %v1023_v29 = vpop.f32.mrf.mxu0  ;;  %v1085_v30 = vpop.f32.mrf.mxu1  ;;  %v1531_v0 = vpack.c.bf16 %v837_v26, %v837_v26  ;;  %v1533_v1 = vpack.c.bf16 %v899_v28, %v899_v28 }
 0x1c7   : > { %v1534_v32 = vpack.c.bf16 %v1023_v29, %v1023_v29  ;;  %v1536_v33 = vpack.c.bf16 %v1085_v30, %v1085_v30 }
 0x1c8   : > { %v1606_v12 = vunpack.c.l.b16 %v1531_v0  ;;  %v1636_v13 = vunpack.c.l.b16 %v1533_v1 }
 0x1c9   : > { %v1549_v40 = vunpack.c.l.b16 %v1534_v32  ;;  %v1580_v41 = vunpack.c.l.b16 %v1536_v33 }
 0x1ca   : > { %v1607_v25 = vpack.c.b16 %v1606_v12, %v1605_v18  ;;  %v1637_v26 = vpack.c.b16 %v1636_v13, %v1635_v19 }
 0x1cd   : > { %v1147_v34 = vpop.f32.mrf.mxu2  ;;  %v1209_v35 = vpop.f32.mrf.mxu3 }
 0x1ce   : > { %v1025_v36 = vpop.f32.mrf.mxu0  ;;  %v1087_v37 = vpop.f32.mrf.mxu1  ;;  %v1538_v48 = vpack.c.bf16 %v1147_v34, %v1147_v34  ;;  %v1540_v49 = vpack.c.bf16 %v1209_v35, %v1209_v35 }
 0x1cf   : > { %v1535_v38 = vpack.c.bf16 %v1025_v36, %v1025_v36  ;;  %v1537_v39 = vpack.c.bf16 %v1087_v37, %v1087_v37 }
 0x1d0   : > { %v1610_v60 = vunpack.c.l.b16 %v1538_v48  ;;  %v1640_v61 = vunpack.c.l.b16 %v1540_v49 }
 0x1d1   : > { %v1550_v42 = vunpack.c.l.b16 %v1535_v38  ;;  %v1581_v43 = vunpack.c.l.b16 %v1537_v39 }
 0x1d3   : > { %v1551_v46 = vpack.c.b16 %v1550_v42, %v1549_v40  ;;  %v1582_v47 = vpack.c.b16 %v1581_v43, %v1580_v41 }
 0x1d5   : > { %v1149_v50 = vpop.f32.mrf.mxu2  ;;  %v1211_v51 = vpop.f32.mrf.mxu3  ;;  %v1557_v52 = vsel %vm1552_vm7, %v1551_v46, 0  ;;  %v1587_v53 = vsel %vm1552_vm7, %v1582_v47, 0 }
 0x1d6   : > { %v1539_v54 = vpack.c.bf16 %v1149_v50, %v1149_v50  ;;  %v1541_v55 = vpack.c.bf16 %v1211_v51, %v1211_v51  ;;  %1566 = vmatpush.bf16.xpose.msrb.mxu0 %v1557_v52  ;;  %1596 = vmatpush.bf16.xpose.msrb.mxu1 %v1587_v53 }
 0x1d7   : > { %v1335_v58 = vpop.f32.mrf.mxu0  ;;  %v1397_v59 = vpop.f32.mrf.mxu1 }
 0x1d8   : > { %v1611_v62 = vunpack.c.l.b16 %v1539_v54  ;;  %v1641_v63 = vunpack.c.l.b16 %v1541_v55  ;;  %v1760_v14 = vpack.c.bf16 %v1335_v58, %v1335_v58  ;;  %v1762_v15 = vpack.c.bf16 %v1397_v59, %v1397_v59 }
 0x1da   : > { %v1612_v4 = vpack.c.b16 %v1611_v62, %v1610_v60  ;;  %v1642_v5 = vpack.c.b16 %v1641_v63, %v1640_v61  ;;  %v1775_v28 = vunpack.c.l.b16 %v1760_v14  ;;  %v1803_v29 = vunpack.c.l.b16 %v1762_v15 }
 0x1dc   : > { %v1617_v10 = vsel %vm1552_vm7, %v1612_v4, 0  ;;  %v1647_v11 = vsel %vm1552_vm7, %v1642_v5, 0 }
 0x1dd   : > { %1626 = vmatpush.bf16.xpose.msrb.mxu2 %v1617_v10  ;;  %1656 = vmatpush.bf16.xpose.msrb.mxu3 %v1647_v11 }
 0x1de   : > { %v1459_v16 = vpop.f32.mrf.mxu2  ;;  %v1521_v17 = vpop.f32.mrf.mxu3  ;;  %5254 = vmatmul.msk.bf16.vlgmr.msrb.gmra.mxu0 %vm1552_vm7, %v1546_v8  ;;  %5255 = vmatmul.msk.bf16.vlgmr.msrb.gmra.mxu1 %vm1552_vm7, %v1577_v9 }
 0x1df   : > { %v1337_v20 = vpop.f32.mrf.mxu0  ;;  %v1399_v21 = vpop.f32.mrf.mxu1  ;;  %v1764_v35 = vpack.c.bf16 %v1459_v16, %v1459_v16  ;;  %v1766_v36 = vpack.c.bf16 %v1521_v17, %v1521_v17 }
 0x1e0   : > { %v1761_v22 = vpack.c.bf16 %v1337_v20, %v1337_v20  ;;  %v1763_v23 = vpack.c.bf16 %v1399_v21, %v1399_v21 }
 0x1e1   : > { %v1831_v41 = vunpack.c.l.b16 %v1764_v35  ;;  %v1859_v42 = vunpack.c.l.b16 %v1766_v36 }
 0x1e2   : > { %v1776_v30 = vunpack.c.l.b16 %v1761_v22  ;;  %v1804_v32 = vunpack.c.l.b16 %v1763_v23 }
 0x1e4   : > { %v1777_v33 = vpack.c.b16 %v1776_v30, %v1775_v28  ;;  %v1805_v34 = vpack.c.b16 %v1804_v32, %v1803_v29  ;;  %5256 = vmatmul.msk.bf16.vlgmr.msrb.gmra.mxu2 %vm1552_vm7, %v1607_v25  ;;  %5257 = vmatmul.msk.bf16.vlgmr.msrb.gmra.mxu3 %vm1552_vm7, %v1637_v26 }
 0x1e6   : > { %v1461_v37 = vpop.f32.mrf.mxu2  ;;  %v1523_v38 = vpop.f32.mrf.mxu3  ;;  %1789 = vmatpush.bf16.msra.mxu0 %v1777_v33  ;;  %1817 = vmatpush.bf16.msra.mxu1 %v1805_v34 }
 0x1e7   : > { %v1765_v39 = vpack.c.bf16 %v1461_v37, %v1461_v37  ;;  %v1767_v40 = vpack.c.bf16 %v1523_v38, %v1523_v38 }
 0x1e9   : > { %v1832_v43 = vunpack.c.l.b16 %v1765_v39  ;;  %v1860_v44 = vunpack.c.l.b16 %v1767_v40 }
 0x1eb   : > { %v1833_v45 = vpack.c.b16 %v1832_v43, %v1831_v41  ;;  %v1861_v46 = vpack.c.b16 %v1860_v44, %v1859_v42 }
 0x1ed   : > { %1845 = vmatpush.bf16.msra.mxu2 %v1833_v45  ;;  %1873 = vmatpush.bf16.msra.mxu3 %v1861_v46 }
 0x25b   : > { %v1568_v47 = vpop.f32.mrf.mxu0  ;;  %v1598_v56 = vpop.f32.mrf.mxu1 }
 0x25c   : > { %v1670_v57 = vsel %vm1663_vm8, %v1598_v56, -inf  ;;  %v1664_v58 = vsel %vm1663_vm8, %v1568_v47, -inf }
 0x263   : > { %v1570_v51 = vpop.f32.mrf.mxu0  ;;  %v1600_v59 = vpop.f32.mrf.mxu1 }
 0x264   : > { %v1667_v55 = vsel %vm1663_vm8, %v1570_v51, -inf  ;;  %v1673_v60 = vsel %vm1663_vm8, %v1600_v59, -inf }
 0x267   : > { %v1628_v48 = vpop.f32.mrf.mxu2  ;;  %v1658_v49 = vpop.f32.mrf.mxu3 }
 0x268   : > { %v1682_v27 = vsel %vm1663_vm8, %v1658_v49, -inf  ;;  %v1676_v50 = vsel %vm1663_vm8, %v1628_v48, -inf }
 0x269   : > { %1683 = vmax.xlane.f32.xlu0 %v1682_v27  ;;  %1677 = vmax.xlane.f32.xlu2 %v1676_v50 }
 0x26f   : > { %v1630_v52 = vpop.f32.mrf.mxu2  ;;  %v1660_v53 = vpop.f32.mrf.mxu3 }
 0x270   : > { %v1685_v31 = vsel %vm1663_vm8, %v1660_v53, -inf  ;;  %v1679_v54 = vsel %vm1663_vm8, %v1630_v52, -inf }
 0x271   : > { %1686 = vmax.xlane.f32.xlu1 %v1685_v31  ;;  %1680 = vmax.xlane.f32.xlu2 %v1679_v54 }
 0x272   : > { %1668 = vmax.xlane.f32.xlu0 %v1667_v55 }
 0x279   : > { %1671 = vmax.xlane.f32.xlu1 %v1670_v57  ;;  %1665 = vmax.xlane.f32.xlu2 %v1664_v58 }
 0x281   : > { %1674 = vmax.xlane.f32.xlu2 %v1673_v60 }
 0x2dc   : > { %v1684_v61 = vpop.xlane.xlu0 %1683  ;;  %v1678_v62 = vpop.xlane.xlu2 %1677 }
 0x2dd   : > { %v1694_v63 = vsub.f32 %v1658_v49, %v1684_v61  ;;  %v1692_v0 = vsub.f32 %v1628_v48, %v1678_v62 }
 0x2df   : > { %v1708_v1 = vmul.f32 1.442695, %v1694_v63  ;;  %v1704_v2 = vmul.f32 1.442695, %v1692_v0 }
 0x2e1   : > { %6683 = vpow2.f32 %v1708_v1 }
 0x2e2   : > { %6685 = vpow2.f32 %v1704_v2 }
 0x2e4   : > { %v1687_v3 = vpop.xlane.xlu1 %1686  ;;  %v1681_v4 = vpop.xlane.xlu2 %1680 }
 0x2e5   : > { %v1695_v5 = vsub.f32 %v1660_v53, %v1687_v3  ;;  %v1693_v6 = vsub.f32 %v1630_v52, %v1681_v4  ;;  %v1669_v7 = vpop.xlane.xlu0 %1668 }
 0x2e6   : > { %v1689_v8 = vsub.f32 %v1570_v51, %v1669_v7 }
 0x2e7   : > { %v6684_v9 = vpop.eup %6683  ;;  %v1710_v10 = vmul.f32 1.442695, %v1695_v5  ;;  %v1706_v11 = vmul.f32 1.442695, %v1693_v6 }
 0x2e8   : > { %v6686_v12 = vpop.eup %6685  ;;  %v1698_v13 = vmul.f32 1.442695, %v1689_v8  ;;  %v1730_v14 = vsel %vm1663_vm8, %v6684_v9, 0.0 }
 0x2e9   : > { %6687 = vpow2.f32 %v1710_v10  ;;  %1731 = vadd.xlane.f32.xlu2 %v1730_v14  ;;  %v1724_v15 = vsel %vm1663_vm8, %v6686_v12, 0.0 }
 0x2ea   : > { %6689 = vpow2.f32 %v1706_v11  ;;  %1725 = vadd.xlane.f32.xlu0 %v1724_v15 }
 0x2eb   : > { %6691 = vpow2.f32 %v1698_v13 }
 0x2ec   : > { %v1672_v16 = vpop.xlane.xlu1 %1671  ;;  %v1666_v17 = vpop.xlane.xlu2 %1665 }
 0x2ed   : > { %v1690_v18 = vsub.f32 %v1598_v56, %v1672_v16  ;;  %v1688_v19 = vsub.f32 %v1568_v47, %v1666_v17 }
 0x2ef   : > { %v6688_v20 = vpop.eup %6687  ;;  %v1700_v21 = vmul.f32 1.442695, %v1690_v18  ;;  %v1696_v22 = vmul.f32 1.442695, %v1688_v19  ;;  %v6438_v18 = vld [vmem:[%s8429_s6 + $0x58] sm:$0xff] }
 0x2f0   : > { %v6690_v23 = vpop.eup %6689  ;;  %v1733_v25 = vsel %vm1663_vm8, %v6688_v20, 0.0  ;;  %v6442_v19 = vld [vmem:[%s8429_s6 + $0x78] sm:$0xff]  ;;  %2048 = vmatpush.bf16.msrb.mxu2 %v6438_v18 }
 0x2f1   : > { %v6692_v26 = vpop.eup %6691  ;;  %6693 = vpow2.f32 %v1700_v21  ;;  %v1727_v28 = vsel %vm1663_vm8, %v6690_v23, 0.0  ;;  %2094 = vmatpush.bf16.msrb.mxu3 %v6442_v19  ;;  %v6437_v21 = vld [vmem:[%s8429_s6 + $0x50] sm:$0xff] }
 0x2f2   : > { %6695 = vpow2.f32 %v1696_v22  ;;  %1728 = vadd.xlane.f32.xlu1 %v1727_v28  ;;  %1734 = vadd.xlane.f32.xlu0 %v1733_v25  ;;  %v1715_v29 = vsel %vm1663_vm8, %v6692_v26, 0.0  ;;  %v6441_v22 = vld [vmem:[%s8429_s6 + $0x70] sm:$0xff]  ;;  %v6436_v25 = vld [vmem:[%s8429_s6 + $0x48] sm:$0xff] }
 0x2f3   : > { %1716 = vadd.xlane.f32.xlu2 %v1715_v29  ;;  %v6428_v28 = vld [vmem:[%s8429_s6 + $0x8] sm:$0xff]  ;;  %v6434_v29 = vld [vmem:[%s8429_s6 + $0x38] sm:$0xff] }
 0x2f4   : > { %v1675_v30 = vpop.xlane.xlu2 %1674  ;;  %2049 = vmatpush.bf16.msrb.mxu2 %v6437_v21  ;;  %2002 = vmatpush.bf16.msrb.mxu1 %v6434_v29 }
 0x2f5   : > { %v1691_v32 = vsub.f32 %v1600_v59, %v1675_v30  ;;  %2095 = vmatpush.bf16.msrb.mxu3 %v6441_v22  ;;  %v6435_v30 = vld [vmem:[%s8429_s6 + $0x40] sm:$0xff] }
 0x2f7   : > { %v6694_v33 = vpop.eup %6693  ;;  %v1702_v34 = vmul.f32 1.442695, %v1691_v32  ;;  %v6439_v32 = vld [vmem:[%s8429_s6 + $0x60] sm:$0xff] }
 0x2f8   : > { %v6696_v35 = vpop.eup %6695  ;;  %v1718_v36 = vsel %vm1663_vm8, %v6694_v33, 0.0  ;;  %2050 = vmatpush.bf16.msrb.mxu2 %v6436_v25 }
 0x2f9   : > { %6697 = vpow2.f32 %v1702_v34  ;;  %v1712_v37 = vsel %vm1663_vm8, %v6696_v35, 0.0  ;;  %v6433_v34 = vld [vmem:[%s8429_s6 + $0x30] sm:$0xff] }
 0x2fa   : > { %1713 = vadd.xlane.f32.xlu1 %v1712_v37  ;;  %1719 = vadd.xlane.f32.xlu0 %v1718_v36  ;;  %v6431_v36 = vld [vmem:[%s8429_s6 + $0x20] sm:$0xff] }
 0x2fb   : > { %2003 = vmatpush.bf16.msrb.mxu1 %v6433_v34 }
 0x2fc   : > { %2051 = vmatpush.bf16.msrb.mxu2 %v6435_v30  ;;  %v5388_v30 = vld [vmem:[%s8433_s10 + $0x70] sm:$0xf] }
 0x2ff   : > { %v6698_v38 = vpop.eup %6697 }
 0x300   : > { %v1721_v39 = vsel %vm1663_vm8, %v6698_v38, 0.0 }
 0x302   : > { %1722 = vadd.xlane.f32.xlu1 %v1721_v39 }
 0x35c   : > { %v1732_v40 = vpop.xlane.xlu2 %1731 }
 0x35d   : > { %v1726_v41 = vpop.xlane.xlu0 %1725 }
 0x35e   : > { %6699 = vrcp.f32 %v1726_v41 }
 0x35f   : > { %6701 = vrcp.f32 %v1732_v40 }
 0x364   : > { %v6700_v44 = vpop.eup %6699 }
 0x365   : > { %v1729_v42 = vpop.xlane.xlu1 %1728  ;;  %v1735_v43 = vpop.xlane.xlu0 %1734  ;;  %v1748_v47 = vmul.f32 %v6700_v44, %v6686_v12 }
 0x366   : > { %6703 = vrcp.f32 %v1729_v42  ;;  %v1717_v45 = vpop.xlane.xlu2 %1716  ;;  %v6702_v46 = vpop.eup %6701 }
 0x367   : > { %6705 = vrcp.f32 %v1717_v45  ;;  %v1750_v48 = vmul.f32 %v6702_v46, %v6684_v9  ;;  %v1756_v50 = vpack.c.bf16 %v1748_v47, %v1748_v47 }
 0x368   : > { %6707 = vrcp.f32 %v1735_v43 }
 0x369   : > { %v1758_v54 = vpack.c.bf16 %v1750_v48, %v1750_v48  ;;  %v1826_v57 = vunpack.c.l.b16 %v1756_v50 }
 0x36b   : > { %v1854_v61 = vunpack.c.l.b16 %v1758_v54 }
 0x36c   : > { %v6704_v49 = vpop.eup %6703 }
 0x36d   : > { %v6706_v27 = vpop.eup %6705  ;;  %v1749_v51 = vmul.f32 %v6704_v49, %v6690_v23  ;;  %v1714_v52 = vpop.xlane.xlu1 %1713  ;;  %v6429_v23 = vld [vmem:[%s8429_s6 + $0x10] sm:$0xff] }
 0x36e   : > { %v1720_v53 = vpop.xlane.xlu0 %1719  ;;  %v6708_v31 = vpop.eup %6707  ;;  %6709 = vrcp.f32 %v1714_v52  ;;  %v1745_v59 = vmul.f32 %v6706_v27, %v6692_v26  ;;  %v6440_v26 = vld [vmem:[%s8429_s6 + $0x68] sm:$0xff] }
 0x36f   : > { %v1757_v55 = vpack.c.bf16 %v1749_v51, %v1749_v51  ;;  %v1751_v56 = vmul.f32 %v6708_v31, %v6688_v20  ;;  %6711 = vrcp.f32 %v1720_v53  ;;  %v6430_v20 = vld [vmem:[%s8429_s6 + $0x18] sm:$0xff]  ;;  %2096 = vmatpush.bf16.msrb.mxu3 %v6440_v26 }
 0x370   : > { %v1753_v1 = vpack.c.bf16 %v1745_v59, %v1745_v59  ;;  %1956 = vmatpush.bf16.msrb.mxu0 %v6430_v20 }
 0x371   : > { %v1827_v58 = vunpack.c.l.b16 %v1757_v55  ;;  %v1759_v60 = vpack.c.bf16 %v1751_v56, %v1751_v56 }
 0x372   : > { %v1771_v7 = vunpack.c.l.b16 %v1753_v1 }
 0x373   : > { %v1828_v62 = vpack.c.b16 %v1827_v58, %v1826_v57  ;;  %v1855_v63 = vunpack.c.l.b16 %v1759_v60  ;;  %2097 = vmatpush.bf16.msrb.mxu3 %v6439_v32  ;;  %v6458_v32 = vld [vmem:[%s8433_s10 + $0x74] sm:$0xf0] }
 0x374   : > { %v6710_v0 = vpop.eup %6709  ;;  %1957 = vmatpush.bf16.msrb.mxu0 %v6429_v23  ;;  %v5389_v34 = vor.u32 %v6458_v32, %v5388_v30 }
 0x375   : > { %v1856_v2 = vpack.c.b16 %v1855_v63, %v1854_v61  ;;  %v1744_v3 = vmul.f32 %v6710_v0, %v6696_v35  ;;  %v1723_v4 = vpop.xlane.xlu1 %1722  ;;  %5260 = vmatmul.msk.bf16.vlgmr.msra.gmra.mxu2 %vm1663_vm8, %v1828_v62  ;;  %v6712_v5 = vpop.eup %6711  ;;  %v6432_v35 = vld [vmem:[%s8429_s6 + $0x28] sm:$0xff] }
 0x376   : > { %6713 = vrcp.f32 %v1723_v4  ;;  %v1746_v9 = vmul.f32 %v6712_v5, %v6694_v33  ;;  %v6427_v33 = vld [vmem:[%s8429_s6] sm:$0xff]  ;;  %2004 = vmatpush.bf16.msrb.mxu1 %v6432_v35  ;;  %v5390_v35 = vld [vmem:[%s8433_s10 + $0x78] sm:$0xf0] }
 0x377   : > { %v1752_v6 = vpack.c.bf16 %v1744_v3, %v1744_v3  ;;  %5261 = vmatmul.msk.bf16.vlgmr.msra.gmra.mxu3 %vm1663_vm8, %v1856_v2 }
 0x378   : > { %v1754_v12 = vpack.c.bf16 %v1746_v9, %v1746_v9  ;;  %1958 = vmatpush.bf16.msrb.mxu0 %v6428_v28 }
 0x379   : > { %v1770_v8 = vunpack.c.l.b16 %v1752_v6  ;;  %v6665_v6 = vld [vmem:[%s8430_s7] ss:$0 sm:$0xff] }
 0x37a   : > { %v1798_v15 = vunpack.c.l.b16 %v1754_v12  ;;  %2005 = vmatpush.bf16.msrb.mxu1 %v6431_v36 }
 0x37b   : > { %v1772_v10 = vpack.c.b16 %v1771_v7, %v1770_v8  ;;  %v6795_v7 = vld [vmem:[%s7003_s29] sm:$0xff] }
 0x37c   : > { %v6714_v11 = vpop.eup %6713  ;;  %1959 = vmatpush.bf16.msrb.mxu0 %v6427_v33  ;;  %v6457_v33 = vld [vmem:[%s8433_s10 + $0x74] sm:$0xf] }
 0x37d   : > { %v1747_v13 = vmul.f32 %v6714_v11, %v6698_v38  ;;  %5258 = vmatmul.msk.bf16.vlgmr.msra.gmra.mxu0 %vm1663_vm8, %v1772_v10  ;;  %v5393_v36 = vor.u32 %v6457_v33, %v5390_v35 }
 0x37f   : > { %v1755_v14 = vpack.c.bf16 %v1747_v13, %v1747_v13 }
 0x380   : > { %2273 = vmatpush.bf16.msra.mxu0 %v5389_v34 }
 0x381   : > { %v1799_v16 = vunpack.c.l.b16 %v1755_v14 }
 0x383   : > { %v1800_v17 = vpack.c.b16 %v1799_v16, %v1798_v15 }
 0x385   : > { %5259 = vmatmul.msk.bf16.vlgmr.msra.gmra.mxu1 %vm1663_vm8, %v1800_v17  ;;  %v6796_v17 = vld [vmem:[%s7003_s29 + $0x8] sm:$0xff]  ;;  %s6813_s29 = scalar_lea.hbm %s6812_s23, 16 }
 0x386   : > { %2287 = vmatpush.bf16.msra.mxu1 %v5393_v36  ;;  %p6814_p11 = scmp.ne.s32.totalorder %s6812_s23, %s6813_s29  ;;  %p6819_p1 = scmp.lt.s32.totalorder %s6817_s0, %s6813_s29 }
 0x388   : > { %p6815_p12 = pnand %p6814_p11, %p6988_p5  ;;  %p6820_p2 = por %p6819_p1, %p6818_p0 }
 0x38a   : > { %p6816_p13 = pneg %p6815_p12 }
 0x38c   : > { %p6821_p3 = pnand %p6820_p2, %p6816_p13 }
 0x3f8   : > { %v1847_v37 = vpop.f32.mrf.mxu2 }
 0x3f9   : > { %v1884_v40 = vpack.c.bf16 %v1847_v37, %v1847_v37  ;;  %v5380_v37 = vld [vmem:[%s8433_s10 + $0x60] sm:$0xf] }
 0x3fa   : > { %v1875_v38 = vpop.f32.mrf.mxu3  ;;  %v1791_v39 = vpop.f32.mrf.mxu0 }
 0x3fb   : > { %v1886_v41 = vpack.c.bf16 %v1875_v38, %v1875_v38  ;;  %v1880_v43 = vpack.c.bf16 %v1791_v39, %v1791_v39  ;;  %v2014_v47 = vunpack.c.l.b16 %v1884_v40  ;;  %v6456_v38 = vld [vmem:[%s8433_s10 + $0x64] sm:$0xf0]  ;;  %v6455_v39 = vld [vmem:[%s8433_s10 + $0x64] sm:$0xf] }
 0x3fc   : > { %v5381_v40 = vor.u32 %v6456_v38, %v5380_v37 }
 0x3fd   : > { %v2060_v51 = vunpack.c.l.b16 %v1886_v41  ;;  %v1922_v52 = vunpack.c.l.b16 %v1880_v43  ;;  %v5382_v41 = vld [vmem:[%s8433_s10 + $0x68] sm:$0xf0]  ;;  %v5372_v43 = vld [vmem:[%s8433_s10 + $0x50] sm:$0xf] }
 0x3fe   : > { %2274 = vmatpush.bf16.msra.mxu0 %v5381_v40 }
 0x400   : > { %v1849_v42 = vpop.f32.mrf.mxu2 }
 0x401   : > { %v1885_v44 = vpack.c.bf16 %v1849_v42, %v1849_v42  ;;  %v5385_v42 = vor.u32 %v6455_v39, %v5382_v41  ;;  %v6666_v39 = vld [vmem:[%s8431_s8] ss:$0 sm:$0xff] }
 0x402   : > { %v1877_v45 = vpop.f32.mrf.mxu3  ;;  %v1793_v46 = vpop.f32.mrf.mxu0 }
 0x403   : > { %v2015_v48 = vunpack.c.l.b16 %v1885_v44  ;;  %v1887_v49 = vpack.c.bf16 %v1877_v45, %v1877_v45  ;;  %v1881_v27 = vpack.c.bf16 %v1793_v46, %v1793_v46  ;;  %v1819_v50 = vpop.f32.mrf.mxu1  ;;  %2288 = vmatpush.bf16.msra.mxu1 %v5385_v42  ;;  %v6454_v44 = vld [vmem:[%s8433_s10 + $0x54] sm:$0xf0]  ;;  %v6453_v45 = vld [vmem:[%s8433_s10 + $0x54] sm:$0xf] }
 0x404   : > { %v1882_v57 = vpack.c.bf16 %v1819_v50, %v1819_v50  ;;  %v5373_v46 = vor.u32 %v6454_v44, %v5372_v43  ;;  %v6451_v50 = vld [vmem:[%s8433_s10 + $0x44] sm:$0xf]  ;;  %v6667_v44 = vld [vmem:[%s8432_s9] ss:$0 sm:$0xff] }
 0x405   : > { %v2016_v53 = vpack.c.b16 %v2015_v48, %v2014_v47  ;;  %v2061_v31 = vunpack.c.l.b16 %v1887_v49  ;;  %v1923_v54 = vunpack.c.l.b16 %v1881_v27  ;;  %v5374_v47 = vld [vmem:[%s8433_s10 + $0x58] sm:$0xf0]  ;;  %v5364_v49 = vld [vmem:[%s8433_s10 + $0x40] sm:$0xf]  ;;  %v6452_v27 = vld [vmem:[%s8433_s10 + $0x44] sm:$0xf0] }
 0x406   : > { %v1968_v60 = vunpack.c.l.b16 %v1882_v57  ;;  %v5377_v48 = vor.u32 %v6453_v45, %v5374_v47  ;;  %2275 = vmatpush.bf16.msra.mxu0 %v5373_v46  ;;  %v5358_v57 = vld [vmem:[%s8433_s10 + $0x38] sm:$0xf0] }
 0x407   : > { %v2062_v55 = vpack.c.b16 %v2061_v31, %v2060_v51  ;;  %v1924_v56 = vpack.c.b16 %v1923_v54, %v1922_v52  ;;  %5312 = vmatmul.msk.bf16.vlgmr.msrb.gmra.mxu2 %vm1552_vm7, %v2016_v53  ;;  %v5365_v51 = vor.u32 %v6452_v27, %v5364_v49  ;;  %v5366_v52 = vld [vmem:[%s8433_s10 + $0x48] sm:$0xf0]  ;;  %v5356_v31 = vld [vmem:[%s8433_s10 + $0x30] sm:$0xf]  ;;  %v6450_v54 = vld [vmem:[%s8433_s10 + $0x34] sm:$0xf0] }
 0x408   : > { %2289 = vmatpush.bf16.msra.mxu1 %v5377_v48  ;;  %v5369_v53 = vor.u32 %v6451_v50, %v5366_v52 }
 0x409   : > { %5329 = vmatmul.msk.bf16.vlgmr.msrb.gmra.mxu3 %vm1552_vm7, %v2062_v55  ;;  %5278 = vmatmul.msk.bf16.vlgmr.msrb.gmra.mxu0 %vm1552_vm7, %v1924_v56  ;;  %v6449_v55 = vld [vmem:[%s8433_s10 + $0x34] sm:$0xf]  ;;  %v5357_v56 = vor.u32 %v6450_v54, %v5356_v31 }
 0x40a   : > { %2276 = vmatpush.bf16.msra.mxu0 %v5365_v51 }
 0x40b   : > { %v1821_v58 = vpop.f32.mrf.mxu1 }
 0x40c   : > { %v1883_v59 = vpack.c.bf16 %v1821_v58, %v1821_v58  ;;  %2290 = vmatpush.bf16.msra.mxu1 %v5369_v53  ;;  %v5361_v58 = vor.u32 %v6449_v55, %v5358_v57 }
 0x40e   : > { %v1969_v61 = vunpack.c.l.b16 %v1883_v59  ;;  %2277 = vmatpush.bf16.msra.mxu0 %v5357_v56  ;;  %v5348_v59 = vld [vmem:[%s8433_s10 + $0x20] sm:$0xf] }
 0x410   : > { %v1970_v62 = vpack.c.b16 %v1969_v61, %v1968_v60  ;;  %2291 = vmatpush.bf16.msra.mxu1 %v5361_v58  ;;  %v6448_v60 = vld [vmem:[%s8433_s10 + $0x24] sm:$0xf0]  ;;  %v6447_v61 = vld [vmem:[%s8433_s10 + $0x24] sm:$0xf] }
 0x412   : > { %5295 = vmatmul.msk.bf16.vlgmr.msrb.gmra.mxu1 %vm1552_vm7, %v1970_v62  ;;  %v5349_v62 = vor.u32 %v6448_v60, %v5348_v59 }
 0x414   : > { %2278 = vmatpush.bf16.msra.mxu0 %v5349_v62 }
 0x486   : > { %v1961_v63 = vpop.f32.mrf.mxu0 }
 0x48a   : > { %v2053_v0 = vpop.f32.mrf.mxu2 }
 0x48c   : > { %v2099_v3 = vpop.f32.mrf.mxu3 }
 0x48e   : > { %v1963_v9 = vpop.f32.mrf.mxu0 }
 0x48f   : > { %v2007_v1 = vpop.f32.mrf.mxu1 }
 0x490   : > { %v2104_v2 = vadd.f32 %v2007_v1, %v1961_v63  ;;  %v5350_v63 = vld [vmem:[%s8433_s10 + $0x28] sm:$0xf0]  ;;  %v5340_v1 = vld [vmem:[%s8433_s10 + $0x10] sm:$0xf] }
 0x492   : > { %v2105_v4 = vadd.f32 %v2104_v2, %v2053_v0  ;;  %v2055_v13 = vpop.f32.mrf.mxu2  ;;  %v5353_v0 = vor.u32 %v6447_v61, %v5350_v63  ;;  %v6446_v2 = vld [vmem:[%s8433_s10 + $0x14] sm:$0xf0] }
 0x493   : > { %v6466_v63 = vld [vmem:[%s8435_s12 + $0x38] sm:$0xff] }
 0x494   : > { %v2106_v5 = vadd.f32 %v2105_v4, %v2099_v3  ;;  %v2101_v15 = vpop.f32.mrf.mxu3  ;;  %2292 = vmatpush.bf16.msra.mxu1 %v5353_v0  ;;  %v6445_v3 = vld [vmem:[%s8433_s10 + $0x14] sm:$0xf]  ;;  %v5341_v4 = vor.u32 %v6446_v2, %v5340_v1  ;;  %v6474_v0 = vld [vmem:[%s8435_s12 + $0x78] sm:$0xff]  ;;  %2595 = vmatpush.bf16.msra.mxu2 %v6466_v63 }
 0x495   : > { %2609 = vmatpush.bf16.msra.mxu3 %v6474_v0 }
 0x496   : > { %v2110_v8 = vadd.f32 %v6795_v7, %v2106_v5  ;;  %v5342_v5 = vld [vmem:[%s8433_s10 + $0x18] sm:$0xf0]  ;;  %v6444_v7 = vld [vmem:[%s8433_s10 + $0x4] sm:$0xf0]  ;;  %2279 = vmatpush.bf16.msra.mxu0 %v5341_v4  ;;  %v6473_v4 = vld [vmem:[%s8435_s12 + $0x70] sm:$0xff] }
 0x497   : > { %v2009_v10 = vpop.f32.mrf.mxu1 }
 0x498   : > { %v2107_v11 = vadd.f32 %v2009_v10, %v1963_v9  ;;  %v7423_v12 = vadd.f32 %v6665_v6, %v2110_v8  ;;  %v5345_v9 = vor.u32 %v6445_v3, %v5342_v5  ;;  %v6443_v10 = vld [vmem:[%s8433_s10 + $0x4] sm:$0xf]  ;;  %v6465_v3 = vld [vmem:[%s8435_s12 + $0x30] sm:$0xff] }
 0x499   : > { %2596 = vmatpush.bf16.msra.mxu2 %v6465_v3  ;;  %2610 = vmatpush.bf16.msra.mxu3 %v6473_v4 }
 0x49a   : > { %v2108_v14 = vadd.f32 %v2107_v11, %v2055_v13  ;;  %2120 = vadd.xlane.f32.xlu2 %v7423_v12  ;;  %v5334_v11 = vld [vmem:[%s8433_s10 + $0x8] sm:$0xf0]  ;;  %2293 = vmatpush.bf16.msra.mxu1 %v5345_v9 }
 0x49c   : > { %v2109_v16 = vadd.f32 %v2108_v14, %v2101_v15  ;;  %v5337_v15 = vor.u32 %v6443_v10, %v5334_v11 }
 0x49e   : > { %v2111_v18 = vadd.f32 %v6796_v17, %v2109_v16  ;;  %2294 = vmatpush.bf16.msra.mxu1 %v5337_v15 }
 0x4a0   : > { %v7427_v19 = vadd.f32 %v6665_v6, %v2111_v18  ;;  %v5332_v6 = vld [vmem:[%s8433_s10] sm:$0xf] }
 0x4a1   : > { %v5333_v14 = vor.u32 %v6444_v7, %v5332_v6 }
 0x4a2   : > { %2122 = vadd.xlane.f32.xlu0 %v7427_v19 }
 0x4a3   : > { %2280 = vmatpush.bf16.msra.mxu0 %v5333_v14  ;;  %v6472_v14 = vld [vmem:[%s8435_s12 + $0x68] sm:$0xff] }
 0x4a4   : > { %2611 = vmatpush.bf16.msra.mxu3 %v6472_v14 }
 0x50d   : > { %v2121_v20 = vpop.xlane.xlu2 %2120 }
 0x50e   : > { %v2124_v21 = vmul.f32 %v2121_v20, %v7055_v24 }
 0x510   : > { %v7432_v22 = vsub.f32 %v7423_v12, %v2124_v21 }
 0x512   : > { %v2128_v23 = vmul.f32 %v7432_v22, %v7432_v22 }
 0x514   : > { %2130 = vadd.xlane.f32.xlu1 %v2128_v23 }
 0x515   : > { %v2123_v25 = vpop.xlane.xlu0 %2122 }
 0x516   : > { %v2125_v26 = vmul.f32 %v2123_v25, %v7055_v24 }
 0x518   : > { %v7438_v28 = vsub.f32 %v7427_v19, %v2125_v26 }
 0x51a   : > { %v2129_v29 = vmul.f32 %v7438_v28, %v7438_v28 }
 0x51c   : > { %2132 = vadd.xlane.f32.xlu2 %v2129_v29 }
 0x587   : > { %v2131_v8 = vpop.xlane.xlu1 %2130 }
 0x588   : > { %v2134_v13 = vmul.f32 %v2131_v8, %v7055_v24 }
 0x58a   : > { %v2136_v16 = vadd.f32 1e-05, %v2134_v13  ;;  %v6464_v13 = vld [vmem:[%s8435_s12 + $0x28] sm:$0xff] }
 0x58b   : > { %2597 = vmatpush.bf16.msra.mxu2 %v6464_v13 }
 0x58c   : > { %6715 = vrsqrt.f32 %v2136_v16  ;;  %vm2144_vm10 = vweird.f32 %v2136_v16 }
 0x58f   : > { %v2133_v17 = vpop.xlane.xlu2 %2132 }
 0x590   : > { %v2135_v18 = vmul.f32 %v2133_v17, %v7055_v24 }
 0x592   : > { %v6716_v20 = vpop.eup %6715  ;;  %v2137_v21 = vadd.f32 1e-05, %v2135_v18 }
 0x593   : > { %v2139_v23 = vmul.f32 %v6716_v20, %v2136_v16  ;;  %vm2145_vm9 = vweird.f32 %v6716_v20 }
 0x594   : > { %6717 = vrsqrt.f32 %v2137_v21  ;;  %vm2146_vm11 = vmor %vm2144_vm10, %vm2145_vm9  ;;  %vm2154_vm13 = vweird.f32 %v2137_v21 }
 0x595   : > { %v2140_v25 = vmul.f32 %v6716_v20, %v2139_v23 }
 0x597   : > { %v2141_v26 = vmul.f32 0.5, %v2140_v25 }
 0x599   : > { %v2142_v29 = vsub.f32 1.5, %v2141_v26 }
 0x59a   : > { %v6718_v30 = vpop.eup %6717 }
 0x59b   : > { %v2143_v32 = vmul.f32 %v6716_v20, %v2142_v29  ;;  %v2149_v33 = vmul.f32 %v6718_v30, %v2137_v21  ;;  %vm2155_vm12 = vweird.f32 %v6718_v30 }
 0x59c   : > { %vm2156_vm14 = vmor %vm2154_vm13, %vm2155_vm12 }
 0x59d   : > { %v2150_v34 = vmul.f32 %v6718_v30, %v2149_v33  ;;  %v2147_v35 = vsel %vm2146_vm11, %v6716_v20, %v2143_v32  ;;  %v6463_v33 = vld [vmem:[%s8435_s12 + $0x20] sm:$0xff] }
 0x59e   : > { %v2158_v38 = vmul.f32 %v2147_v35, %v7432_v22  ;;  %v2187_v22 = vld [vmem:[%s8434_s11] sm:$0x3]  ;;  %2598 = vmatpush.bf16.msra.mxu2 %v6463_v33 }
 0x59f   : > { %v2151_v36 = vmul.f32 0.5, %v2150_v34  ;;  %v2189_v49 = vperm.slane %v2187_v22, 0  ;;  %v2190_v27 = vperm.slane %v2187_v22, 1  ;;  %v6471_v34 = vld [vmem:[%s8435_s12 + $0x60] sm:$0xff] }
 0x5a0   : > { %v2163_v43 = vmul.f32 %v6666_v39, %v2158_v38  ;;  %2612 = vmatpush.bf16.msra.mxu3 %v6471_v34 }
 0x5a1   : > { %v2152_v37 = vsub.f32 1.5, %v2151_v36 }
 0x5a2   : > { %v2168_v46 = vadd.f32 %v6667_v44, %v2163_v43  ;;  %v6462_v43 = vld [vmem:[%s8435_s12 + $0x18] sm:$0xff] }
 0x5a3   : > { %v2153_v40 = vmul.f32 %v6718_v30, %v2152_v37  ;;  %2599 = vmatpush.bf16.msra.mxu2 %v6462_v43 }
 0x5a5   : > { %v2157_v41 = vsel %vm2156_vm14, %v6718_v30, %v2153_v40 }
 0x5a6   : > { %v2159_v42 = vmul.f32 %v2157_v41, %v7438_v28 }
 0x5a8   : > { %v2164_v45 = vmul.f32 %v6666_v39, %v2159_v42 }
 0x5aa   : > { %v2169_v47 = vadd.f32 %v6667_v44, %v2164_v45  ;;  %v6470_v44 = vld [vmem:[%s8435_s12 + $0x58] sm:$0xff] }
 0x5ab   : > { %2613 = vmatpush.bf16.msra.mxu3 %v6470_v44 }
 0x5ac   : > { %v2170_v48 = vpack.c.bf16 %v2169_v47, %v2168_v46 }
 0x5ae   : > { %2281 = vmatmul.bf16.vlgmr.msra.gmra.mxu0 %v2170_v48  ;;  %2295 = vmatmul.bf16.vlgmr.msra.gmra.mxu1 %v2170_v48 }
 0x62b   : > { %v2282_v50 = vpop.f32.mrf.mxu0  ;;  %v2296_v51 = vpop.f32.mrf.mxu1 }
 0x62c   : > { %v7551_v28 = vadd.f32 %v2282_v50, %v2189_v49  ;;  %v7553_v52 = vadd.f32 %v2296_v51, %v2190_v27 }
 0x62e   : > { %v7556_v53 = vmul.f32 0.70710677, %v7551_v28  ;;  %v7559_v31 = vmul.f32 0.70710677, %v7553_v52 }
 0x630   : > { %v2317_v54 = vand.u32 2147483647, %v7556_v53  ;;  %v7563_v55 = vand.u32 2147483647, %v7559_v31 }
 0x632   : > { %v2321_v56 = vmul.f32 0.3275911, %v2317_v54  ;;  %v2322_v57 = vmul.f32 0.3275911, %v7563_v55  ;;  %v2425_v18 = vsub.f32 0.0, %v2317_v54  ;;  %v2426_v20 = vsub.f32 0.0, %v7563_v55 }
 0x633   : > { %v2284_v58 = vpop.f32.mrf.mxu0  ;;  %v2298_v59 = vpop.f32.mrf.mxu1 }
 0x634   : > { %v2325_v60 = vadd.f32 1.0, %v2321_v56  ;;  %v7566_v61 = vadd.f32 1.0, %v2322_v57  ;;  %v7568_v62 = vadd.f32 %v2284_v58, %v2189_v49  ;;  %v7576_v1 = vadd.f32 %v2298_v59, %v2190_v27  ;;  %v6469_v58 = vld [vmem:[%s8435_s12 + $0x50] sm:$0xff] }
 0x635   : > { %v2429_v41 = vmul.f32 %v2425_v18, %v2317_v54  ;;  %v2430_v47 = vmul.f32 %v2426_v20, %v7563_v55  ;;  %v6461_v55 = vld [vmem:[%s8435_s12 + $0x10] sm:$0xff]  ;;  %2614 = vmatpush.bf16.msra.mxu3 %v6469_v58 }
 0x636   : > { %6719 = vrcp.f32 %v2325_v60  ;;  %v7580_v2 = vmul.f32 0.70710677, %v7568_v62  ;;  %v7589_v5 = vmul.f32 0.70710677, %v7576_v1  ;;  %v2338_v23 = vand.u32 2147483647, %v2325_v60  ;;  %2600 = vmatpush.bf16.msra.mxu2 %v6461_v55 }
 0x637   : > { %6721 = vrcp.f32 %v7566_v61  ;;  %v2340_v25 = vand.u32 2147483648, %v2325_v60  ;;  %v2355_v32 = vand.u32 2147483648, %v7566_v61  ;;  %v2353_v36 = vand.u32 2147483647, %v7566_v61 }
 0x638   : > { %v7592_v6 = vand.u32 2147483647, %v7580_v2  ;;  %v7595_v8 = vand.u32 2147483647, %v7589_v5  ;;  %vm2334_vm1 = vweird.f32 %v2325_v60  ;;  %vm2349_vm3 = vweird.f32 %v7566_v61 }
 0x639   : > { %v2341_v38 = vor.u32 1.1754944e-38, %v2340_v25  ;;  %vm2339_vm4 = vcmp.eq.f32.partialorder %v2338_v23, 8.507059e+37  ;;  %v2356_v42 = vor.u32 1.1754944e-38, %v2355_v32  ;;  %vm2354_vm6 = vcmp.eq.f32.partialorder %v2353_v36, 8.507059e+37  ;;  %v6467_v32 = vld [vmem:[%s8435_s12 + $0x40] sm:$0xff] }
 0x63a   : > { %v2323_v11 = vmul.f32 0.3275911, %v7592_v6  ;;  %v2324_v16 = vmul.f32 0.3275911, %v7595_v8  ;;  %v2433_v56 = vmul.f32 1.442695, %v2429_v41 }
 0x63b   : > { %v2427_v20 = vsub.f32 0.0, %v7592_v6 }
 0x63c   : > { %v6720_v7 = vpop.eup %6719  ;;  %v7607_v21 = vadd.f32 1.0, %v2323_v11  ;;  %v7609_v29 = vadd.f32 1.0, %v2324_v16  ;;  %v6468_v16 = vld [vmem:[%s8435_s12 + $0x48] sm:$0xff] }
 0x63d   : > { %v6722_v9 = vpop.eup %6721  ;;  %v2330_v10 = vmul.f32 %v6720_v7, %v2325_v60  ;;  %vm2335_vm15 = vweird.f32 %v6720_v7  ;;  %v2435_v60 = vmul.f32 1.442695, %v2430_v47  ;;  %2615 = vmatpush.bf16.msra.mxu3 %v6468_v16  ;;  %v2431_v47 = vmul.f32 %v2427_v20, %v7592_v6 }
 0x63e   : > { %v2345_v15 = vmul.f32 %v6722_v9, %v7566_v61  ;;  %6723 = vrcp.f32 %v7607_v21  ;;  %vm2350_vm0 = vweird.f32 %v6722_v9  ;;  %vm2336_vm2 = vmor %vm2334_vm1, %vm2335_vm15  ;;  %v2368_v0 = vand.u32 2147483647, %v7607_v21 }
 0x63f   : > { %v2331_v17 = vsub.f32 1.0, %v2330_v10  ;;  %6725 = vrcp.f32 %v7609_v29  ;;  %vm2351_vm5 = vmor %vm2349_vm3, %vm2350_vm0  ;;  %v2370_v3 = vand.u32 2147483648, %v7607_v21  ;;  %v2385_v10 = vand.u32 2147483648, %v7609_v29 }
 0x640   : > { %v2346_v26 = vsub.f32 1.0, %v2345_v15  ;;  %v2383_v14 = vand.u32 2147483647, %v7609_v29  ;;  %v6460_v15 = vld [vmem:[%s8435_s12 + $0x8] sm:$0xff]  ;;  %vm2364_vm11 = vweird.f32 %v7607_v21  ;;  %vm2379_vm13 = vweird.f32 %v7609_v29 }
 0x641   : > { %v2332_v30 = vmul.f32 %v6720_v7, %v2331_v17  ;;  %v2371_v25 = vor.u32 1.1754944e-38, %v2370_v3  ;;  %2601 = vmatpush.bf16.msra.mxu2 %v6460_v15  ;;  %vm2369_vm14 = vcmp.eq.f32.partialorder %v2368_v0, 8.507059e+37  ;;  %v2386_v34 = vor.u32 1.1754944e-38, %v2385_v10  ;;  %2616 = vmatpush.bf16.msra.mxu3 %v6467_v32 }
 0x642   : > { %v2347_v35 = vmul.f32 %v6722_v9, %v2346_v26  ;;  %vm2384_vm0 = vcmp.eq.f32.partialorder %v2383_v14, 8.507059e+37  ;;  %6727 = vpow2.f32 %v2433_v56  ;;  %v2437_v58 = vmul.f32 1.442695, %v2431_v47 }
 0x643   : > { %v2333_v37 = vadd.f32 %v6720_v7, %v2332_v30  ;;  %v6459_v30 = vld [vmem:[%s8435_s12] sm:$0xff]  ;;  %6729 = vpow2.f32 %v2435_v60  ;;  %vm2309_vm1 = vcmp.ge.f32.partialorder %v7556_v53, 0.0  ;;  %v6862_v15 = vmov -1.0  }
 0x644   : > { %v2348_v39 = vadd.f32 %v6722_v9, %v2347_v35  ;;  %v6724_v48 = vpop.eup %6723  ;;  %6731 = vpow2.f32 %v2437_v58  ;;  %v2313_v16 = vsel %vm2309_vm1, 1.0, %v6862_v15  ;;  %vm2311_vm3 = vcmp.ge.f32.partialorder %v7580_v2, 0.0  ;;  %v6506_v58 = vld [vmem:[%s8426_s3 + $0x1f8] sm:$0xff] }
 0x645   : > { %v2337_v40 = vsel %vm2336_vm2, %v6720_v7, %v2333_v37  ;;  %v6726_v27 = vpop.eup %6725  ;;  %v2360_v51 = vmul.f32 %v6724_v48, %v7607_v21  ;;  %vm2365_vm9 = vweird.f32 %v6724_v48  ;;  %2602 = vmatpush.bf16.msra.mxu2 %v6459_v30  ;;  %vm2310_vm2 = vcmp.ge.f32.partialorder %v7559_v31, 0.0  ;;  %2986 = vmatpush.bf16.msrb.mxu3 %v6506_v58  ;;  %v6509_v58 = vld [vmem:[%s8427_s4 + $0x110] sm:$0xff] }
 0x646   : > { %v7628_v45 = vsel %vm2339_vm4, %v2341_v38, %v2337_v40  ;;  %v2352_v46 = vsel %vm2351_vm5, %v6722_v9, %v2348_v39  ;;  %v2375_v57 = vmul.f32 %v6726_v27, %v7609_v29  ;;  %vm2380_vm10 = vweird.f32 %v6726_v27  ;;  %vm2366_vm12 = vmor %vm2364_vm11, %vm2365_vm9 }
 0x647   : > { %v2389_v22 = vmul.f32 1.0614054, %v7628_v45  ;;  %v7632_v49 = vsel %vm2354_vm6, %v2356_v42, %v2352_v46  ;;  %v2361_v61 = vsub.f32 1.0, %v2360_v51  ;;  %vm2381_vm15 = vmor %vm2379_vm13, %vm2380_vm10  ;;  %v2428_v40 = vsub.f32 0.0, %v7595_v8 }
 0x648   : > { %v2390_v50 = vmul.f32 1.0614054, %v7632_v49  ;;  %v2376_v4 = vsub.f32 1.0, %v2375_v57  ;;  %v6728_v0 = vpop.eup %6727  ;;  %vm2312_vm4 = vcmp.ge.f32.partialorder %v7589_v5, 0.0  ;;  %v2315_v30 = vsel %vm2311_vm3, 1.0, %v6862_v15 }
 0x649   : > { %v2393_v54 = vadd.f32 -1.4531521, %v2389_v22  ;;  %v2362_v9 = vmul.f32 %v6724_v48, %v2361_v61  ;;  %v6730_v3 = vpop.eup %6729  ;;  %v2304_v5 = vmul.f32 0.5, %v7576_v1 }
 0x64a   : > { %v2394_v59 = vadd.f32 -1.4531521, %v2390_v50  ;;  %v2377_v13 = vmul.f32 %v6726_v27, %v2376_v4  ;;  %v2432_v50 = vmul.f32 %v2428_v40, %v7595_v8  ;;  %v6732_v14 = vpop.eup %6731 }
 0x64b   : > { %v2397_v63 = vmul.f32 %v2393_v54, %v7628_v45  ;;  %v2363_v18 = vadd.f32 %v6724_v48, %v2362_v9 }
 0x64c   : > { %v2398_v7 = vmul.f32 %v2394_v59, %v7632_v49  ;;  %v2378_v26 = vadd.f32 %v6726_v27, %v2377_v13 }
 0x64d   : > { %v2401_v11 = vadd.f32 1.4214138, %v2397_v63  ;;  %v2367_v33 = vsel %vm2366_vm12, %v6724_v48, %v2363_v18  ;;  %v2439_v63 = vmul.f32 1.442695, %v2432_v50 }
 0x64e   : > { %v2402_v17 = vadd.f32 1.4214138, %v2398_v7  ;;  %v2372_v36 = vsel %vm2369_vm14, %v2371_v25, %v2367_v33  ;;  %v2382_v29 = vsel %vm2381_vm15, %v6726_v27, %v2378_v26 }
 0x64f   : > { %v2405_v23 = vmul.f32 %v2401_v11, %v7628_v45  ;;  %v2391_v38 = vmul.f32 1.0614054, %v2372_v36  ;;  %v2387_v39 = vsel %vm2384_vm0, %v2386_v34, %v2382_v29  ;;  %6733 = vpow2.f32 %v2439_v63  ;;  %v6505_v63 = vld [vmem:[%s8426_s3 + $0x1f0] sm:$0xff] }
 0x650   : > { %v2406_v21 = vmul.f32 %v2402_v17, %v7632_v49  ;;  %v2392_v42 = vmul.f32 1.0614054, %v2387_v39  ;;  %v2316_v34 = vsel %vm2312_vm4, 1.0, %v6862_v15  ;;  %v2301_v29 = vmul.f32 0.5, %v7551_v28  ;;  %v6668_v28 = vld [vmem:[%s8436_s13] ss:$0 sm:$0xff]  ;;  %2987 = vmatpush.bf16.msrb.mxu3 %v6505_v63 }
 0x651   : > { %v2409_v35 = vadd.f32 -0.28449672, %v2405_v23  ;;  %v2395_v44 = vadd.f32 -1.4531521, %v2391_v38  ;;  %v2314_v23 = vsel %vm2310_vm2, 1.0, %v6862_v15  ;;  %v2302_v38 = vmul.f32 0.5, %v7553_v52 }
 0x652   : > { %v2410_v37 = vadd.f32 -0.28449672, %v2406_v21  ;;  %v2396_v48 = vadd.f32 -1.4531521, %v2392_v42  ;;  %v6533_v63 = vld [vmem:[%s8427_s4 + $0x1d0] sm:$0xff] }
 0x653   : > { %v2413_v41 = vmul.f32 %v2409_v35, %v7628_v45  ;;  %v2399_v27 = vmul.f32 %v2395_v44, %v2372_v36 }
 0x654   : > { %v2414_v43 = vmul.f32 %v2410_v37, %v7632_v49  ;;  %v2400_v51 = vmul.f32 %v2396_v48, %v2387_v39  ;;  %v2303_v37 = vmul.f32 0.5, %v7568_v62 }
 0x655   : > { %v2417_v46 = vadd.f32 0.2548296, %v2413_v41  ;;  %v2403_v57 = vadd.f32 1.4214138, %v2399_v27  ;;  %v6734_v18 = vpop.eup %6733 }
 0x656   : > { %v2418_v22 = vadd.f32 0.2548296, %v2414_v43  ;;  %v2404_v59 = vadd.f32 1.4214138, %v2400_v51 }
 0x657   : > { %v2421_v54 = vmul.f32 %v2417_v46, %v7628_v45  ;;  %v2407_v61 = vmul.f32 %v2403_v57, %v2372_v36  ;;  %v6482_v57 = vld [vmem:[%s8426_s3 + $0x138] sm:$0xff] }
 0x658   : > { %v2422_v55 = vmul.f32 %v2418_v22, %v7632_v49  ;;  %v2408_v56 = vmul.f32 %v2404_v59, %v2387_v39  ;;  %2800 = vmatpush.bf16.msrb.mxu0 %v6482_v57  ;;  %v6489_v59 = vld [vmem:[%s8426_s3 + $0x170] sm:$0xff]  ;;  %v6518_v57 = vld [vmem:[%s8427_s4 + $0x158] sm:$0xff] }
 0x659   : > { %v2441_v6 = vmul.f32 %v6728_v0, %v2421_v54  ;;  %v2411_v4 = vadd.f32 -0.28449672, %v2407_v61  ;;  %v6497_v61 = vld [vmem:[%s8426_s3 + $0x1b0] sm:$0xff]  ;;  %v6480_v0 = vld [vmem:[%s8426_s3 + $0x128] sm:$0xff] }
 0x65a   : > { %v2442_v7 = vmul.f32 %v6730_v3, %v2422_v55  ;;  %v2412_v60 = vadd.f32 -0.28449672, %v2408_v56  ;;  %v6498_v55 = vld [vmem:[%s8426_s3 + $0x1b8] sm:$0xff]  ;;  %v6488_v56 = vld [vmem:[%s8426_s3 + $0x168] sm:$0xff] }
 0x65b   : > { %v2415_v9 = vmul.f32 %v2411_v4, %v2372_v36  ;;  %v2445_v45 = vsub.f32 1.0, %v2441_v6  ;;  %2924 = vmatpush.bf16.msrb.mxu2 %v6498_v55  ;;  %v6496_v3 = vld [vmem:[%s8426_s3 + $0x1a8] sm:$0xff]  ;;  %v6479_v4 = vld [vmem:[%s8426_s3 + $0x120] sm:$0xff]  ;;  %v6534_v55 = vld [vmem:[%s8427_s4 + $0x1d8] sm:$0xff] }
 0x65c   : > { %v2416_v8 = vmul.f32 %v2412_v60, %v2387_v39  ;;  %v2446_v49 = vsub.f32 1.0, %v2442_v7  ;;  %v6504_v6 = vld [vmem:[%s8426_s3 + $0x1e8] sm:$0xff]  ;;  %v6487_v7 = vld [vmem:[%s8426_s3 + $0x160] sm:$0xff] }
 0x65d   : > { %v2419_v10 = vadd.f32 0.2548296, %v2415_v9  ;;  %v2449_v20 = vmul.f32 %v2445_v45, %v2313_v16  ;;  %2988 = vmatpush.bf16.msrb.mxu3 %v6504_v6  ;;  %v6495_v60 = vld [vmem:[%s8426_s3 + $0x1a0] sm:$0xff] }
 0x65e   : > { %v2420_v11 = vadd.f32 0.2548296, %v2416_v8  ;;  %v2450_v53 = vmul.f32 %v2446_v49, %v2314_v23  ;;  %v6503_v9 = vld [vmem:[%s8426_s3 + $0x1e0] sm:$0xff]  ;;  %v6502_v23 = vld [vmem:[%s8426_s3 + $0x1d8] sm:$0xff] }
 0x65f   : > { %v2423_v13 = vmul.f32 %v2419_v10, %v2372_v36  ;;  %v2453_v21 = vadd.f32 1.0, %v2449_v20  ;;  %2925 = vmatpush.bf16.msrb.mxu2 %v6497_v61  ;;  %v6494_v20 = vld [vmem:[%s8426_s3 + $0x198] sm:$0xff] }
 0x660   : > { %v2424_v17 = vmul.f32 %v2420_v11, %v2387_v39  ;;  %v2454_v35 = vadd.f32 1.0, %v2450_v53  ;;  %v6485_v53 = vld [vmem:[%s8426_s3 + $0x150] sm:$0xff] }
 0x661   : > { %v2443_v25 = vmul.f32 %v6732_v14, %v2423_v13  ;;  %v2457_v40 = vmul.f32 %v2453_v21, %v2301_v29  ;;  %2989 = vmatpush.bf16.msrb.mxu3 %v6503_v9  ;;  %v6492_v21 = vld [vmem:[%s8426_s3 + $0x188] sm:$0xff]  ;;  %v6499_v29 = vld [vmem:[%s8426_s3 + $0x1c0] sm:$0xff] }
 0x662   : > { %v2444_v26 = vmul.f32 %v6734_v18, %v2424_v17  ;;  %v2458_v42 = vmul.f32 %v2454_v35, %v2302_v38  ;;  %v6478_v17 = vld [vmem:[%s8426_s3 + $0x118] sm:$0xff]  ;;  %v6483_v35 = vld [vmem:[%s8426_s3 + $0x140] sm:$0xff] }
 0x663   : > { %v2447_v31 = vsub.f32 1.0, %v2443_v25  ;;  %2926 = vmatpush.bf16.msrb.mxu2 %v6496_v3  ;;  %v6486_v18 = vld [vmem:[%s8426_s3 + $0x158] sm:$0xff]  ;;  %v6477_v25 = vld [vmem:[%s8426_s3 + $0x110] sm:$0xff]  ;;  %v6516_v3 = vld [vmem:[%s8427_s4 + $0x148] sm:$0xff] }
 0x664   : > { %v2448_v32 = vsub.f32 1.0, %v2444_v26  ;;  %v6493_v26 = vld [vmem:[%s8426_s3 + $0x190] sm:$0xff]  ;;  %v6530_v38 = vld [vmem:[%s8427_s4 + $0x1b8] sm:$0xff] }
 0x665   : > { %v2451_v33 = vmul.f32 %v2447_v31, %v2315_v30  ;;  %2990 = vmatpush.bf16.msrb.mxu3 %v6502_v23  ;;  %v6501_v31 = vld [vmem:[%s8426_s3 + $0x1d0] sm:$0xff]  ;;  %v6476_v30 = vld [vmem:[%s8426_s3 + $0x108] sm:$0xff] }
 0x666   : > { %v2452_v36 = vmul.f32 %v2448_v32, %v2316_v34  ;;  %v6484_v32 = vld [vmem:[%s8426_s3 + $0x148] sm:$0xff]  ;;  %v6475_v34 = vld [vmem:[%s8426_s3 + $0x100] sm:$0xff] }
 0x667   : > { %v2455_v2 = vadd.f32 1.0, %v2451_v33  ;;  %2927 = vmatpush.bf16.msrb.mxu2 %v6495_v60  ;;  %v6500_v33 = vld [vmem:[%s8426_s3 + $0x1c8] sm:$0xff] }
 0x668   : > { %v2456_v39 = vadd.f32 1.0, %v2452_v36  ;;  %v6491_v36 = vld [vmem:[%s8426_s3 + $0x180] sm:$0xff]  ;;  %v6532_v60 = vld [vmem:[%s8427_s4 + $0x1c8] sm:$0xff] }
 0x669   : > { %v2459_v41 = vmul.f32 %v2455_v2, %v2303_v37  ;;  %2991 = vmatpush.bf16.msrb.mxu3 %v6501_v31  ;;  %v6514_v37 = vld [vmem:[%s8427_s4 + $0x138] sm:$0xff] }
 0x66a   : > { %v2460_v43 = vmul.f32 %v2456_v39, %v2304_v5  ;;  %v6522_v2 = vld [vmem:[%s8427_s4 + $0x178] sm:$0xff]  ;;  %v6513_v39 = vld [vmem:[%s8427_s4 + $0x130] sm:$0xff] }
 0x66b   : > { %v2461_v44 = vpack.c.bf16 %v2459_v41, %v2457_v40  ;;  %2928 = vmatpush.bf16.msrb.mxu2 %v6494_v20  ;;  %v6538_v5 = vld [vmem:[%s8427_s4 + $0x1f8] sm:$0xff]  ;;  %v6521_v40 = vld [vmem:[%s8427_s4 + $0x170] sm:$0xff] }
 0x66c   : > { %v2462_v46 = vpack.c.bf16 %v2460_v43, %v2458_v42  ;;  %v6529_v41 = vld [vmem:[%s8427_s4 + $0x1b0] sm:$0xff]  ;;  %v6512_v43 = vld [vmem:[%s8427_s4 + $0x128] sm:$0xff] }
 0x66d   : > { %2603 = vmatmul.bf16.vlgmr.msra.gmra.mxu2 %v2461_v44  ;;  %2992 = vmatpush.bf16.msrb.mxu3 %v6500_v33  ;;  %v6537_v42 = vld [vmem:[%s8427_s4 + $0x1f0] sm:$0xff]  ;;  %v6520_v44 = vld [vmem:[%s8427_s4 + $0x168] sm:$0xff] }
 0x66e   : > { %2617 = vmatmul.bf16.vlgmr.msra.gmra.mxu3 %v2462_v46  ;;  %v6528_v46 = vld [vmem:[%s8427_s4 + $0x1a8] sm:$0xff] }
 0x66f   : > { %2929 = vmatpush.bf16.msrb.mxu2 %v6493_v26  ;;  %v6669_v26 = vld [vmem:[%s8461_s1 + $0x1] ss:$0 sm:$0xff] }
 0x671   : > { %2993 = vmatpush.bf16.msrb.mxu3 %v6499_v29 }
 0x673   : > { %2930 = vmatpush.bf16.msrb.mxu2 %v6492_v21  ;;  %v6670_v21 = vld [vmem:[%s8462_s2 + $0x1] ss:$0 sm:$0xff] }
 0x675   : > { %3299 = vmatpush.bf16.msra.mxu3 %v6538_v5 }
 0x677   : > { %2931 = vmatpush.bf16.msrb.mxu2 %v6491_v36 }
 0x679   : > { %3300 = vmatpush.bf16.msra.mxu3 %v6537_v42  ;;  %v6554_v42 = vld [vmem:[%s8428_s5 + $0x178] sm:$0xff] }
 0x67b   : > { %3237 = vmatpush.bf16.msra.mxu2 %v6530_v38 }
 0x67f   : > { %3238 = vmatpush.bf16.msra.mxu2 %v6529_v41  ;;  %v6546_v41 = vld [vmem:[%s8428_s5 + $0x138] sm:$0xff] }
 0x683   : > { %3239 = vmatpush.bf16.msra.mxu2 %v6528_v46  ;;  %v6553_v46 = vld [vmem:[%s8428_s5 + $0x170] sm:$0xff] }
 0x6f0   : > { %v2604_v47 = vpop.f32.mrf.mxu2 }
 0x6f1   : > { %v2605_v62 = vadd.f32 %v6668_v28, %v2604_v47  ;;  %v2618_v48 = vpop.f32.mrf.mxu3  ;;  %v6511_v47 = vld [vmem:[%s8427_s4 + $0x120] sm:$0xff] }
 0x6f3   : > { %v2619_v22 = vadd.f32 %v2618_v48, %v2605_v62  ;;  %v6519_v62 = vld [vmem:[%s8427_s4 + $0x160] sm:$0xff] }
 0x6f4   : > { %v6527_v48 = vld [vmem:[%s8427_s4 + $0x1a0] sm:$0xff] }
 0x6f5   : > { %v7690_v52 = vadd.f32 %v2619_v22, %v7423_v12  ;;  %v6490_v12 = vld [vmem:[%s8426_s3 + $0x178] sm:$0xff]  ;;  %3240 = vmatpush.bf16.msra.mxu2 %v6527_v48  ;;  %v6552_v48 = vld [vmem:[%s8428_s5 + $0x168] sm:$0xff] }
 0x6f6   : > { %2862 = vmatpush.bf16.msrb.mxu1 %v6490_v12  ;;  %v6526_v12 = vld [vmem:[%s8427_s4 + $0x198] sm:$0xff] }
 0x6f7   : > { %2629 = vadd.xlane.f32.xlu0 %v7690_v52 }
 0x6f8   : > { %v2606_v1 = vpop.f32.mrf.mxu2 }
 0x6f9   : > { %v2607_v27 = vadd.f32 %v6668_v28, %v2606_v1  ;;  %v2620_v50 = vpop.f32.mrf.mxu3  ;;  %v6536_v28 = vld [vmem:[%s8427_s4 + $0x1e8] sm:$0xff]  ;;  %v6535_v1 = vld [vmem:[%s8427_s4 + $0x1e0] sm:$0xff]  ;;  %3241 = vmatpush.bf16.msra.mxu2 %v6526_v12  ;;  %v6542_v12 = vld [vmem:[%s8428_s5 + $0x118] sm:$0xff] }
 0x6fa   : > { %2863 = vmatpush.bf16.msrb.mxu1 %v6489_v59  ;;  %3301 = vmatpush.bf16.msra.mxu3 %v6536_v28  ;;  %v6525_v59 = vld [vmem:[%s8427_s4 + $0x190] sm:$0xff] }
 0x6fb   : > { %v2621_v51 = vadd.f32 %v2620_v50, %v2607_v27  ;;  %v6561_v28 = vld [vmem:[%s8428_s5 + $0x1b0] sm:$0xff] }
 0x6fd   : > { %v7694_v54 = vadd.f32 %v2621_v51, %v7427_v19  ;;  %v6481_v19 = vld [vmem:[%s8426_s3 + $0x130] sm:$0xff]  ;;  %v6510_v51 = vld [vmem:[%s8427_s4 + $0x118] sm:$0xff]  ;;  %3242 = vmatpush.bf16.msra.mxu2 %v6525_v59 }
 0x6fe   : > { %2801 = vmatpush.bf16.msrb.mxu0 %v6481_v19  ;;  %2864 = vmatpush.bf16.msrb.mxu1 %v6488_v56  ;;  %v6517_v19 = vld [vmem:[%s8427_s4 + $0x150] sm:$0xff]  ;;  %v6508_v56 = vld [vmem:[%s8427_s4 + $0x108] sm:$0xff] }
 0x6ff   : > { %2631 = vadd.xlane.f32.xlu1 %v7694_v54  ;;  %3302 = vmatpush.bf16.msra.mxu3 %v6535_v1  ;;  %v6568_v1 = vld [vmem:[%s8428_s5 + $0x1e8] sm:$0xff]  ;;  %v6541_v59 = vld [vmem:[%s8428_s5 + $0x110] sm:$0xff] }
 0x702   : > { %2802 = vmatpush.bf16.msrb.mxu0 %v6480_v0  ;;  %2865 = vmatpush.bf16.msrb.mxu1 %v6487_v7  ;;  %v6524_v7 = vld [vmem:[%s8427_s4 + $0x188] sm:$0xff] }
 0x703   : > { %3303 = vmatpush.bf16.msra.mxu3 %v6534_v55  ;;  %3243 = vmatpush.bf16.msra.mxu2 %v6524_v7  ;;  %v6550_v55 = vld [vmem:[%s8428_s5 + $0x158] sm:$0xff]  ;;  %v6539_v7 = vld [vmem:[%s8428_s5 + $0x100] sm:$0xff] }
 0x706   : > { %2803 = vmatpush.bf16.msrb.mxu0 %v6479_v4  ;;  %2866 = vmatpush.bf16.msrb.mxu1 %v6486_v18 }
 0x707   : > { %3304 = vmatpush.bf16.msra.mxu3 %v6533_v63  ;;  %v6557_v63 = vld [vmem:[%s8428_s5 + $0x190] sm:$0xff] }
 0x70a   : > { %2804 = vmatpush.bf16.msrb.mxu0 %v6478_v17  ;;  %2867 = vmatpush.bf16.msrb.mxu1 %v6485_v53 }
 0x70b   : > { %3305 = vmatpush.bf16.msra.mxu3 %v6532_v60  ;;  %v6547_v60 = vld [vmem:[%s8428_s5 + $0x140] sm:$0xff] }
 0x70e   : > { %2805 = vmatpush.bf16.msrb.mxu0 %v6477_v25  ;;  %2868 = vmatpush.bf16.msrb.mxu1 %v6484_v32 }
 0x712   : > { %2806 = vmatpush.bf16.msrb.mxu0 %v6476_v30  ;;  %2869 = vmatpush.bf16.msrb.mxu1 %v6483_v35 }
 0x716   : > { %2807 = vmatpush.bf16.msrb.mxu0 %v6475_v34  ;;  %3175 = vmatpush.bf16.msra.mxu1 %v6522_v2 }
 0x71a   : > { %3113 = vmatpush.bf16.msra.mxu0 %v6514_v37  ;;  %3176 = vmatpush.bf16.msra.mxu1 %v6521_v40 }
 0x71e   : > { %3114 = vmatpush.bf16.msra.mxu0 %v6513_v39  ;;  %3177 = vmatpush.bf16.msra.mxu1 %v6520_v44  ;;  %v6545_v44 = vld [vmem:[%s8428_s5 + $0x130] sm:$0xff] }
 0x722   : > { %3115 = vmatpush.bf16.msra.mxu0 %v6512_v43  ;;  %3178 = vmatpush.bf16.msra.mxu1 %v6519_v62  ;;  %v6570_v43 = vld [vmem:[%s8428_s5 + $0x1f8] sm:$0xff]  ;;  %v6544_v62 = vld [vmem:[%s8428_s5 + $0x128] sm:$0xff] }
 0x726   : > { %3116 = vmatpush.bf16.msra.mxu0 %v6511_v47  ;;  %3179 = vmatpush.bf16.msra.mxu1 %v6518_v57  ;;  %v6569_v47 = vld [vmem:[%s8428_s5 + $0x1f0] sm:$0xff]  ;;  %v6567_v57 = vld [vmem:[%s8428_s5 + $0x1e0] sm:$0xff] }
 0x72a   : > { %3117 = vmatpush.bf16.msra.mxu0 %v6510_v51  ;;  %3180 = vmatpush.bf16.msra.mxu1 %v6517_v19  ;;  %v6559_v51 = vld [vmem:[%s8428_s5 + $0x1a0] sm:$0xff]  ;;  %v6566_v19 = vld [vmem:[%s8428_s5 + $0x1d8] sm:$0xff] }
 0x72e   : > { %3118 = vmatpush.bf16.msra.mxu0 %v6509_v58  ;;  %3181 = vmatpush.bf16.msra.mxu1 %v6516_v3  ;;  %v6558_v58 = vld [vmem:[%s8428_s5 + $0x198] sm:$0xff]  ;;  %v6548_v3 = vld [vmem:[%s8428_s5 + $0x148] sm:$0xff] }
 0x732   : > { %3119 = vmatpush.bf16.msra.mxu0 %v6508_v56  ;;  %v6540_v56 = vld [vmem:[%s8428_s5 + $0x108] sm:$0xff] }
 0x76a   : > { %v2630_v8 = vpop.xlane.xlu0 %2629 }
 0x76b   : > { %v2633_v45 = vmul.f32 %v2630_v8, %v7055_v24 }
 0x76d   : > { %v7747_v10 = vsub.f32 %v7690_v52, %v2633_v45  ;;  %v6507_v45 = vld [vmem:[%s8427_s4 + $0x100] sm:$0xff] }
 0x76e   : > { %3120 = vmatpush.bf16.msra.mxu0 %v6507_v45 }
 0x76f   : > { %v2637_v49 = vmul.f32 %v7747_v10, %v7747_v10 }
 0x771   : > { %2639 = vadd.xlane.f32.xlu2 %v2637_v49  ;;  %v6515_v49 = vld [vmem:[%s8427_s4 + $0x140] sm:$0xff] }
 0x772   : > { %v2632_v11 = vpop.xlane.xlu1 %2631  ;;  %3182 = vmatpush.bf16.msra.mxu1 %v6515_v49 }
 0x773   : > { %v2634_v13 = vmul.f32 %v2632_v11, %v7055_v24  ;;  %v6523_v11 = vld [vmem:[%s8427_s4 + $0x180] sm:$0xff] }
 0x774   : > { %3244 = vmatpush.bf16.msra.mxu2 %v6523_v11 }
 0x775   : > { %v7753_v14 = vsub.f32 %v7694_v54, %v2634_v13  ;;  %v6531_v13 = vld [vmem:[%s8427_s4 + $0x1c0] sm:$0xff] }
 0x776   : > { %3306 = vmatpush.bf16.msra.mxu3 %v6531_v13 }
 0x777   : > { %v2638_v16 = vmul.f32 %v7753_v14, %v7753_v14 }
 0x779   : > { %2641 = vadd.xlane.f32.xlu0 %v2638_v16 }
 0x7e4   : > { %v2640_v22 = vpop.xlane.xlu2 %2639 }
 0x7e5   : > { %v2643_v27 = vmul.f32 %v2640_v22, %v7055_v24  ;;  %v6560_v22 = vld [vmem:[%s8428_s5 + $0x1a8] sm:$0xff] }
 0x7e7   : > { %v2645_v50 = vadd.f32 1e-05, %v2643_v27  ;;  %v6543_v27 = vld [vmem:[%s8428_s5 + $0x120] sm:$0xff] }
 0x7e9   : > { %6735 = vrsqrt.f32 %v2645_v50  ;;  %vm2653_vm6 = vweird.f32 %v2645_v50 }
 0x7ec   : > { %v2642_v61 = vpop.xlane.xlu0 %2641 }
 0x7ed   : > { %v2644_v0 = vmul.f32 %v2642_v61, %v7055_v24  ;;  %v6549_v61 = vld [vmem:[%s8428_s5 + $0x150] sm:$0xff] }
 0x7ef   : > { %v6736_v6 = vpop.eup %6735  ;;  %v2646_v4 = vadd.f32 1e-05, %v2644_v0  ;;  %v6565_v0 = vld [vmem:[%s8428_s5 + $0x1d0] sm:$0xff] }
 0x7f0   : > { %v2648_v9 = vmul.f32 %v6736_v6, %v2645_v50  ;;  %vm2654_vm5 = vweird.f32 %v6736_v6  ;;  %v6551_v50 = vld [vmem:[%s8428_s5 + $0x160] sm:$0xff] }
 0x7f1   : > { %6737 = vrsqrt.f32 %v2646_v4  ;;  %vm2655_vm9 = vmor %vm2653_vm6, %vm2654_vm5  ;;  %vm2663_vm11 = vweird.f32 %v2646_v4 }
 0x7f2   : > { %v2649_v8 = vmul.f32 %v6736_v6, %v2648_v9  ;;  %v6555_v9 = vld [vmem:[%s8428_s5 + $0x180] sm:$0xff] }
 0x7f4   : > { %v2650_v16 = vmul.f32 0.5, %v2649_v8  ;;  %v6563_v8 = vld [vmem:[%s8428_s5 + $0x1c0] sm:$0xff] }
 0x7f6   : > { %v2651_v17 = vsub.f32 1.5, %v2650_v16 }
 0x7f7   : > { %v6738_v18 = vpop.eup %6737 }
 0x7f8   : > { %v2652_v20 = vmul.f32 %v6736_v6, %v2651_v17  ;;  %v2658_v23 = vmul.f32 %v6738_v18, %v2646_v4  ;;  %vm2664_vm10 = vweird.f32 %v6738_v18  ;;  %v6564_v4 = vld [vmem:[%s8428_s5 + $0x1c8] sm:$0xff] }
 0x7f9   : > { %vm2665_vm12 = vmor %vm2663_vm11, %vm2664_vm10 }
 0x7fa   : > { %v2656_v25 = vsel %vm2655_vm9, %v6736_v6, %v2652_v20  ;;  %v2659_v53 = vmul.f32 %v6738_v18, %v2658_v23  ;;  %v6556_v6 = vld [vmem:[%s8428_s5 + $0x188] sm:$0xff] }
 0x7fb   : > { %v2667_v31 = vmul.f32 %v2656_v25, %v7747_v10 }
 0x7fc   : > { %v2660_v30 = vmul.f32 0.5, %v2659_v53 }
 0x7fd   : > { %v2672_v33 = vmul.f32 %v6669_v26, %v2667_v31 }
 0x7fe   : > { %v2661_v32 = vsub.f32 1.5, %v2660_v30 }
 0x7ff   : > { %v2677_v36 = vadd.f32 %v6670_v21, %v2672_v33 }
 0x800   : > { %v2662_v34 = vmul.f32 %v6738_v18, %v2661_v32 }
 0x801   : > { %v2679_v2 = vpack.c.bf16 %v2677_v36, %v2677_v36 }
 0x802   : > { %v2666_v35 = vsel %vm2665_vm12, %v6738_v18, %v2662_v34 }
 0x803   : > { %v2668_v29 = vmul.f32 %v2666_v35, %v7753_v14  ;;  %v2748_v10 = vunpack.c.l.b16 %v2679_v2  ;;  %v6562_v14 = vld [vmem:[%s8428_s5 + $0x1b8] sm:$0xff] }
 0x805   : > { %v2673_v37 = vmul.f32 %v6669_v26, %v2668_v29 }
 0x807   : > { %v2678_v38 = vadd.f32 %v6670_v21, %v2673_v37 }
 0x809   : > { %v2680_v5 = vpack.c.bf16 %v2678_v38, %v2678_v38 }
 0x80b   : > { %v2749_v39 = vunpack.c.l.b16 %v2680_v5 }
 0x80d   : > { %v7911_v40 = vpack.c.b16 %v2749_v39, %v2748_v10 }
 0x80f   : > { %2808 = vmatmul.bf16.vlgmr.msrb.gmra.mxu0 %v7911_v40  ;;  %2870 = vmatmul.bf16.vlgmr.msrb.gmra.mxu1 %v7911_v40 }
 0x810   : > { %2932 = vmatmul.bf16.vlgmr.msrb.gmra.mxu2 %v7911_v40  ;;  %2994 = vmatmul.bf16.vlgmr.msrb.gmra.mxu3 %v7911_v40 }
 0x811   : > { %3426 = vmatpush.bf16.msrb.mxu0 %v6546_v41  ;;  %3488 = vmatpush.bf16.msrb.mxu1 %v6554_v42 }
 0x812   : > { %3550 = vmatpush.bf16.msrb.mxu2 %v6562_v14  ;;  %3612 = vmatpush.bf16.msrb.mxu3 %v6570_v43 }
 0x815   : > { %3427 = vmatpush.bf16.msrb.mxu0 %v6545_v44  ;;  %3489 = vmatpush.bf16.msrb.mxu1 %v6553_v46 }
 0x816   : > { %3551 = vmatpush.bf16.msrb.mxu2 %v6561_v28  ;;  %3613 = vmatpush.bf16.msrb.mxu3 %v6569_v47 }
 0x819   : > { %3428 = vmatpush.bf16.msrb.mxu0 %v6544_v62  ;;  %3490 = vmatpush.bf16.msrb.mxu1 %v6552_v48 }
 0x81a   : > { %3552 = vmatpush.bf16.msrb.mxu2 %v6560_v22  ;;  %3614 = vmatpush.bf16.msrb.mxu3 %v6568_v1 }
 0x81d   : > { %3429 = vmatpush.bf16.msrb.mxu0 %v6543_v27  ;;  %3491 = vmatpush.bf16.msrb.mxu1 %v6551_v50 }
 0x81e   : > { %3553 = vmatpush.bf16.msrb.mxu2 %v6559_v51  ;;  %3615 = vmatpush.bf16.msrb.mxu3 %v6567_v57 }
 0x81f   : > { %3121 = vmatmul.bf16.vlgmr.msra.gmra.mxu0 %v7911_v40  ;;  %3183 = vmatmul.bf16.vlgmr.msra.gmra.mxu1 %v7911_v40 }
 0x820   : > { %3245 = vmatmul.bf16.vlgmr.msra.gmra.mxu2 %v7911_v40  ;;  %3307 = vmatmul.bf16.vlgmr.msra.gmra.mxu3 %v7911_v40 }
 0x821   : > { %3430 = vmatpush.bf16.msrb.mxu0 %v6542_v12  ;;  %3492 = vmatpush.bf16.msrb.mxu1 %v6550_v55 }
 0x822   : > { %3554 = vmatpush.bf16.msrb.mxu2 %v6558_v58  ;;  %3616 = vmatpush.bf16.msrb.mxu3 %v6566_v19 }
 0x825   : > { %3431 = vmatpush.bf16.msrb.mxu0 %v6541_v59  ;;  %3493 = vmatpush.bf16.msrb.mxu1 %v6549_v61 }
 0x826   : > { %3555 = vmatpush.bf16.msrb.mxu2 %v6557_v63  ;;  %3617 = vmatpush.bf16.msrb.mxu3 %v6565_v0 }
 0x829   : > { %3432 = vmatpush.bf16.msrb.mxu0 %v6540_v56  ;;  %3494 = vmatpush.bf16.msrb.mxu1 %v6548_v3 }
 0x82a   : > { %3556 = vmatpush.bf16.msrb.mxu2 %v6556_v6  ;;  %3618 = vmatpush.bf16.msrb.mxu3 %v6564_v4 }
 0x82d   : > { %3433 = vmatpush.bf16.msrb.mxu0 %v6539_v7  ;;  %3495 = vmatpush.bf16.msrb.mxu1 %v6547_v60 }
 0x82e   : > { %3557 = vmatpush.bf16.msrb.mxu2 %v6555_v9  ;;  %3619 = vmatpush.bf16.msrb.mxu3 %v6563_v8 }
 0x830   : > { %3434 = vmatmul.bf16.vlgmr.msrb.gmra.mxu0 %v7911_v40  ;;  %3496 = vmatmul.bf16.vlgmr.msrb.gmra.mxu1 %v7911_v40 }
 0x831   : > { %3558 = vmatmul.bf16.vlgmr.msrb.gmra.mxu2 %v7911_v40  ;;  %3620 = vmatmul.bf16.vlgmr.msrb.gmra.mxu3 %v7911_v40 }
 0x88c   : > { %v2809_v45 = vpop.f32.mrf.mxu0  ;;  %v2871_v49 = vpop.f32.mrf.mxu1 }
 0x88d   : > { %v3626_v41 = vpack.c.bf16 %v2809_v45, %v2809_v45  ;;  %v3628_v46 = vpack.c.bf16 %v2871_v49, %v2871_v49 }
 0x88f   : > { %v3644_v58 = vunpack.c.l.b16 %v3626_v41  ;;  %v3674_v19 = vunpack.c.l.b16 %v3628_v46 }
 0x893   : > { %v8021_v11 = vpop.f32.mrf.mxu2  ;;  %v8023_v13 = vpop.f32.mrf.mxu3 }
 0x894   : > { %v2811_v16 = vpop.f32.mrf.mxu0  ;;  %v2873_v17 = vpop.f32.mrf.mxu1  ;;  %v3630_v63 = vpack.c.bf16 %v8021_v11, %v8021_v11  ;;  %v3632_v0 = vpack.c.bf16 %v8023_v13, %v8023_v13 }
 0x895   : > { %v3627_v2 = vpack.c.bf16 %v2811_v16, %v2811_v16  ;;  %v3629_v38 = vpack.c.bf16 %v2873_v17, %v2873_v17 }
 0x896   : > { %v3704_v11 = vunpack.c.l.b16 %v3630_v63  ;;  %v3734_v13 = vunpack.c.l.b16 %v3632_v0 }
 0x897   : > { %v3645_v62 = vunpack.c.l.b16 %v3627_v2  ;;  %v3675_v48 = vunpack.c.l.b16 %v3629_v38 }
 0x899   : > { %v3646_v56 = vpack.c.b16 %v3645_v62, %v3644_v58  ;;  %v3676_v3 = vpack.c.b16 %v3675_v48, %v3674_v19 }
 0x89b   : > { %v2935_v18 = vpop.f32.mrf.mxu2  ;;  %v2997_v20 = vpop.f32.mrf.mxu3 }
 0x89c   : > { %v3122_v23 = vpop.f32.mrf.mxu0  ;;  %v3184_v25 = vpop.f32.mrf.mxu1  ;;  %v3631_v12 = vpack.c.bf16 %v2935_v18, %v2935_v18  ;;  %v3633_v55 = vpack.c.bf16 %v2997_v20, %v2997_v20 }
 0x89d   : > { %v3634_v53 = vpack.c.bf16 %v3122_v23, %v3122_v23  ;;  %v3636_v26 = vpack.c.bf16 %v3184_v25, %v3184_v25 }
 0x89e   : > { %v3705_v7 = vunpack.c.l.b16 %v3631_v12  ;;  %v3735_v60 = vunpack.c.l.b16 %v3633_v55 }
 0x89f   : > { %v3649_v35 = vunpack.c.l.b16 %v3634_v53  ;;  %v3679_v36 = vunpack.c.l.b16 %v3636_v26 }
 0x8a0   : > { %v3706_v23 = vpack.c.b16 %v3705_v7, %v3704_v11  ;;  %v3736_v25 = vpack.c.b16 %v3735_v60, %v3734_v13 }
 0x8a3   : > { %v3246_v31 = vpop.f32.mrf.mxu2  ;;  %v3308_v30 = vpop.f32.mrf.mxu3 }
 0x8a4   : > { %v3124_v32 = vpop.f32.mrf.mxu0  ;;  %v3186_v21 = vpop.f32.mrf.mxu1  ;;  %v3638_v39 = vpack.c.bf16 %v3246_v31, %v3246_v31  ;;  %v3640_v40 = vpack.c.bf16 %v3308_v30, %v3308_v30 }
 0x8a5   : > { %v3635_v33 = vpack.c.bf16 %v3124_v32, %v3124_v32  ;;  %v3637_v34 = vpack.c.bf16 %v3186_v21, %v3186_v21 }
 0x8a6   : > { %v3709_v27 = vunpack.c.l.b16 %v3638_v39  ;;  %v3739_v50 = vunpack.c.l.b16 %v3640_v40 }
 0x8a7   : > { %v3650_v29 = vunpack.c.l.b16 %v3635_v33  ;;  %v3680_v37 = vunpack.c.l.b16 %v3637_v34 }
 0x8a9   : > { %v3651_v5 = vpack.c.b16 %v3650_v29, %v3649_v35  ;;  %v3681_v10 = vpack.c.b16 %v3680_v37, %v3679_v36 }
 0x8ab   : > { %v3248_v42 = vpop.f32.mrf.mxu2  ;;  %v3310_v14 = vpop.f32.mrf.mxu3  ;;  %v3656_v43 = vsel %vm1552_vm7, %v3651_v5, 0  ;;  %v3686_v44 = vsel %vm1552_vm7, %v3681_v10, 0 }
 0x8ac   : > { %v3639_v28 = vpack.c.bf16 %v3248_v42, %v3248_v42  ;;  %v3641_v47 = vpack.c.bf16 %v3310_v14, %v3310_v14  ;;  %3665 = vmatpush.bf16.xpose.msra.mxu0 %v3656_v43  ;;  %3695 = vmatpush.bf16.xpose.msra.mxu1 %v3686_v44 }
 0x8ad   : > { %v3435_v22 = vpop.f32.mrf.mxu0  ;;  %v3497_v1 = vpop.f32.mrf.mxu1 }
 0x8ae   : > { %v3710_v51 = vunpack.c.l.b16 %v3639_v28  ;;  %v3740_v57 = vunpack.c.l.b16 %v3641_v47  ;;  %v3858_v9 = vpack.c.bf16 %v3435_v22, %v3435_v22  ;;  %v3860_v8 = vpack.c.bf16 %v3497_v1, %v3497_v1 }
 0x8b0   : > { %v3711_v59 = vpack.c.b16 %v3710_v51, %v3709_v27  ;;  %v3741_v61 = vpack.c.b16 %v3740_v57, %v3739_v50  ;;  %v3873_v53 = vunpack.c.l.b16 %v3858_v9  ;;  %v3901_v26 = vunpack.c.l.b16 %v3860_v8 }
 0x8b2   : > { %v3716_v6 = vsel %vm1552_vm7, %v3711_v59, 0  ;;  %v3746_v4 = vsel %vm1552_vm7, %v3741_v61, 0 }
 0x8b3   : > { %3725 = vmatpush.bf16.xpose.msra.mxu2 %v3716_v6  ;;  %3755 = vmatpush.bf16.xpose.msra.mxu3 %v3746_v4 }
 0x8b4   : > { %v3559_v45 = vpop.f32.mrf.mxu2  ;;  %v3621_v49 = vpop.f32.mrf.mxu3  ;;  %6036 = vmatmul.msk.bf16.vlgmr.msra.gmra.mxu0 %vm1552_vm7, %v3646_v56  ;;  %6037 = vmatmul.msk.bf16.vlgmr.msra.gmra.mxu1 %vm1552_vm7, %v3676_v3 }
 0x8b5   : > { %v3437_v16 = vpop.f32.mrf.mxu0  ;;  %v3499_v17 = vpop.f32.mrf.mxu1  ;;  %v3862_v33 = vpack.c.bf16 %v3559_v45, %v3559_v45  ;;  %v3864_v34 = vpack.c.bf16 %v3621_v49, %v3621_v49 }
 0x8b6   : > { %v3859_v18 = vpack.c.bf16 %v3437_v16, %v3437_v16  ;;  %v3861_v20 = vpack.c.bf16 %v3499_v17, %v3499_v17 }
 0x8b7   : > { %v3929_v2 = vunpack.c.l.b16 %v3862_v33  ;;  %v3957_v38 = vunpack.c.l.b16 %v3864_v34 }
 0x8b8   : > { %v3874_v31 = vunpack.c.l.b16 %v3859_v18  ;;  %v3902_v30 = vunpack.c.l.b16 %v3861_v20 }
 0x8ba   : > { %v3875_v32 = vpack.c.b16 %v3874_v31, %v3873_v53  ;;  %v3903_v21 = vpack.c.b16 %v3902_v30, %v3901_v26  ;;  %6038 = vmatmul.msk.bf16.vlgmr.msra.gmra.mxu2 %vm1552_vm7, %v3706_v23  ;;  %6039 = vmatmul.msk.bf16.vlgmr.msra.gmra.mxu3 %vm1552_vm7, %v3736_v25 }
 0x8bc   : > { %v3561_v35 = vpop.f32.mrf.mxu2  ;;  %v3623_v36 = vpop.f32.mrf.mxu3  ;;  %3887 = vmatpush.bf16.msrb.mxu0 %v3875_v32  ;;  %3915 = vmatpush.bf16.msrb.mxu1 %v3903_v21 }
 0x8bd   : > { %v3863_v29 = vpack.c.bf16 %v3561_v35, %v3561_v35  ;;  %v3865_v37 = vpack.c.bf16 %v3623_v36, %v3623_v36 }
 0x8bf   : > { %v3930_v5 = vunpack.c.l.b16 %v3863_v29  ;;  %v3958_v10 = vunpack.c.l.b16 %v3865_v37 }
 0x8c1   : > { %v3931_v39 = vpack.c.b16 %v3930_v5, %v3929_v2  ;;  %v3959_v40 = vpack.c.b16 %v3958_v10, %v3957_v38 }
 0x8c3   : > { %3943 = vmatpush.bf16.msrb.mxu2 %v3931_v39  ;;  %3971 = vmatpush.bf16.msrb.mxu3 %v3959_v40 }
 0x931   : > { %v3667_v41 = vpop.f32.mrf.mxu0  ;;  %v3697_v1 = vpop.f32.mrf.mxu1 }
 0x932   : > { %v3768_v27 = vsel %vm1663_vm8, %v3697_v1, -inf  ;;  %v3762_v50 = vsel %vm1663_vm8, %v3667_v41, -inf }
 0x939   : > { %v3669_v46 = vpop.f32.mrf.mxu0  ;;  %v3699_v51 = vpop.f32.mrf.mxu1 }
 0x93a   : > { %v3765_v22 = vsel %vm1663_vm8, %v3669_v46, -inf  ;;  %v3771_v57 = vsel %vm1663_vm8, %v3699_v51, -inf }
 0x93d   : > { %v3727_v42 = vpop.f32.mrf.mxu2  ;;  %v3757_v14 = vpop.f32.mrf.mxu3 }
 0x93e   : > { %v3780_v43 = vsel %vm1663_vm8, %v3757_v14, -inf  ;;  %v3774_v44 = vsel %vm1663_vm8, %v3727_v42, -inf }
 0x93f   : > { %3781 = vmax.xlane.f32.xlu0 %v3780_v43  ;;  %3775 = vmax.xlane.f32.xlu1 %v3774_v44 }
 0x945   : > { %v3729_v28 = vpop.f32.mrf.mxu2  ;;  %v3759_v47 = vpop.f32.mrf.mxu3 }
 0x946   : > { %v3783_v62 = vsel %vm1663_vm8, %v3759_v47, -inf  ;;  %v3777_v48 = vsel %vm1663_vm8, %v3729_v28, -inf }
 0x947   : > { %3784 = vmax.xlane.f32.xlu1 %v3783_v62  ;;  %3778 = vmax.xlane.f32.xlu2 %v3777_v48 }
 0x948   : > { %3766 = vmax.xlane.f32.xlu0 %v3765_v22 }
 0x94f   : > { %3769 = vmax.xlane.f32.xlu1 %v3768_v27  ;;  %3763 = vmax.xlane.f32.xlu2 %v3762_v50 }
 0x957   : > { %3772 = vmax.xlane.f32.xlu2 %v3771_v57 }
 0x9b2   : > { %v3782_v12 = vpop.xlane.xlu0 %3781  ;;  %v3776_v55 = vpop.xlane.xlu1 %3775 }
 0x9b3   : > { %v3792_v58 = vsub.f32 %v3757_v14, %v3782_v12  ;;  %v3790_v19 = vsub.f32 %v3727_v42, %v3776_v55 }
 0x9b5   : > { %v3806_v59 = vmul.f32 1.442695, %v3792_v58  ;;  %v3802_v61 = vmul.f32 1.442695, %v3790_v19 }
 0x9b7   : > { %6739 = vpow2.f32 %v3806_v59 }
 0x9b8   : > { %6741 = vpow2.f32 %v3802_v61 }
 0x9ba   : > { %v3785_v63 = vpop.xlane.xlu1 %3784  ;;  %v3779_v0 = vpop.xlane.xlu2 %3778 }
 0x9bb   : > { %v3793_v56 = vsub.f32 %v3759_v47, %v3785_v63  ;;  %v3791_v3 = vsub.f32 %v3729_v28, %v3779_v0  ;;  %v3767_v6 = vpop.xlane.xlu0 %3766 }
 0x9bc   : > { %v3787_v4 = vsub.f32 %v3669_v46, %v3767_v6 }
 0x9bd   : > { %v6740_v7 = vpop.eup %6739  ;;  %v3808_v60 = vmul.f32 1.442695, %v3793_v56  ;;  %v3804_v9 = vmul.f32 1.442695, %v3791_v3 }
 0x9be   : > { %v6742_v8 = vpop.eup %6741  ;;  %v3796_v45 = vmul.f32 1.442695, %v3787_v4  ;;  %v3828_v49 = vsel %vm1663_vm8, %v6740_v7, 0.0 }
 0x9bf   : > { %6743 = vpow2.f32 %v3808_v60  ;;  %3829 = vadd.xlane.f32.xlu2 %v3828_v49  ;;  %v3822_v11 = vsel %vm1663_vm8, %v6742_v8, 0.0 }
 0x9c0   : > { %6745 = vpow2.f32 %v3804_v9  ;;  %3823 = vadd.xlane.f32.xlu0 %v3822_v11 }
 0x9c1   : > { %6747 = vpow2.f32 %v3796_v45 }
 0x9c2   : > { %v3770_v13 = vpop.xlane.xlu1 %3769  ;;  %v3764_v16 = vpop.xlane.xlu2 %3763 }
 0x9c3   : > { %v3788_v17 = vsub.f32 %v3697_v1, %v3770_v13  ;;  %v3786_v18 = vsub.f32 %v3667_v41, %v3764_v16 }
 0x9c5   : > { %v6744_v20 = vpop.eup %6743  ;;  %v3798_v23 = vmul.f32 1.442695, %v3788_v17  ;;  %v3794_v25 = vmul.f32 1.442695, %v3786_v18 }
 0x9c6   : > { %v6746_v53 = vpop.eup %6745  ;;  %v3831_v26 = vsel %vm1663_vm8, %v6744_v20, 0.0 }
 0x9c7   : > { %v6748_v31 = vpop.eup %6747  ;;  %6749 = vpow2.f32 %v3798_v23  ;;  %v3825_v30 = vsel %vm1663_vm8, %v6746_v53, 0.0  ;;  %v6582_v23 = vld [vmem:[%s8429_s6 + $0xd8] sm:$0xff] }
 0x9c8   : > { %6751 = vpow2.f32 %v3794_v25  ;;  %3826 = vadd.xlane.f32.xlu1 %v3825_v30  ;;  %3832 = vadd.xlane.f32.xlu0 %v3831_v26  ;;  %v3813_v32 = vsel %vm1663_vm8, %v6748_v31, 0.0  ;;  %v6586_v25 = vld [vmem:[%s8429_s6 + $0xf8] sm:$0xff]  ;;  %v6581_v26 = vld [vmem:[%s8429_s6 + $0xd0] sm:$0xff] }
 0x9c9   : > { %3814 = vadd.xlane.f32.xlu2 %v3813_v32  ;;  %4147 = vmatpush.bf16.msra.mxu2 %v6582_v23  ;;  %v6573_v30 = vld [vmem:[%s8429_s6 + $0x90] sm:$0xff]  ;;  %v6580_v32 = vld [vmem:[%s8429_s6 + $0xc8] sm:$0xff] }
 0x9ca   : > { %v3773_v21 = vpop.xlane.xlu2 %3772  ;;  %4193 = vmatpush.bf16.msra.mxu3 %v6586_v25 }
 0x9cb   : > { %v3789_v33 = vsub.f32 %v3699_v51, %v3773_v21  ;;  %v6584_v21 = vld [vmem:[%s8429_s6 + $0xe8] sm:$0xff] }
 0x9cd   : > { %v6750_v34 = vpop.eup %6749  ;;  %v3800_v35 = vmul.f32 1.442695, %v3789_v33  ;;  %4148 = vmatpush.bf16.msra.mxu2 %v6581_v26  ;;  %v6572_v33 = vld [vmem:[%s8429_s6 + $0x88] sm:$0xff] }
 0x9ce   : > { %v6752_v36 = vpop.eup %6751  ;;  %v3816_v29 = vsel %vm1663_vm8, %v6750_v34, 0.0 }
 0x9cf   : > { %6753 = vpow2.f32 %v3800_v35  ;;  %v3810_v37 = vsel %vm1663_vm8, %v6752_v36, 0.0  ;;  %v6579_v35 = vld [vmem:[%s8429_s6 + $0xc0] sm:$0xff] }
 0x9d0   : > { %3811 = vadd.xlane.f32.xlu1 %v3810_v37  ;;  %3817 = vadd.xlane.f32.xlu0 %v3816_v29  ;;  %v6571_v29 = vld [vmem:[%s8429_s6 + $0x80] sm:$0xff]  ;;  %v6577_v37 = vld [vmem:[%s8429_s6 + $0xb0] sm:$0xff] }
 0x9d1   : > { %4149 = vmatpush.bf16.msra.mxu2 %v6580_v32 }
 0x9d5   : > { %v6754_v2 = vpop.eup %6753  ;;  %4150 = vmatpush.bf16.msra.mxu2 %v6579_v35  ;;  %v6602_v35 = vld [vmem:[%s8433_s10 + $0xf4] sm:$0xf0] }
 0x9d6   : > { %v3819_v38 = vsel %vm1663_vm8, %v6754_v2, 0.0 }
 0x9d8   : > { %3820 = vadd.xlane.f32.xlu1 %v3819_v38  ;;  %v6575_v38 = vld [vmem:[%s8429_s6 + $0xa0] sm:$0xff] }
 0xa32   : > { %v3830_v5 = vpop.xlane.xlu2 %3829 }
 0xa33   : > { %v3824_v10 = vpop.xlane.xlu0 %3823 }
 0xa34   : > { %6755 = vrcp.f32 %v3824_v10 }
 0xa35   : > { %6757 = vrcp.f32 %v3830_v5 }
 0xa3a   : > { %v6756_v41 = vpop.eup %6755 }
 0xa3b   : > { %v3827_v39 = vpop.xlane.xlu1 %3826  ;;  %v3833_v40 = vpop.xlane.xlu0 %3832  ;;  %v3846_v43 = vmul.f32 %v6756_v41, %v6742_v8 }
 0xa3c   : > { %6759 = vrcp.f32 %v3827_v39  ;;  %v3815_v42 = vpop.xlane.xlu2 %3814  ;;  %v6758_v14 = vpop.eup %6757 }
 0xa3d   : > { %6761 = vrcp.f32 %v3815_v42  ;;  %v3848_v44 = vmul.f32 %v6758_v14, %v6740_v7  ;;  %v3854_v47 = vpack.c.bf16 %v3846_v43, %v3846_v43 }
 0xa3e   : > { %6763 = vrcp.f32 %v3833_v40 }
 0xa3f   : > { %v3856_v27 = vpack.c.bf16 %v3848_v44, %v3848_v44  ;;  %v3924_v57 = vunpack.c.l.b16 %v3854_v47 }
 0xa41   : > { %v3952_v19 = vunpack.c.l.b16 %v3856_v27 }
 0xa42   : > { %v6760_v46 = vpop.eup %6759 }
 0xa43   : > { %v6762_v28 = vpop.eup %6761  ;;  %v3847_v62 = vmul.f32 %v6760_v46, %v6746_v53  ;;  %v3812_v48 = vpop.xlane.xlu1 %3811  ;;  %v6574_v53 = vld [vmem:[%s8429_s6 + $0x98] sm:$0xff] }
 0xa44   : > { %v3818_v22 = vpop.xlane.xlu0 %3817  ;;  %v6764_v1 = vpop.eup %6763  ;;  %6765 = vrcp.f32 %v3812_v48  ;;  %v3843_v55 = vmul.f32 %v6762_v28, %v6748_v31  ;;  %v6585_v31 = vld [vmem:[%s8429_s6 + $0xf0] sm:$0xff]  ;;  %4055 = vmatpush.bf16.msra.mxu0 %v6574_v53 }
 0xa45   : > { %v3855_v50 = vpack.c.bf16 %v3847_v62, %v3847_v62  ;;  %v3849_v51 = vmul.f32 %v6764_v1, %v6744_v20  ;;  %6767 = vrcp.f32 %v3818_v22  ;;  %4194 = vmatpush.bf16.msra.mxu3 %v6585_v31 }
 0xa46   : > { %v3851_v0 = vpack.c.bf16 %v3843_v55, %v3843_v55 }
 0xa47   : > { %v3925_v12 = vunpack.c.l.b16 %v3855_v50  ;;  %v3857_v58 = vpack.c.bf16 %v3849_v51, %v3849_v51 }
 0xa48   : > { %v3869_v60 = vunpack.c.l.b16 %v3851_v0  ;;  %4056 = vmatpush.bf16.msra.mxu0 %v6573_v30 }
 0xa49   : > { %v3926_v59 = vpack.c.b16 %v3925_v12, %v3924_v57  ;;  %v3953_v61 = vunpack.c.l.b16 %v3857_v58  ;;  %4195 = vmatpush.bf16.msra.mxu3 %v6584_v21 }
 0xa4a   : > { %v6766_v63 = vpop.eup %6765 }
 0xa4b   : > { %v3954_v56 = vpack.c.b16 %v3953_v61, %v3952_v19  ;;  %v3842_v3 = vmul.f32 %v6766_v63, %v6752_v36  ;;  %v3821_v6 = vpop.xlane.xlu1 %3820  ;;  %6042 = vmatmul.msk.bf16.vlgmr.msrb.gmra.mxu2 %vm1663_vm8, %v3926_v59  ;;  %v6768_v4 = vpop.eup %6767  ;;  %v6583_v36 = vld [vmem:[%s8429_s6 + $0xe0] sm:$0xff] }
 0xa4c   : > { %6769 = vrcp.f32 %v3821_v6  ;;  %v3844_v8 = vmul.f32 %v6768_v4, %v6750_v34  ;;  %v6578_v34 = vld [vmem:[%s8429_s6 + $0xb8] sm:$0xff]  ;;  %4057 = vmatpush.bf16.msra.mxu0 %v6572_v33 }
 0xa4d   : > { %v3850_v7 = vpack.c.bf16 %v3842_v3, %v3842_v3  ;;  %6043 = vmatmul.msk.bf16.vlgmr.msrb.gmra.mxu3 %vm1663_vm8, %v3954_v56  ;;  %4101 = vmatpush.bf16.msra.mxu1 %v6578_v34  ;;  %v6222_v34 = vld [vmem:[%s8433_s10 + $0xf0] sm:$0xf] }
 0xa4e   : > { %v3852_v11 = vpack.c.bf16 %v3844_v8, %v3844_v8  ;;  %4196 = vmatpush.bf16.msra.mxu3 %v6583_v36  ;;  %v6671_v8 = vld [vmem:[%s8430_s7 + $0x1] ss:$0 sm:$0xff]  ;;  %v6601_v36 = vld [vmem:[%s8433_s10 + $0xf4] sm:$0xf] }
 0xa4f   : > { %v3868_v9 = vunpack.c.l.b16 %v3850_v7 }
 0xa50   : > { %v3896_v17 = vunpack.c.l.b16 %v3852_v11  ;;  %4058 = vmatpush.bf16.msra.mxu0 %v6571_v29  ;;  %v6223_v29 = vor.u32 %v6602_v35, %v6222_v34 }
 0xa51   : > { %v3870_v45 = vpack.c.b16 %v3869_v60, %v3868_v9  ;;  %4102 = vmatpush.bf16.msra.mxu1 %v6577_v37  ;;  %v6224_v37 = vld [vmem:[%s8433_s10 + $0xf8] sm:$0xf0] }
 0xa52   : > { %v6770_v49 = vpop.eup %6769 }
 0xa53   : > { %v3845_v13 = vmul.f32 %v6770_v49, %v6754_v2  ;;  %6040 = vmatmul.msk.bf16.vlgmr.msrb.gmra.mxu0 %vm1663_vm8, %v3870_v45  ;;  %v6576_v2 = vld [vmem:[%s8429_s6 + $0xa8] sm:$0xff] }
 0xa54   : > { %4377 = vmatpush.bf16.msrb.mxu0 %v6223_v29 }
 0xa55   : > { %v3853_v16 = vpack.c.bf16 %v3845_v13, %v3845_v13  ;;  %4103 = vmatpush.bf16.msra.mxu1 %v6576_v2  ;;  %v6227_v2 = vor.u32 %v6601_v36, %v6224_v37 }
 0xa57   : > { %v3897_v18 = vunpack.c.l.b16 %v3853_v16 }
 0xa59   : > { %v3898_v20 = vpack.c.b16 %v3897_v18, %v3896_v17  ;;  %4104 = vmatpush.bf16.msra.mxu1 %v6575_v38  ;;  %v6214_v38 = vld [vmem:[%s8433_s10 + $0xe0] sm:$0xf] }
 0xa5b   : > { %6041 = vmatmul.msk.bf16.vlgmr.msrb.gmra.mxu1 %vm1663_vm8, %v3898_v20 }
 0xa5d   : > { %4391 = vmatpush.bf16.msrb.mxu1 %v6227_v2 }
 0xace   : > { %v3945_v5 = vpop.f32.mrf.mxu2 }
 0xacf   : > { %v3982_v40 = vpack.c.bf16 %v3945_v5, %v3945_v5  ;;  %v6600_v5 = vld [vmem:[%s8433_s10 + $0xe4] sm:$0xf0] }
 0xad0   : > { %v3973_v10 = vpop.f32.mrf.mxu3  ;;  %v3889_v39 = vpop.f32.mrf.mxu0 }
 0xad1   : > { %v3984_v41 = vpack.c.bf16 %v3973_v10, %v3973_v10  ;;  %v3978_v14 = vpack.c.bf16 %v3889_v39, %v3889_v39  ;;  %v4113_v28 = vunpack.c.l.b16 %v3982_v40  ;;  %v6599_v10 = vld [vmem:[%s8433_s10 + $0xe4] sm:$0xf]  ;;  %v6215_v39 = vor.u32 %v6600_v5, %v6214_v38  ;;  %v6216_v40 = vld [vmem:[%s8433_s10 + $0xe8] sm:$0xf0] }
 0xad3   : > { %v4159_v1 = vunpack.c.l.b16 %v3984_v41  ;;  %v4021_v27 = vunpack.c.l.b16 %v3978_v14  ;;  %v6219_v41 = vor.u32 %v6599_v10, %v6216_v40  ;;  %4378 = vmatpush.bf16.msrb.mxu0 %v6215_v39  ;;  %v6598_v14 = vld [vmem:[%s8433_s10 + $0xd4] sm:$0xf0]  ;;  %v6672_v10 = vld [vmem:[%s8431_s8 + $0x1] ss:$0 sm:$0xff] }
 0xad5   : > { %4392 = vmatpush.bf16.msrb.mxu1 %v6219_v41 }
 0xad6   : > { %v3947_v42 = vpop.f32.mrf.mxu2 }
 0xad7   : > { %v3983_v43 = vpack.c.bf16 %v3947_v42, %v3947_v42  ;;  %v6206_v42 = vld [vmem:[%s8433_s10 + $0xd0] sm:$0xf] }
 0xad8   : > { %v3975_v44 = vpop.f32.mrf.mxu3  ;;  %v3891_v46 = vpop.f32.mrf.mxu0 }
 0xad9   : > { %v4114_v47 = vunpack.c.l.b16 %v3983_v43  ;;  %v3985_v62 = vpack.c.bf16 %v3975_v44, %v3975_v44  ;;  %v3979_v48 = vpack.c.bf16 %v3891_v46, %v3891_v46  ;;  %v3917_v22 = vpop.f32.mrf.mxu1  ;;  %v6597_v43 = vld [vmem:[%s8433_s10 + $0xd4] sm:$0xf]  ;;  %v6207_v44 = vor.u32 %v6598_v14, %v6206_v42  ;;  %v6208_v46 = vld [vmem:[%s8433_s10 + $0xd8] sm:$0xf0]  ;;  %v6673_v42 = vld [vmem:[%s8432_s9 + $0x1] ss:$0 sm:$0xff] }
 0xada   : > { %v3980_v58 = vpack.c.bf16 %v3917_v22, %v3917_v22 }
 0xadb   : > { %v4115_v50 = vpack.c.b16 %v4114_v47, %v4113_v28  ;;  %v4160_v51 = vunpack.c.l.b16 %v3985_v62  ;;  %v4022_v57 = vunpack.c.l.b16 %v3979_v48  ;;  %v6211_v28 = vor.u32 %v6597_v43, %v6208_v46  ;;  %4379 = vmatpush.bf16.msrb.mxu0 %v6207_v44  ;;  %v6198_v47 = vld [vmem:[%s8433_s10 + $0xc0] sm:$0xf]  ;;  %v6596_v62 = vld [vmem:[%s8433_s10 + $0xc4] sm:$0xf0]  ;;  %v6595_v48 = vld [vmem:[%s8433_s10 + $0xc4] sm:$0xf] }
 0xadc   : > { %v4067_v61 = vunpack.c.l.b16 %v3980_v58  ;;  %v6199_v22 = vor.u32 %v6596_v62, %v6198_v47 }
 0xadd   : > { %v4161_v12 = vpack.c.b16 %v4160_v51, %v4159_v1  ;;  %v4023_v55 = vpack.c.b16 %v4022_v57, %v4021_v27  ;;  %6126 = vmatmul.msk.bf16.vlgmr.msra.gmra.mxu2 %vm1552_vm7, %v4115_v50  ;;  %4393 = vmatpush.bf16.msrb.mxu1 %v6211_v28  ;;  %v6200_v1 = vld [vmem:[%s8433_s10 + $0xc8] sm:$0xf0]  ;;  %v6190_v50 = vld [vmem:[%s8433_s10 + $0xb0] sm:$0xf]  ;;  %v6594_v51 = vld [vmem:[%s8433_s10 + $0xb4] sm:$0xf0] }
 0xade   : > { %v6203_v27 = vor.u32 %v6595_v48, %v6200_v1  ;;  %v6593_v57 = vld [vmem:[%s8433_s10 + $0xb4] sm:$0xf] }
 0xadf   : > { %6143 = vmatmul.msk.bf16.vlgmr.msra.gmra.mxu3 %vm1552_vm7, %v4161_v12  ;;  %6092 = vmatmul.msk.bf16.vlgmr.msra.gmra.mxu0 %vm1552_vm7, %v4023_v55  ;;  %v6191_v12 = vor.u32 %v6594_v51, %v6190_v50  ;;  %v6192_v55 = vld [vmem:[%s8433_s10 + $0xb8] sm:$0xf0] }
 0xae0   : > { %4380 = vmatpush.bf16.msrb.mxu0 %v6199_v22  ;;  %v6195_v58 = vor.u32 %v6593_v57, %v6192_v55 }
 0xae1   : > { %v3919_v19 = vpop.f32.mrf.mxu1  ;;  %4394 = vmatpush.bf16.msrb.mxu1 %v6203_v27 }
 0xae2   : > { %v3981_v59 = vpack.c.bf16 %v3919_v19, %v3919_v19  ;;  %v6182_v19 = vld [vmem:[%s8433_s10 + $0xa0] sm:$0xf] }
 0xae4   : > { %v4068_v63 = vunpack.c.l.b16 %v3981_v59  ;;  %4381 = vmatpush.bf16.msrb.mxu0 %v6191_v12  ;;  %v6592_v59 = vld [vmem:[%s8433_s10 + $0xa4] sm:$0xf0] }
 0xae5   : > { %4395 = vmatpush.bf16.msrb.mxu1 %v6195_v58 }
 0xae6   : > { %v4069_v0 = vpack.c.b16 %v4068_v63, %v4067_v61  ;;  %v6591_v61 = vld [vmem:[%s8433_s10 + $0xa4] sm:$0xf]  ;;  %v6183_v63 = vor.u32 %v6592_v59, %v6182_v19 }
 0xae8   : > { %6109 = vmatmul.msk.bf16.vlgmr.msra.gmra.mxu1 %vm1552_vm7, %v4069_v0  ;;  %v6184_v0 = vld [vmem:[%s8433_s10 + $0xa8] sm:$0xf0]  ;;  %4382 = vmatpush.bf16.msrb.mxu0 %v6183_v63 }
 0xb5c   : > { %v4060_v56 = vpop.f32.mrf.mxu0 }
 0xb60   : > { %v4152_v3 = vpop.f32.mrf.mxu2 }
 0xb62   : > { %v4198_v7 = vpop.f32.mrf.mxu3 }
 0xb64   : > { %v4062_v49 = vpop.f32.mrf.mxu0 }
 0xb65   : > { %v4106_v6 = vpop.f32.mrf.mxu1 }
 0xb66   : > { %v4203_v4 = vadd.f32 %v4106_v6, %v4060_v56  ;;  %v6187_v56 = vor.u32 %v6591_v61, %v6184_v0  ;;  %v6174_v6 = vld [vmem:[%s8433_s10 + $0x90] sm:$0xf] }
 0xb68   : > { %v4204_v60 = vadd.f32 %v4203_v4, %v4152_v3  ;;  %v4154_v17 = vpop.f32.mrf.mxu2  ;;  %4396 = vmatpush.bf16.msrb.mxu1 %v6187_v56  ;;  %v6590_v4 = vld [vmem:[%s8433_s10 + $0x94] sm:$0xf0] }
 0xb69   : > { %v6610_v56 = vld [vmem:[%s8435_s12 + $0xb8] sm:$0xff] }
 0xb6a   : > { %v4205_v9 = vadd.f32 %v4204_v60, %v4198_v7  ;;  %v4200_v20 = vpop.f32.mrf.mxu3  ;;  %v6589_v7 = vld [vmem:[%s8433_s10 + $0x94] sm:$0xf]  ;;  %4701 = vmatpush.bf16.msrb.mxu2 %v6610_v56 }
 0xb6c   : > { %v4209_v45 = vadd.f32 %v4205_v9, %v7690_v52  ;;  %v6175_v9 = vor.u32 %v6590_v4, %v6174_v6 }
 0xb6d   : > { %v4108_v11 = vpop.f32.mrf.mxu1 }
 0xb6e   : > { %v4206_v13 = vadd.f32 %v4108_v11, %v4062_v49  ;;  %v8113_v16 = vadd.f32 %v6671_v8, %v4209_v45  ;;  %4383 = vmatpush.bf16.msrb.mxu0 %v6175_v9  ;;  %v6166_v11 = vld [vmem:[%s8433_s10 + $0x80] sm:$0xf] }
 0xb70   : > { %v4207_v18 = vadd.f32 %v4206_v13, %v4154_v17  ;;  %4222 = vadd.xlane.f32.xlu2 %v8113_v16  ;;  %v6588_v13 = vld [vmem:[%s8433_s10 + $0x84] sm:$0xf0] }
 0xb71   : > { %v6167_v17 = vor.u32 %v6588_v13, %v6166_v11 }
 0xb72   : > { %v4208_v23 = vadd.f32 %v4207_v18, %v4200_v20  ;;  %v6587_v18 = vld [vmem:[%s8433_s10 + $0x84] sm:$0xf]  ;;  %v6168_v20 = vld [vmem:[%s8433_s10 + $0x88] sm:$0xf0] }
 0xb73   : > { %4384 = vmatpush.bf16.msrb.mxu0 %v6167_v17 }
 0xb74   : > { %v4210_v25 = vadd.f32 %v4208_v23, %v7694_v54  ;;  %v6171_v23 = vor.u32 %v6587_v18, %v6168_v20  ;;  %v6608_v18 = vld [vmem:[%s8435_s12 + $0xa8] sm:$0xff] }
 0xb75   : > { %v6616_v20 = vld [vmem:[%s8435_s12 + $0xe8] sm:$0xff] }
 0xb76   : > { %v8117_v53 = vadd.f32 %v6671_v8, %v4210_v25  ;;  %v6176_v8 = vld [vmem:[%s8433_s10 + $0x98] sm:$0xf0] }
 0xb77   : > { %v6179_v45 = vor.u32 %v6589_v7, %v6176_v8  ;;  %v6609_v7 = vld [vmem:[%s8435_s12 + $0xb0] sm:$0xff] }
 0xb78   : > { %4224 = vadd.xlane.f32.xlu0 %v8117_v53  ;;  %4702 = vmatpush.bf16.msrb.mxu2 %v6609_v7 }
 0xb79   : > { %4397 = vmatpush.bf16.msrb.mxu1 %v6179_v45 }
 0xb7c   : > { %4703 = vmatpush.bf16.msrb.mxu2 %v6608_v18 }
 0xb7d   : > { %4398 = vmatpush.bf16.msrb.mxu1 %v6171_v23 }
 0xbe3   : > { %v4223_v26 = vpop.xlane.xlu2 %4222 }
 0xbe4   : > { %v4226_v52 = vmul.f32 %v4223_v26, %v7055_v24 }
 0xbe6   : > { %v8122_v31 = vsub.f32 %v8113_v16, %v4226_v52 }
 0xbe8   : > { %v4230_v30 = vmul.f32 %v8122_v31, %v8122_v31 }
 0xbea   : > { %4232 = vadd.xlane.f32.xlu1 %v4230_v30 }
 0xbeb   : > { %v4225_v32 = vpop.xlane.xlu0 %4224 }
 0xbec   : > { %v4227_v21 = vmul.f32 %v4225_v32, %v7055_v24 }
 0xbee   : > { %v8128_v33 = vsub.f32 %v8117_v53, %v4227_v21 }
 0xbf0   : > { %v4231_v54 = vmul.f32 %v8128_v33, %v8128_v33 }
 0xbf2   : > { %4234 = vadd.xlane.f32.xlu2 %v4231_v54 }
 0xc5d   : > { %v4233_v3 = vpop.xlane.xlu1 %4232 }
 0xc5e   : > { %v4236_v60 = vmul.f32 %v4233_v3, %v7055_v24  ;;  %v6618_v3 = vld [vmem:[%s8435_s12 + $0xf8] sm:$0xff] }
 0xc5f   : > { %4715 = vmatpush.bf16.msrb.mxu3 %v6618_v3 }
 0xc60   : > { %v4238_v49 = vadd.f32 1e-05, %v4236_v60  ;;  %v6617_v60 = vld [vmem:[%s8435_s12 + $0xf0] sm:$0xff] }
 0xc62   : > { %6771 = vrsqrt.f32 %v4238_v49  ;;  %vm4246_vm8 = vweird.f32 %v4238_v49 }
 0xc63   : > { %4716 = vmatpush.bf16.msrb.mxu3 %v6617_v60 }
 0xc65   : > { %v4235_v25 = vpop.xlane.xlu2 %4234 }
 0xc66   : > { %v4237_v26 = vmul.f32 %v4235_v25, %v7055_v24 }
 0xc67   : > { %4717 = vmatpush.bf16.msrb.mxu3 %v6616_v20 }
 0xc68   : > { %v6772_v52 = vpop.eup %6771  ;;  %v4239_v30 = vadd.f32 1e-05, %v4237_v26 }
 0xc69   : > { %v4241_v32 = vmul.f32 %v6772_v52, %v4238_v49  ;;  %vm4247_vm7 = vweird.f32 %v6772_v52 }
 0xc6a   : > { %6773 = vrsqrt.f32 %v4239_v30  ;;  %vm4248_vm13 = vmor %vm4246_vm8, %vm4247_vm7  ;;  %vm4256_vm15 = vweird.f32 %v4239_v30 }
 0xc6b   : > { %v4242_v21 = vmul.f32 %v6772_v52, %v4241_v32 }
 0xc6d   : > { %v4243_v54 = vmul.f32 0.5, %v4242_v21 }
 0xc6f   : > { %v4244_v34 = vsub.f32 1.5, %v4243_v54 }
 0xc70   : > { %v6774_v35 = vpop.eup %6773 }
 0xc71   : > { %v4245_v36 = vmul.f32 %v6772_v52, %v4244_v34  ;;  %v4251_v29 = vmul.f32 %v6774_v35, %v4239_v30  ;;  %vm4257_vm14 = vweird.f32 %v6774_v35 }
 0xc72   : > { %vm4258_vm0 = vmor %vm4256_vm15, %vm4257_vm14 }
 0xc73   : > { %v4252_v37 = vmul.f32 %v6774_v35, %v4251_v29  ;;  %v4249_v2 = vsel %vm4248_vm13, %v6772_v52, %v4245_v36 }
 0xc74   : > { %v4260_v39 = vmul.f32 %v4249_v2, %v8122_v31  ;;  %v6163_v31 = vld [vmem:[%s8434_s11 + $0x2] sm:$0x3] }
 0xc75   : > { %v4253_v38 = vmul.f32 0.5, %v4252_v37  ;;  %v4293_v62 = vperm.slane %v6163_v31, 0  ;;  %v4294_v48 = vperm.slane %v6163_v31, 1  ;;  %v6607_v37 = vld [vmem:[%s8435_s12 + $0xa0] sm:$0xff] }
 0xc76   : > { %v4265_v14 = vmul.f32 %v6672_v10, %v4260_v39  ;;  %v6615_v2 = vld [vmem:[%s8435_s12 + $0xe0] sm:$0xff]  ;;  %4704 = vmatpush.bf16.msrb.mxu2 %v6607_v37 }
 0xc77   : > { %v4254_v5 = vsub.f32 1.5, %v4253_v38  ;;  %4718 = vmatpush.bf16.msrb.mxu3 %v6615_v2  ;;  %v6611_v37 = vld [vmem:[%s8435_s12 + $0xc0] sm:$0xff] }
 0xc78   : > { %v4270_v46 = vadd.f32 %v6673_v42, %v4265_v14 }
 0xc79   : > { %v4255_v40 = vmul.f32 %v6774_v35, %v4254_v5 }
 0xc7b   : > { %v4259_v41 = vsel %vm4258_vm0, %v6774_v35, %v4255_v40 }
 0xc7c   : > { %v4261_v43 = vmul.f32 %v4259_v41, %v8128_v33 }
 0xc7e   : > { %v4266_v44 = vmul.f32 %v6672_v10, %v4261_v43  ;;  %v6606_v43 = vld [vmem:[%s8435_s12 + $0x98] sm:$0xff] }
 0xc7f   : > { %4705 = vmatpush.bf16.msrb.mxu2 %v6606_v43 }
 0xc80   : > { %v4271_v28 = vadd.f32 %v6673_v42, %v4266_v44  ;;  %v6614_v44 = vld [vmem:[%s8435_s12 + $0xd8] sm:$0xff] }
 0xc81   : > { %4719 = vmatpush.bf16.msrb.mxu3 %v6614_v44 }
 0xc82   : > { %v4272_v47 = vpack.c.bf16 %v4271_v28, %v4270_v46 }
 0xc84   : > { %4385 = vmatmul.bf16.vlgmr.msrb.gmra.mxu0 %v4272_v47  ;;  %4399 = vmatmul.bf16.vlgmr.msrb.gmra.mxu1 %v4272_v47 }
 0xd01   : > { %v4386_v22 = vpop.f32.mrf.mxu0  ;;  %v4400_v1 = vpop.f32.mrf.mxu1 }
 0xd02   : > { %v8241_v27 = vadd.f32 %v4386_v22, %v4293_v62  ;;  %v8243_v50 = vadd.f32 %v4400_v1, %v4294_v48 }
 0xd04   : > { %v8246_v33 = vmul.f32 0.70710677, %v8241_v27  ;;  %v8249_v51 = vmul.f32 0.70710677, %v8243_v50 }
 0xd06   : > { %v4421_v57 = vand.u32 2147483647, %v8246_v33  ;;  %v8253_v12 = vand.u32 2147483647, %v8249_v51 }
 0xd08   : > { %v4425_v55 = vmul.f32 0.3275911, %v4421_v57  ;;  %v4426_v58 = vmul.f32 0.3275911, %v8253_v12  ;;  %v4529_v52 = vsub.f32 0.0, %v4421_v57  ;;  %v4530_v30 = vsub.f32 0.0, %v8253_v12 }
 0xd09   : > { %v4388_v19 = vpop.f32.mrf.mxu0  ;;  %v4402_v59 = vpop.f32.mrf.mxu1 }
 0xd0a   : > { %v4429_v61 = vadd.f32 1.0, %v4425_v55  ;;  %v8256_v63 = vadd.f32 1.0, %v4426_v58  ;;  %v8258_v0 = vadd.f32 %v4388_v19, %v4293_v62  ;;  %v8266_v6 = vadd.f32 %v4402_v59, %v4294_v48  ;;  %v6613_v59 = vld [vmem:[%s8435_s12 + $0xd0] sm:$0xff] }
 0xd0b   : > { %v4533_v42 = vmul.f32 %v4529_v52, %v4421_v57  ;;  %v4534_v47 = vmul.f32 %v4530_v30, %v8253_v12  ;;  %v6605_v12 = vld [vmem:[%s8435_s12 + $0x90] sm:$0xff]  ;;  %4720 = vmatpush.bf16.msrb.mxu3 %v6613_v59 }
 0xd0c   : > { %6775 = vrcp.f32 %v4429_v61  ;;  %v8270_v4 = vmul.f32 0.70710677, %v8258_v0  ;;  %v8279_v9 = vmul.f32 0.70710677, %v8266_v6  ;;  %v4442_v21 = vand.u32 2147483647, %v4429_v61  ;;  %4706 = vmatpush.bf16.msrb.mxu2 %v6605_v12 }
 0xd0d   : > { %6777 = vrcp.f32 %v8256_v63  ;;  %v4444_v54 = vand.u32 2147483648, %v4429_v61  ;;  %v4459_v29 = vand.u32 2147483648, %v8256_v63  ;;  %v4457_v5 = vand.u32 2147483647, %v8256_v63 }
 0xd0e   : > { %v8282_v8 = vand.u32 2147483647, %v8270_v4  ;;  %v8285_v49 = vand.u32 2147483647, %v8279_v9  ;;  %vm4438_vm3 = vweird.f32 %v4429_v61  ;;  %vm4453_vm5 = vweird.f32 %v8256_v63 }
 0xd0f   : > { %v4445_v39 = vor.u32 1.1754944e-38, %v4444_v54  ;;  %vm4443_vm6 = vcmp.eq.f32.partialorder %v4442_v21, 8.507059e+37  ;;  %v4460_v14 = vor.u32 1.1754944e-38, %v4459_v29  ;;  %vm4458_vm10 = vcmp.eq.f32.partialorder %v4457_v5, 8.507059e+37  ;;  %v6603_v29 = vld [vmem:[%s8435_s12 + $0x80] sm:$0xff] }
 0xd10   : > { %v4427_v17 = vmul.f32 0.3275911, %v8282_v8  ;;  %v4428_v25 = vmul.f32 0.3275911, %v8285_v49  ;;  %v4537_v58 = vmul.f32 1.442695, %v4533_v42 }
 0xd11   : > { %v4531_v21 = vsub.f32 0.0, %v8282_v8  ;;  %v4532_v42 = vsub.f32 0.0, %v8285_v49 }
 0xd12   : > { %v6776_v45 = vpop.eup %6775  ;;  %v8297_v32 = vadd.f32 1.0, %v4427_v17  ;;  %v8299_v35 = vadd.f32 1.0, %v4428_v25  ;;  %v6604_v25 = vld [vmem:[%s8435_s12 + $0x88] sm:$0xff] }
 0xd13   : > { %v6778_v11 = vpop.eup %6777  ;;  %v4434_v13 = vmul.f32 %v6776_v45, %v4429_v61  ;;  %vm4439_vm1 = vweird.f32 %v6776_v45  ;;  %4707 = vmatpush.bf16.msrb.mxu2 %v6604_v25 }
 0xd14   : > { %v4449_v23 = vmul.f32 %v6778_v11, %v8256_v63  ;;  %6779 = vrcp.f32 %v8297_v32  ;;  %vm4454_vm2 = vweird.f32 %v6778_v11  ;;  %vm4440_vm4 = vmor %vm4438_vm3, %vm4439_vm1  ;;  %v4539_v63 = vmul.f32 1.442695, %v4534_v47 }
 0xd15   : > { %v4435_v26 = vsub.f32 1.0, %v4434_v13  ;;  %6781 = vrcp.f32 %v8299_v35  ;;  %vm4455_vm9 = vmor %vm4453_vm5, %vm4454_vm2  ;;  %v4472_v7 = vand.u32 2147483647, %v8297_v32  ;;  %v4474_v60 = vand.u32 2147483648, %v8297_v32 }
 0xd16   : > { %v4450_v34 = vsub.f32 1.0, %v4449_v23  ;;  %v4489_v17 = vand.u32 2147483648, %v8299_v35  ;;  %v4487_v23 = vand.u32 2147483647, %v8299_v35  ;;  %vm4468_vm7 = vweird.f32 %v8297_v32 }
 0xd17   : > { %v4436_v36 = vmul.f32 %v6776_v45, %v4435_v26  ;;  %v6612_v26 = vld [vmem:[%s8435_s12 + $0xc8] sm:$0xff]  ;;  %vm4483_vm13 = vweird.f32 %v8299_v35  ;;  %vm4473_vm14 = vcmp.eq.f32.partialorder %v4472_v7, 8.507059e+37  ;;  %4708 = vmatpush.bf16.msrb.mxu2 %v6603_v29  ;;  %6783 = vpow2.f32 %v4537_v58 }
 0xd18   : > { %v4451_v38 = vmul.f32 %v6778_v11, %v4450_v34  ;;  %v4475_v34 = vor.u32 1.1754944e-38, %v4474_v60  ;;  %4721 = vmatpush.bf16.msrb.mxu3 %v6612_v26  ;;  %vm4488_vm0 = vcmp.eq.f32.partialorder %v4487_v23, 8.507059e+37  ;;  %6785 = vpow2.f32 %v4539_v63 }
 0xd19   : > { %v4437_v10 = vadd.f32 %v6776_v45, %v4436_v36  ;;  %vm4413_vm1 = vcmp.ge.f32.partialorder %v8246_v33, 0.0  ;;  %vm4414_vm2 = vcmp.ge.f32.partialorder %v8249_v51, 0.0  ;;  %vm4415_vm3 = vcmp.ge.f32.partialorder %v8270_v4, 0.0 }
 0xd1a   : > { %v4452_v40 = vadd.f32 %v6778_v11, %v4451_v38  ;;  %v6780_v31 = vpop.eup %6779  ;;  %v4490_v38 = vor.u32 1.1754944e-38, %v4489_v17  ;;  %v4417_v26 = vsel %vm4413_vm1, 1.0, %v6862_v15  ;;  %v4419_v51 = vsel %vm4415_vm3, 1.0, %v6862_v15 }
 0xd1b   : > { %v4441_v41 = vsel %vm4440_vm4, %v6776_v45, %v4437_v10  ;;  %v6782_v22 = vpop.eup %6781  ;;  %v4464_v57 = vmul.f32 %v6780_v31, %v8297_v32  ;;  %vm4469_vm11 = vweird.f32 %v6780_v31  ;;  %vm4416_vm4 = vcmp.ge.f32.partialorder %v8279_v9, 0.0 }
 0xd1c   : > { %v8318_v46 = vsel %vm4443_vm6, %v4445_v39, %v4441_v41  ;;  %v4456_v28 = vsel %vm4455_vm9, %v6778_v11, %v4452_v40  ;;  %v4479_v19 = vmul.f32 %v6782_v22, %v8299_v35  ;;  %vm4484_vm12 = vweird.f32 %v6782_v22  ;;  %vm4470_vm8 = vmor %vm4468_vm7, %vm4469_vm11  ;;  %4722 = vmatpush.bf16.msrb.mxu3 %v6611_v37 }
 0xd1d   : > { %v4493_v62 = vmul.f32 1.0614054, %v8318_v46  ;;  %v8322_v48 = vsel %vm4458_vm10, %v4460_v14, %v4456_v28  ;;  %v4465_v56 = vsub.f32 1.0, %v4464_v57  ;;  %vm4485_vm15 = vmor %vm4483_vm13, %vm4484_vm12  ;;  %v4536_v57 = vmul.f32 %v4532_v42, %v8285_v49  ;;  %v6784_v60 = vpop.eup %6783 }
 0xd1e   : > { %v4494_v1 = vmul.f32 1.0614054, %v8322_v48  ;;  %v4480_v45 = vsub.f32 1.0, %v4479_v19  ;;  %v4408_v9 = vmul.f32 0.5, %v8266_v6 }
 0xd1f   : > { %v4497_v55 = vadd.f32 -1.4531521, %v4493_v62  ;;  %v4466_v13 = vmul.f32 %v6780_v31, %v4465_v56  ;;  %v4543_v7 = vmul.f32 1.442695, %v4536_v57 }
 0xd20   : > { %v4498_v61 = vadd.f32 -1.4531521, %v4494_v1  ;;  %v4481_v20 = vmul.f32 %v6782_v22, %v4480_v45  ;;  %v6786_v45 = vpop.eup %6785 }
 0xd21   : > { %v4501_v3 = vmul.f32 %v4497_v55, %v8318_v46  ;;  %v4467_v30 = vadd.f32 %v6780_v31, %v4466_v13 }
 0xd22   : > { %v4502_v11 = vmul.f32 %v4498_v61, %v8322_v48  ;;  %v4482_v36 = vadd.f32 %v6782_v22, %v4481_v20 }
 0xd23   : > { %v4505_v18 = vadd.f32 1.4214138, %v4501_v3  ;;  %v4471_v2 = vsel %vm4470_vm8, %v6780_v31, %v4467_v30  ;;  %v4535_v31 = vmul.f32 %v4531_v21, %v8282_v8 }
 0xd24   : > { %v4506_v52 = vadd.f32 1.4214138, %v4502_v11  ;;  %v4476_v10 = vsel %vm4473_vm14, %v4475_v34, %v4471_v2  ;;  %v4486_v35 = vsel %vm4485_vm15, %v6782_v22, %v4482_v36 }
 0xd25   : > { %v4509_v54 = vmul.f32 %v4505_v18, %v8318_v46  ;;  %v4495_v40 = vmul.f32 1.0614054, %v4476_v10  ;;  %v4491_v41 = vsel %vm4488_vm0, %v4490_v38, %v4486_v35  ;;  %v4541_v61 = vmul.f32 1.442695, %v4535_v31 }
 0xd26   : > { %v4510_v32 = vmul.f32 %v4506_v52, %v8322_v48  ;;  %v4496_v43 = vmul.f32 1.0614054, %v4491_v41  ;;  %v4420_v38 = vsel %vm4416_vm4, 1.0, %v6862_v15  ;;  %v4405_v35 = vmul.f32 0.5, %v8241_v27 }
 0xd27   : > { %v4513_v5 = vadd.f32 -0.28449672, %v4509_v54  ;;  %v4499_v28 = vadd.f32 -1.4531521, %v4495_v40  ;;  %6787 = vpow2.f32 %v4541_v61  ;;  %v4418_v54 = vsel %vm4414_vm2, 1.0, %v6862_v15 }
 0xd28   : > { %v4514_v39 = vadd.f32 -0.28449672, %v4510_v32  ;;  %v4500_v62 = vadd.f32 -1.4531521, %v4496_v43  ;;  %6789 = vpow2.f32 %v4543_v7  ;;  %v4406_v40 = vmul.f32 0.5, %v8243_v50 }
 0xd29   : > { %v4517_v14 = vmul.f32 %v4513_v5, %v8318_v46  ;;  %v4503_v1 = vmul.f32 %v4499_v28, %v4476_v10  ;;  %v6674_v15 = vld [vmem:[%s8436_s13 + $0x1] ss:$0 sm:$0xff] }
 0xd2a   : > { %v4518_v44 = vmul.f32 %v4514_v39, %v8322_v48  ;;  %v4504_v55 = vmul.f32 %v4500_v62, %v4491_v41  ;;  %v4407_v39 = vmul.f32 0.5, %v8258_v0 }
 0xd2b   : > { %v4521_v47 = vadd.f32 0.2548296, %v4517_v14  ;;  %v4507_v12 = vadd.f32 1.4214138, %v4503_v1 }
 0xd2c   : > { %v4522_v22 = vadd.f32 0.2548296, %v4518_v44  ;;  %v4508_v56 = vadd.f32 1.4214138, %v4504_v55 }
 0xd2d   : > { %v4525_v19 = vmul.f32 %v4521_v47, %v8318_v46  ;;  %v4511_v3 = vmul.f32 %v4507_v12, %v4476_v10  ;;  %v6788_v25 = vpop.eup %6787 }
 0xd2e   : > { %v4526_v59 = vmul.f32 %v4522_v22, %v8322_v48  ;;  %v4512_v58 = vmul.f32 %v4508_v56, %v4491_v41  ;;  %v6790_v30 = vpop.eup %6789 }
 0xd2f   : > { %v4545_v8 = vmul.f32 %v6784_v60, %v4525_v19  ;;  %v4515_v11 = vadd.f32 -0.28449672, %v4511_v3 }
 0xd30   : > { %v4546_v13 = vmul.f32 %v6786_v45, %v4526_v59  ;;  %v4516_v63 = vadd.f32 -0.28449672, %v4512_v58 }
 0xd31   : > { %v4519_v17 = vmul.f32 %v4515_v11, %v4476_v10  ;;  %v4549_v46 = vsub.f32 1.0, %v4545_v8 }
 0xd32   : > { %v4520_v49 = vmul.f32 %v4516_v63, %v4491_v41  ;;  %v4550_v48 = vsub.f32 1.0, %v4546_v13 }
 0xd33   : > { %v4523_v18 = vadd.f32 0.2548296, %v4519_v17  ;;  %v4553_v21 = vmul.f32 %v4549_v46, %v4417_v26 }
 0xd34   : > { %v4524_v20 = vadd.f32 0.2548296, %v4520_v49  ;;  %v4554_v36 = vmul.f32 %v4550_v48, %v4418_v54 }
 0xd35   : > { %v4527_v23 = vmul.f32 %v4523_v18, %v4476_v10  ;;  %v4557_v32 = vadd.f32 1.0, %v4553_v21 }
 0xd36   : > { %v4528_v52 = vmul.f32 %v4524_v20, %v4491_v41  ;;  %v4558_v5 = vadd.f32 1.0, %v4554_v36 }
 0xd37   : > { %v4547_v34 = vmul.f32 %v6788_v25, %v4527_v23  ;;  %v4561_v42 = vmul.f32 %v4557_v32, %v4405_v35  ;;  %v6675_v23 = vld [vmem:[%s8437_s14] ss:$0 sm:$0xff] }
 0xd38   : > { %v4548_v33 = vmul.f32 %v6790_v30, %v4528_v52  ;;  %v4562_v43 = vmul.f32 %v4558_v5, %v4406_v40  ;;  %v6676_v52 = vld [vmem:[%s8438_s15] ss:$0 sm:$0xff] }
 0xd39   : > { %v4551_v29 = vsub.f32 1.0, %v4547_v34 }
 0xd3a   : > { %v4552_v37 = vsub.f32 1.0, %v4548_v33 }
 0xd3b   : > { %v4555_v2 = vmul.f32 %v4551_v29, %v4419_v51 }
 0xd3c   : > { %v4556_v10 = vmul.f32 %v4552_v37, %v4420_v38 }
 0xd3d   : > { %v4559_v4 = vadd.f32 1.0, %v4555_v2 }
 0xd3e   : > { %v4560_v41 = vadd.f32 1.0, %v4556_v10 }
 0xd3f   : > { %v4563_v14 = vmul.f32 %v4559_v4, %v4407_v39 }
 0xd40   : > { %v4564_v44 = vmul.f32 %v4560_v41, %v4408_v9 }
 0xd41   : > { %v4565_v28 = vpack.c.bf16 %v4563_v14, %v4561_v42 }
 0xd42   : > { %v4566_v47 = vpack.c.bf16 %v4564_v44, %v4562_v43 }
 0xd43   : > { %4709 = vmatmul.bf16.vlgmr.msrb.gmra.mxu2 %v4565_v28 }
 0xd44   : > { %4723 = vmatmul.bf16.vlgmr.msrb.gmra.mxu3 %v4566_v47 }
 0xdc6   : > { %v4710_v27 = vpop.f32.mrf.mxu2 }
 0xdc7   : > { %v4711_v0 = vadd.f32 %v6674_v15, %v4710_v27  ;;  %v4724_v31 = vpop.f32.mrf.mxu3 }
 0xdc9   : > { %v4725_v62 = vadd.f32 %v4724_v31, %v4711_v0 }
 0xdcb   : > { %v4729_v50 = vadd.f32 %v4725_v62, %v8113_v16 }
 0xdcd   : > { %4733 = vadd.xlane.f32.xlu0 %v4729_v50 }
 0xdce   : > { %v4712_v6 = vpop.f32.mrf.mxu2 }
 0xdcf   : > { %v4713_v22 = vadd.f32 %v6674_v15, %v4712_v6  ;;  %v4726_v1 = vpop.f32.mrf.mxu3 }
 0xdd1   : > { %v4727_v57 = vadd.f32 %v4726_v1, %v4713_v22 }
 0xdd3   : > { %v4730_v55 = vadd.f32 %v4727_v57, %v8117_v53 }
 0xdd5   : > { %4735 = vadd.xlane.f32.xlu1 %v4730_v55 }
 0xe40   : > { %v4734_v19 = vpop.xlane.xlu0 %4733 }
 0xe41   : > { %v4737_v12 = vmul.f32 %v4734_v19, %v7055_v24 }
 0xe43   : > { %v4739_v59 = vsub.f32 %v4729_v50, %v4737_v12 }
 0xe45   : > { %v4741_v61 = vmul.f32 %v4739_v59, %v4739_v59 }
 0xe47   : > { %4743 = vadd.xlane.f32.xlu2 %v4741_v61 }
 0xe48   : > { %v4736_v56 = vpop.xlane.xlu1 %4735 }
 0xe49   : > { %v4738_v3 = vmul.f32 %v4736_v56, %v7055_v24 }
 0xe4b   : > { %v4740_v7 = vsub.f32 %v4730_v55, %v4738_v3 }
 0xe4d   : > { %v4742_v60 = vmul.f32 %v4740_v7, %v4740_v7 }
 0xe4f   : > { %4745 = vadd.xlane.f32.xlu0 %v4742_v60 }
 0xeba   : > { %v4744_v16 = vpop.xlane.xlu2 %4743 }
 0xebb   : > { %v4747_v58 = vmul.f32 %v4744_v16, %v7055_v24 }
 0xebd   : > { %v4749_v45 = vadd.f32 1e-05, %v4747_v58 }
 0xebf   : > { %6791 = vrsqrt.f32 %v4749_v45  ;;  %vm4757_vm6 = vweird.f32 %v4749_v45 }
 0xec2   : > { %v4746_v53 = vpop.xlane.xlu0 %4745 }
 0xec3   : > { %v4748_v8 = vmul.f32 %v4746_v53, %v7055_v24 }
 0xec5   : > { %v6792_v11 = vpop.eup %6791  ;;  %v4750_v13 = vadd.f32 1e-05, %v4748_v8 }
 0xec6   : > { %v4752_v63 = vmul.f32 %v6792_v11, %v4749_v45  ;;  %vm4758_vm5 = vweird.f32 %v6792_v11 }
 0xec7   : > { %6793 = vrsqrt.f32 %v4750_v13  ;;  %vm4759_vm9 = vmor %vm4757_vm6, %vm4758_vm5  ;;  %vm4767_vm11 = vweird.f32 %v4750_v13 }
 0xec8   : > { %v4753_v17 = vmul.f32 %v6792_v11, %v4752_v63 }
 0xeca   : > { %v4754_v49 = vmul.f32 0.5, %v4753_v17 }
 0xecc   : > { %v4755_v46 = vsub.f32 1.5, %v4754_v49 }
 0xecd   : > { %v6794_v18 = vpop.eup %6793 }
 0xece   : > { %v4756_v48 = vmul.f32 %v6792_v11, %v4755_v46  ;;  %v4762_v20 = vmul.f32 %v6794_v18, %v4750_v13  ;;  %vm4768_vm10 = vweird.f32 %v6794_v18 }
 0xecf   : > { %vm4769_vm12 = vmor %vm4767_vm11, %vm4768_vm10 }
 0xed0   : > { %v4760_v24 = vsel %vm4759_vm9, %v6792_v11, %v4756_v48  ;;  %v4763_v25 = vmul.f32 %v6794_v18, %v4762_v20 }
 0xed1   : > { %v4771_v26 = vmul.f32 %v4760_v24, %v4739_v59 }
 0xed2   : > { %v4764_v30 = vmul.f32 0.5, %v4763_v25 }
 0xed3   : > { %v4776_v21 = vmul.f32 %v6675_v23, %v4771_v26 }
 0xed4   : > { %v4765_v54 = vsub.f32 1.5, %v4764_v30 }
 0xed5   : > { %v4781_v34 = vadd.f32 %v6676_v52, %v4776_v21 }
 0xed6   : > { %v4766_v36 = vmul.f32 %v6794_v18, %v4765_v54 }
 0xed7   : > { %4783 = vst [vmem:[%s514_s20] sm:$0xff] %v4781_v34 }
 0xed8   : > { %v4770_v33 = vsel %vm4769_vm12, %v6794_v18, %v4766_v36 }
 0xed9   : > { %v4772_v29 = vmul.f32 %v4770_v33, %v4740_v7 }
 0xedb   : > { %v4777_v51 = vmul.f32 %v6675_v23, %v4772_v29 }
 0xedd   : > { %v4782_v37 = vadd.f32 %v6676_v52, %v4777_v51 }
 0xedf   : > { %4784 = vst [vmem:[%s514_s20 + $0x8] sm:$0xff] %v4782_v37 }
 0xee0   : > { %6824 = shalt.err (!%p6821_p3)
}
 0xee1   : > { %s6863_s17 = smov 128   ;;  %s6864_s19 = smov 8  }
 0xee2   : > { %6620 = dma.vmem_to_hbm [thread:$0]  (%p6988_p5), %s4799_s21, 256, %s4801_s28, %s4786_s25, %s6863_s17, %s6863_s17, %s6864_s19  }
 0xee3 PF: > { %s8464_s20 = sld [smem:[#allocation7_spill]] }
 0xee4   : > { %s8465_s1 = sld [smem:[#allocation5_spill]] }
 0xee9   : > { %p6626_p4 = scmp.ge.s32.totalorder %s8464_s20, 2 }
 0xeea   : > { %s4815_s30 = sand.u32 1, %s8465_s1  }
 0xeeb   : > { %p6623_p7 = pnand %p6626_p4, %p6992_p6  ;;  %s4816_s24 = scalar_lea.sflag [#allocation3], %s4815_s30 }
 0xeed   : > { %p6624_p8 = pneg %p6623_p7 }
 0xeef   : > { %6842 = dma.done.wait (%p6624_p8), %s4816_s24, 256  }
 0xef0   : > { %6844 = vsyncadd (%p6624_p8), %s4816_s24, 4294967040  ;;  %s8467_s24 = sld [smem:[#allocation8_spill]]  ;;  %s8470_s21 = smov %s6851_s22 }
 0xef1   : > { %s8468_s23 = sld [smem:[#allocation6_spill]] }
 0xef2   : > { %s8469_s29 = sld [smem:[#allocation9_spill]] }
 0xef6   : > { %p26_p9 = scmp.ge.s32.totalorder %s8467_s24, 4  }
 0xef7   : > { %s8471_s22 = smov %s8468_s23 }
 0xef8   : > { %s8472_s23 = smov %s8469_s29  ;;  %28 = sbr.rel (!%p26_p9) target bundleno = 7 (0x7), region = 132 }
 0xefd   :  { %4822 = vsyncpa [#allocation3], 1 }
 0xefe   :  { %4824 = vsyncpa [#allocation3 + $0x1], 1 }

</bundles_post_ra>
